<compile_context>
chip_gen: v6e
topology: v6e:2x2x1
jax: 0.10.0
libtpu: 0.0.40
codegen_flags: <defaults>
</compile_context>

<pallas_src>
import numpy as np

import jax
import jax.numpy as jnp
from jax.experimental import pallas as pl
from jax.experimental.pallas import tpu as pltpu


# ------------------------- static network geometry -------------------------

H0 = W0 = 64
C_IN = 3
KH = KW = 5
ACTION_NUM = 16                       # PolicyNet_Cov64(action_num=16)

HO1, WO1, HP1, WP1, C1 = 60, 60, 30, 30, 6      # stage 1: conv 3->6, pool
HO2, WO2, HP2, WP2, C2 = 26, 26, 13, 13, 16     # stage 2: conv 6->16, pool
HO3, WO3, HP3, WP3, C3 = 9, 9, 4, 4, 16         # stage 3: conv 16->16, pool

K1 = KH * W0 * C_IN                   # 960  (stage-1 row-im2col width)


# -------------------------------- the kernel -------------------------------

def _policy_net_kernel(xe_ref, xo_ref,
                       a1_ref, se1_ref, so1_ref, b1_ref,
                       a2_ref, re2_ref, ro2_ref, se2_ref, so2_ref, b2_ref,
                       a3_ref, re3_ref, ro3_ref, se3_ref, so3_ref, b3_ref,
                       wf1_ref, bf1_ref, wf2_ref, bf2_ref, wf3_ref, bf3_ref,
                       out_ref):
    f32 = jnp.float32
    bf16 = jnp.bfloat16

    def mm(a, b):
        return jnp.dot(a, b, preferred_element_type=f32)

    # ---- stage 1: conv1 (one matmul per output-row parity) + pool + relu ----
    ce = mm(xe_ref[0], a1_ref[...])                         # (30, 360) f32
    co = mm(xo_ref[0], a1_ref[...])                         # (30, 360) f32
    v1 = jnp.maximum(ce, co).astype(bf16)                   # vertical max
    p1 = jnp.maximum(mm(v1, se1_ref[...]), mm(v1, so1_ref[...]))   # (30, 180)
    act2 = jnp.maximum(p1 + b1_ref[...], 0.0)               # (30, 180) f32

    # ---- stage 2: 5 banded matmuls + row/col selection pooling ----
    conv2 = mm(act2[0:HO2, :].astype(bf16), a2_ref[0])      # (26, 416) f32
    for dh in range(1, KH):
        conv2 = conv2 + mm(act2[dh:dh + HO2, :].astype(bf16), a2_ref[dh])
    c2b = conv2.astype(bf16)
    v2 = jnp.maximum(mm(re2_ref[...], c2b),
                     mm(ro2_ref[...], c2b)).astype(bf16)    # (13, 416)
    p2 = jnp.maximum(mm(v2, se2_ref[...]), mm(v2, so2_ref[...]))   # (13, 208)
    act3 = jnp.maximum(p2 + b2_ref[...], 0.0)               # (13, 208) f32

    # ---- stage 3 ----
    conv3 = mm(act3[0:HO3, :].astype(bf16), a3_ref[0])      # (9, 144) f32
    for dh in range(1, KH):
        conv3 = conv3 + mm(act3[dh:dh + HO3, :].astype(bf16), a3_ref[dh])
    c3b = conv3.astype(bf16)
    v3 = jnp.maximum(mm(re3_ref[...], c3b),
                     mm(ro3_ref[...], c3b)).astype(bf16)    # (4, 144)
    p3 = jnp.maximum(mm(v3, se3_ref[...]), mm(v3, so3_ref[...]))   # (4, 64)
    act4 = jnp.maximum(p3 + b3_ref[...], 0.0)               # (4, 64) f32

    # ---- fc1 (PyTorch NCHW flatten handled in weight layout) ----
    acc = mm(act4[0:1, :].astype(bf16), wf1_ref[0])         # (1, 120)
    for ph in range(1, HP3):
        acc = acc + mm(act4[ph:ph + 1, :].astype(bf16), wf1_ref[ph])
    h1 = jnp.maximum(acc + bf1_ref[...], 0.0)

    # ---- fc2, fc3, softmax ----
    h2 = jnp.maximum(mm(h1.astype(bf16), wf2_ref[...]) + bf2_ref[...], 0.0)
    logits = mm(h2.astype(bf16), wf3_ref[...]) + bf3_ref[...]
    mx = jnp.max(logits, axis=-1, keepdims=True)
    e = jnp.exp(logits - mx)
    out_ref[0] = e / jnp.sum(e, axis=-1, keepdims=True)


# -------------------------- parameter preparation ---------------------------

def prepare_params(p):
    """One-time host-side conversion of PyTorch-layout params to kernel
    layouts: banded conv weights, pooling selection matrices, lane-layout
    biases and fc blocks.  Matmul operands are stored in bf16."""

    def np_(a):
        return np.asarray(jax.device_get(a), dtype=np.float32)

    def band_stack(conv_w, w_in):
        # conv_w: (Co, Ci, 5, 5) -> A[dh, w*Ci+ci, ow*Co+co] = w[co,ci,dh,w-ow]
        wt = np_(conv_w)
        co, ci = wt.shape[0], wt.shape[1]
        wo = w_in - KW + 1
        A = np.zeros((KH, w_in * ci, wo * co), np.float32)
        for dh in range(KH):
            for dw in range(KW):
                blk = wt[:, :, dh, dw].T                    # (Ci, Co)
                for ow in range(wo):
                    wi = ow + dw
                    A[dh, wi * ci:(wi + 1) * ci, ow * co:(ow + 1) * co] = blk
        return A

    def col_sel(wo, wp, co):
        se = np.zeros((wo * co, wp * co), np.float32)
        so = np.zeros_like(se)
        for pw in range(wp):
            for c in range(co):
                se[(2 * pw) * co + c, pw * co + c] = 1.0
                so[(2 * pw + 1) * co + c, pw * co + c] = 1.0
        return se, so

    def row_sel(ho, hp):
        re = np.zeros((hp, ho), np.float32)
        ro = np.zeros_like(re)
        for i in range(hp):
            re[i, 2 * i] = 1.0
            ro[i, 2 * i + 1] = 1.0
        return re, ro

    bf16, f32 = jnp.bfloat16, jnp.float32

    a1 = band_stack(p["conv1_w"], W0).reshape(K1, WO1 * C1)   # (960, 360)
    a2 = band_stack(p["conv2_w"], WP1)                        # (5, 180, 416)
    a3 = band_stack(p["conv3_w"], WP2)                        # (5, 208, 144)
    se1, so1 = col_sel(WO1, WP1, C1)
    se2, so2 = col_sel(WO2, WP2, C2)
    se3, so3 = col_sel(WO3, WP3, C3)
    re2, ro2 = row_sel(HO2, HP2)
    re3, ro3 = row_sel(HO3, HP3)

    # fc1: PyTorch flattens NCHW (c*16 + ph*4 + pw); kernel rows are pw*16+c.
    wf1_t = np_(p["fc1_w"])                                   # (120, 256)
    wf1 = np.zeros((HP3, WP3 * C3, 120), np.float32)
    for ph in range(HP3):
        for pw in range(WP3):
            for c in range(C3):
                wf1[ph, pw * C3 + c, :] = wf1_t[:, c * (HP3 * WP3) + ph * WP3 + pw]

    def tile_bias(b, reps):
        return np.tile(np_(b), reps).reshape(1, -1)

    return {
        "a1": jnp.asarray(a1, bf16),
        "se1": jnp.asarray(se1, bf16), "so1": jnp.asarray(so1, bf16),
        "b1": jnp.asarray(tile_bias(p["conv1_b"], WP1), f32),
        "a2": jnp.asarray(a2, bf16),
        "re2": jnp.asarray(re2, bf16), "ro2": jnp.asarray(ro2, bf16),
        "se2": jnp.asarray(se2, bf16), "so2": jnp.asarray(so2, bf16),
        "b2": jnp.asarray(tile_bias(p["conv2_b"], WP2), f32),
        "a3": jnp.asarray(a3, bf16),
        "re3": jnp.asarray(re3, bf16), "ro3": jnp.asarray(ro3, bf16),
        "se3": jnp.asarray(se3, bf16), "so3": jnp.asarray(so3, bf16),
        "b3": jnp.asarray(tile_bias(p["conv3_b"], WP3), f32),
        "wf1": jnp.asarray(wf1, bf16),
        "bf1": jnp.asarray(np_(p["fc1_b"]).reshape(1, -1), f32),
        "wf2": jnp.asarray(np_(p["fc2_w"]).T, bf16),
        "bf2": jnp.asarray(np_(p["fc2_b"]).reshape(1, -1), f32),
        "wf3": jnp.asarray(np_(p["fc3_w"]).T, bf16),
        "bf3": jnp.asarray(np_(p["fc3_b"]).reshape(1, -1), f32),
    }


_W_ORDER = ["a1", "se1", "so1", "b1",
            "a2", "re2", "ro2", "se2", "so2", "b2",
            "a3", "re3", "ro3", "se3", "so3", "b3",
            "wf1", "bf1", "wf2", "bf2", "wf3", "bf3"]


def build_forward(prepped, batch):
    action_num = prepped["wf3"].shape[-1]

    def full_spec(arr):
        nd = arr.ndim
        return pl.BlockSpec(arr.shape, lambda b, _nd=nd: (0,) * _nd)

    x_spec = pl.BlockSpec((1, HP1, K1), lambda b: (b, 0, 0))
    in_specs = [x_spec, x_spec] + [full_spec(prepped[k]) for k in _W_ORDER]

    call = pl.pallas_call(
        _policy_net_kernel,
        out_shape=jax.ShapeDtypeStruct((batch, 1, action_num), jnp.float32),
        grid=(batch,),
        in_specs=in_specs,
        out_specs=pl.BlockSpec((1, 1, action_num), lambda b: (b, 0, 0)),
        compiler_params=pltpu.CompilerParams(
            dimension_semantics=("parallel",),
            vmem_limit_bytes=32 * 1024 * 1024),
    )

    weights = [prepped[k] for k in _W_ORDER]

    @jax.jit
    def forward(x_nchw):
        # Layout plumbing only: NCHW -> (B, H, W*C), row-im2col for the 5
        # kernel rows, and even/odd output-row split for the fused pool.
        x = jnp.transpose(x_nchw, (0, 2, 3, 1)).reshape(batch, H0, W0 * C_IN)
        xrow = jnp.concatenate([x[:, dh:dh + HO1, :] for dh in range(KH)],
                               axis=-1)                      # (B, 60, 960)
        xe = xrow[:, 0::2].astype(jnp.bfloat16)              # (B, 30, 960)
        xo = xrow[:, 1::2].astype(jnp.bfloat16)
        out = call(xe, xo, *weights)
        return out[:, 0, :]

    return forward


# ---------------------------- pure-JAX reference ----------------------------

def reference_forward(x, p):
    """Exact mirror of the PyTorch module (NCHW, OIHW, NCHW flatten)."""
    def conv(x, w, b):
        y = jax.lax.conv_general_dilated(
            x, w, (1, 1), "VALID",
            dimension_numbers=("NCHW", "OIHW", "NCHW"))
        return jax.nn.relu(y + b[None, :, None, None])

    def pool(x):
        B, C, H, W = x.shape
        x = x[:, :, :H // 2 * 2, :W // 2 * 2]
        return x.reshape(B, C, H // 2, 2, W // 2, 2).max(axis=(3, 5))

    x = pool(conv(x, p["conv1_w"], p["conv1_b"]))
    x = pool(conv(x, p["conv2_w"], p["conv2_b"]))
    x = pool(conv(x, p["conv3_w"], p["conv3_b"]))
    x = x.reshape(x.shape[0], -1)
    x = jax.nn.relu(x @ p["fc1_w"].T + p["fc1_b"])
    x = jax.nn.relu(x @ p["fc2_w"].T + p["fc2_b"])
    return jax.nn.softmax(x @ p["fc3_w"].T + p["fc3_b"], axis=-1)


# ----------------------------------- main -----------------------------------

if __name__ == "__main__":
    key = jax.random.PRNGKey(0)
    ks = jax.random.split(key, 13)

    def init(k, shape, scale=0.05):
        return (scale * jax.random.normal(k, shape)).astype(jnp.float32)

    torch_params = {   # PyTorch layouts: conv (Co,Ci,Kh,Kw), fc (out,in)
        "conv1_w": init(ks[0], (6, 3, 5, 5)),    "conv1_b": init(ks[1], (6,)),
        "conv2_w": init(ks[2], (16, 6, 5, 5)),   "conv2_b": init(ks[3], (16,)),
        "conv3_w": init(ks[4], (16, 16, 5, 5)),  "conv3_b": init(ks[5], (16,)),
        "fc1_w": init(ks[6], (120, 16 * 4 * 4)), "fc1_b": init(ks[7], (120,)),
        "fc2_w": init(ks[8], (84, 120)),         "fc2_b": init(ks[9], (84,)),
        "fc3_w": init(ks[10], (ACTION_NUM, 84)),
        "fc3_b": init(ks[11], (ACTION_NUM,)),
    }

    B = 2
    x = jax.random.normal(ks[12], (B, 3, 64, 64), dtype=jnp.float32)  # NCHW

    prepped = prepare_params(torch_params)        # one-time layout prep
    forward = build_forward(prepped, B)

    out = jax.block_until_ready(forward(x))
    ref = reference_forward(x, torch_params)

    assert out.shape == (B, ACTION_NUM)
    assert bool(jnp.all(jnp.isfinite(out)))
    assert bool(jnp.allclose(jnp.sum(out, axis=-1), 1.0, atol=5e-3))
    max_diff = float(jnp.max(jnp.abs(out - ref)))
    assert bool(jnp.allclose(out, ref, atol=5e-3)), \
        f"max abs diff = {max_diff}"

    print("KERNEL_OK")
</pallas_src>

<mosaic_0001>
module attributes {stable_mosaic.version = 11 : i64} {
  func.func @_policy_net_kernel(%arg0: i32, %arg1: memref<1x30x960xbf16, #tpu.memory_space<vmem>>, %arg2: memref<1x30x960xbf16, #tpu.memory_space<vmem>>, %arg3: memref<960x360xbf16, #tpu.memory_space<vmem>>, %arg4: memref<360x180xbf16, #tpu.memory_space<vmem>>, %arg5: memref<360x180xbf16, #tpu.memory_space<vmem>>, %arg6: memref<1x180xf32, #tpu.memory_space<vmem>>, %arg7: memref<5x180x416xbf16, #tpu.memory_space<vmem>>, %arg8: memref<13x26xbf16, #tpu.memory_space<vmem>>, %arg9: memref<13x26xbf16, #tpu.memory_space<vmem>>, %arg10: memref<416x208xbf16, #tpu.memory_space<vmem>>, %arg11: memref<416x208xbf16, #tpu.memory_space<vmem>>, %arg12: memref<1x208xf32, #tpu.memory_space<vmem>>, %arg13: memref<5x208x144xbf16, #tpu.memory_space<vmem>>, %arg14: memref<4x9xbf16, #tpu.memory_space<vmem>>, %arg15: memref<4x9xbf16, #tpu.memory_space<vmem>>, %arg16: memref<144x64xbf16, #tpu.memory_space<vmem>>, %arg17: memref<144x64xbf16, #tpu.memory_space<vmem>>, %arg18: memref<1x64xf32, #tpu.memory_space<vmem>>, %arg19: memref<4x64x120xbf16, #tpu.memory_space<vmem>>, %arg20: memref<1x120xf32, #tpu.memory_space<vmem>>, %arg21: memref<120x84xbf16, #tpu.memory_space<vmem>>, %arg22: memref<1x84xf32, #tpu.memory_space<vmem>>, %arg23: memref<84x16xbf16, #tpu.memory_space<vmem>>, %arg24: memref<1x16xf32, #tpu.memory_space<vmem>>, %arg25: memref<1x1x16xf32, #tpu.memory_space<vmem>>) attributes {dimension_semantics = [#tpu.dimension_semantics<parallel>], iteration_bounds = array<i64: 2>, scalar_prefetch = 0 : i64, scratch_operands = 0 : i64, tpu.core_type = #tpu.core_type<tc>, window_params = [{transform_indices = @transform_0, window_bounds = array<i64: 1, 30, 960>}, {transform_indices = @transform_1, window_bounds = array<i64: 1, 30, 960>}, {pipeline_mode = #tpu.pipeline_mode<synchronous>, transform_indices = @transform_2, window_bounds = array<i64: 960, 360>}, {pipeline_mode = #tpu.pipeline_mode<synchronous>, transform_indices = @transform_3, window_bounds = array<i64: 360, 180>}, {pipeline_mode = #tpu.pipeline_mode<synchronous>, transform_indices = @transform_4, window_bounds = array<i64: 360, 180>}, {pipeline_mode = #tpu.pipeline_mode<synchronous>, transform_indices = @transform_5, window_bounds = array<i64: 1, 180>}, {pipeline_mode = #tpu.pipeline_mode<synchronous>, transform_indices = @transform_6, window_bounds = array<i64: 5, 180, 416>}, {pipeline_mode = #tpu.pipeline_mode<synchronous>, transform_indices = @transform_7, window_bounds = array<i64: 13, 26>}, {pipeline_mode = #tpu.pipeline_mode<synchronous>, transform_indices = @transform_8, window_bounds = array<i64: 13, 26>}, {pipeline_mode = #tpu.pipeline_mode<synchronous>, transform_indices = @transform_9, window_bounds = array<i64: 416, 208>}, {pipeline_mode = #tpu.pipeline_mode<synchronous>, transform_indices = @transform_10, window_bounds = array<i64: 416, 208>}, {pipeline_mode = #tpu.pipeline_mode<synchronous>, transform_indices = @transform_11, window_bounds = array<i64: 1, 208>}, {pipeline_mode = #tpu.pipeline_mode<synchronous>, transform_indices = @transform_12, window_bounds = array<i64: 5, 208, 144>}, {pipeline_mode = #tpu.pipeline_mode<synchronous>, transform_indices = @transform_13, window_bounds = array<i64: 4, 9>}, {pipeline_mode = #tpu.pipeline_mode<synchronous>, transform_indices = @transform_14, window_bounds = array<i64: 4, 9>}, {pipeline_mode = #tpu.pipeline_mode<synchronous>, transform_indices = @transform_15, window_bounds = array<i64: 144, 64>}, {pipeline_mode = #tpu.pipeline_mode<synchronous>, transform_indices = @transform_16, window_bounds = array<i64: 144, 64>}, {pipeline_mode = #tpu.pipeline_mode<synchronous>, transform_indices = @transform_17, window_bounds = array<i64: 1, 64>}, {pipeline_mode = #tpu.pipeline_mode<synchronous>, transform_indices = @transform_18, window_bounds = array<i64: 4, 64, 120>}, {pipeline_mode = #tpu.pipeline_mode<synchronous>, transform_indices = @transform_19, window_bounds = array<i64: 1, 120>}, {pipeline_mode = #tpu.pipeline_mode<synchronous>, transform_indices = @transform_20, window_bounds = array<i64: 120, 84>}, {pipeline_mode = #tpu.pipeline_mode<synchronous>, transform_indices = @transform_21, window_bounds = array<i64: 1, 84>}, {pipeline_mode = #tpu.pipeline_mode<synchronous>, transform_indices = @transform_22, window_bounds = array<i64: 84, 16>}, {pipeline_mode = #tpu.pipeline_mode<synchronous>, transform_indices = @transform_23, window_bounds = array<i64: 1, 16>}, {transform_indices = @transform_24, window_bounds = array<i64: 1, 1, 16>}]} {
    %c0 = arith.constant 0 : index
    %c0_0 = arith.constant 0 : index
    %c0_1 = arith.constant 0 : index
    %0 = vector.load %arg1[%c0, %c0_0, %c0_1] : memref<1x30x960xbf16, #tpu.memory_space<vmem>>, vector<1x30x960xbf16>
    %1 = vector.shape_cast %0 : vector<1x30x960xbf16> to vector<30x960xbf16>
    %c0_2 = arith.constant 0 : index
    %c0_3 = arith.constant 0 : index
    %2 = vector.load %arg3[%c0_2, %c0_3] : memref<960x360xbf16, #tpu.memory_space<vmem>>, vector<960x360xbf16>
    %cst = arith.constant dense<0.000000e+00> : vector<30x360xf32>
    %3 = tpu.matmul %1, %2, %cst {dimension_numbers = #tpu.dot_dimension_numbers<[1], [0], [0], [1], [0, 0, 1, 1], [], []>} : vector<30x960xbf16>, vector<960x360xbf16>, vector<30x360xf32> -> vector<30x360xf32>
    %c0_4 = arith.constant 0 : index
    %c0_5 = arith.constant 0 : index
    %c0_6 = arith.constant 0 : index
    %4 = vector.load %arg2[%c0_4, %c0_5, %c0_6] : memref<1x30x960xbf16, #tpu.memory_space<vmem>>, vector<1x30x960xbf16>
    %5 = vector.shape_cast %4 : vector<1x30x960xbf16> to vector<30x960xbf16>
    %c0_7 = arith.constant 0 : index
    %c0_8 = arith.constant 0 : index
    %6 = vector.load %arg3[%c0_7, %c0_8] : memref<960x360xbf16, #tpu.memory_space<vmem>>, vector<960x360xbf16>
    %cst_9 = arith.constant dense<0.000000e+00> : vector<30x360xf32>
    %7 = tpu.matmul %5, %6, %cst_9 {dimension_numbers = #tpu.dot_dimension_numbers<[1], [0], [0], [1], [0, 0, 1, 1], [], []>} : vector<30x960xbf16>, vector<960x360xbf16>, vector<30x360xf32> -> vector<30x360xf32>
    %8 = arith.maximumf %3, %7 : vector<30x360xf32>
    %9 = arith.truncf %8 : vector<30x360xf32> to vector<30x360xbf16>
    %c0_10 = arith.constant 0 : index
    %c0_11 = arith.constant 0 : index
    %10 = vector.load %arg4[%c0_10, %c0_11] : memref<360x180xbf16, #tpu.memory_space<vmem>>, vector<360x180xbf16>
    %cst_12 = arith.constant dense<0.000000e+00> : vector<30x180xf32>
    %11 = tpu.matmul %9, %10, %cst_12 {dimension_numbers = #tpu.dot_dimension_numbers<[1], [0], [0], [1], [0, 0, 1, 1], [], []>} : vector<30x360xbf16>, vector<360x180xbf16>, vector<30x180xf32> -> vector<30x180xf32>
    %c0_13 = arith.constant 0 : index
    %c0_14 = arith.constant 0 : index
    %12 = vector.load %arg5[%c0_13, %c0_14] : memref<360x180xbf16, #tpu.memory_space<vmem>>, vector<360x180xbf16>
    %cst_15 = arith.constant dense<0.000000e+00> : vector<30x180xf32>
    %13 = tpu.matmul %9, %12, %cst_15 {dimension_numbers = #tpu.dot_dimension_numbers<[1], [0], [0], [1], [0, 0, 1, 1], [], []>} : vector<30x360xbf16>, vector<360x180xbf16>, vector<30x180xf32> -> vector<30x180xf32>
    %14 = arith.maximumf %11, %13 : vector<30x180xf32>
    %c0_16 = arith.constant 0 : index
    %c0_17 = arith.constant 0 : index
    %15 = vector.load %arg6[%c0_16, %c0_17] : memref<1x180xf32, #tpu.memory_space<vmem>>, vector<1x180xf32>
    %16 = vector.broadcast %15 : vector<1x180xf32> to vector<30x180xf32>
    %17 = arith.addf %14, %16 : vector<30x180xf32>
    %cst_18 = arith.constant 0.000000e+00 : f32
    %18 = vector.broadcast %cst_18 : f32 to vector<30x180xf32>
    %19 = arith.maximumf %17, %18 : vector<30x180xf32>
    %20 = vector.extract_strided_slice %19 {offsets = [0, 0], sizes = [26, 180], strides = [1, 1]} : vector<30x180xf32> to vector<26x180xf32>
    %21 = arith.truncf %20 : vector<26x180xf32> to vector<26x180xbf16>
    %c0_19 = arith.constant 0 : index
    %c0_20 = arith.constant 0 : index
    %c0_21 = arith.constant 0 : index
    %22 = vector.load %arg7[%c0_19, %c0_20, %c0_21] : memref<5x180x416xbf16, #tpu.memory_space<vmem>>, vector<1x180x416xbf16>
    %23 = vector.shape_cast %22 : vector<1x180x416xbf16> to vector<180x416xbf16>
    %cst_22 = arith.constant dense<0.000000e+00> : vector<26x416xf32>
    %24 = tpu.matmul %21, %23, %cst_22 {dimension_numbers = #tpu.dot_dimension_numbers<[1], [0], [0], [1], [0, 0, 1, 1], [], []>} : vector<26x180xbf16>, vector<180x416xbf16>, vector<26x416xf32> -> vector<26x416xf32>
    %25 = vector.extract_strided_slice %19 {offsets = [1, 0], sizes = [26, 180], strides = [1, 1]} : vector<30x180xf32> to vector<26x180xf32>
    %26 = arith.truncf %25 : vector<26x180xf32> to vector<26x180xbf16>
    %c1 = arith.constant 1 : index
    %c0_23 = arith.constant 0 : index
    %c0_24 = arith.constant 0 : index
    %27 = vector.load %arg7[%c1, %c0_23, %c0_24] : memref<5x180x416xbf16, #tpu.memory_space<vmem>>, vector<1x180x416xbf16>
    %28 = vector.shape_cast %27 : vector<1x180x416xbf16> to vector<180x416xbf16>
    %cst_25 = arith.constant dense<0.000000e+00> : vector<26x416xf32>
    %29 = tpu.matmul %26, %28, %cst_25 {dimension_numbers = #tpu.dot_dimension_numbers<[1], [0], [0], [1], [0, 0, 1, 1], [], []>} : vector<26x180xbf16>, vector<180x416xbf16>, vector<26x416xf32> -> vector<26x416xf32>
    %30 = arith.addf %24, %29 : vector<26x416xf32>
    %31 = vector.extract_strided_slice %19 {offsets = [2, 0], sizes = [26, 180], strides = [1, 1]} : vector<30x180xf32> to vector<26x180xf32>
    %32 = arith.truncf %31 : vector<26x180xf32> to vector<26x180xbf16>
    %c2 = arith.constant 2 : index
    %c0_26 = arith.constant 0 : index
    %c0_27 = arith.constant 0 : index
    %33 = vector.load %arg7[%c2, %c0_26, %c0_27] : memref<5x180x416xbf16, #tpu.memory_space<vmem>>, vector<1x180x416xbf16>
    %34 = vector.shape_cast %33 : vector<1x180x416xbf16> to vector<180x416xbf16>
    %cst_28 = arith.constant dense<0.000000e+00> : vector<26x416xf32>
    %35 = tpu.matmul %32, %34, %cst_28 {dimension_numbers = #tpu.dot_dimension_numbers<[1], [0], [0], [1], [0, 0, 1, 1], [], []>} : vector<26x180xbf16>, vector<180x416xbf16>, vector<26x416xf32> -> vector<26x416xf32>
    %36 = arith.addf %30, %35 : vector<26x416xf32>
    %37 = vector.extract_strided_slice %19 {offsets = [3, 0], sizes = [26, 180], strides = [1, 1]} : vector<30x180xf32> to vector<26x180xf32>
    %38 = arith.truncf %37 : vector<26x180xf32> to vector<26x180xbf16>
    %c3 = arith.constant 3 : index
    %c0_29 = arith.constant 0 : index
    %c0_30 = arith.constant 0 : index
    %39 = vector.load %arg7[%c3, %c0_29, %c0_30] : memref<5x180x416xbf16, #tpu.memory_space<vmem>>, vector<1x180x416xbf16>
    %40 = vector.shape_cast %39 : vector<1x180x416xbf16> to vector<180x416xbf16>
    %cst_31 = arith.constant dense<0.000000e+00> : vector<26x416xf32>
    %41 = tpu.matmul %38, %40, %cst_31 {dimension_numbers = #tpu.dot_dimension_numbers<[1], [0], [0], [1], [0, 0, 1, 1], [], []>} : vector<26x180xbf16>, vector<180x416xbf16>, vector<26x416xf32> -> vector<26x416xf32>
    %42 = arith.addf %36, %41 : vector<26x416xf32>
    %43 = vector.extract_strided_slice %19 {offsets = [4, 0], sizes = [26, 180], strides = [1, 1]} : vector<30x180xf32> to vector<26x180xf32>
    %44 = arith.truncf %43 : vector<26x180xf32> to vector<26x180xbf16>
    %c4 = arith.constant 4 : index
    %c0_32 = arith.constant 0 : index
    %c0_33 = arith.constant 0 : index
    %45 = vector.load %arg7[%c4, %c0_32, %c0_33] : memref<5x180x416xbf16, #tpu.memory_space<vmem>>, vector<1x180x416xbf16>
    %46 = vector.shape_cast %45 : vector<1x180x416xbf16> to vector<180x416xbf16>
    %cst_34 = arith.constant dense<0.000000e+00> : vector<26x416xf32>
    %47 = tpu.matmul %44, %46, %cst_34 {dimension_numbers = #tpu.dot_dimension_numbers<[1], [0], [0], [1], [0, 0, 1, 1], [], []>} : vector<26x180xbf16>, vector<180x416xbf16>, vector<26x416xf32> -> vector<26x416xf32>
    %48 = arith.addf %42, %47 : vector<26x416xf32>
    %49 = arith.truncf %48 : vector<26x416xf32> to vector<26x416xbf16>
    %c0_35 = arith.constant 0 : index
    %c0_36 = arith.constant 0 : index
    %50 = vector.load %arg8[%c0_35, %c0_36] : memref<13x26xbf16, #tpu.memory_space<vmem>>, vector<13x26xbf16>
    %cst_37 = arith.constant dense<0.000000e+00> : vector<13x416xf32>
    %51 = tpu.matmul %50, %49, %cst_37 {dimension_numbers = #tpu.dot_dimension_numbers<[1], [0], [0], [1], [0, 0, 1, 1], [], []>} : vector<13x26xbf16>, vector<26x416xbf16>, vector<13x416xf32> -> vector<13x416xf32>
    %c0_38 = arith.constant 0 : index
    %c0_39 = arith.constant 0 : index
    %52 = vector.load %arg9[%c0_38, %c0_39] : memref<13x26xbf16, #tpu.memory_space<vmem>>, vector<13x26xbf16>
    %cst_40 = arith.constant dense<0.000000e+00> : vector<13x416xf32>
    %53 = tpu.matmul %52, %49, %cst_40 {dimension_numbers = #tpu.dot_dimension_numbers<[1], [0], [0], [1], [0, 0, 1, 1], [], []>} : vector<13x26xbf16>, vector<26x416xbf16>, vector<13x416xf32> -> vector<13x416xf32>
    %54 = arith.maximumf %51, %53 : vector<13x416xf32>
    %55 = arith.truncf %54 : vector<13x416xf32> to vector<13x416xbf16>
    %c0_41 = arith.constant 0 : index
    %c0_42 = arith.constant 0 : index
    %56 = vector.load %arg10[%c0_41, %c0_42] : memref<416x208xbf16, #tpu.memory_space<vmem>>, vector<416x208xbf16>
    %cst_43 = arith.constant dense<0.000000e+00> : vector<13x208xf32>
    %57 = tpu.matmul %55, %56, %cst_43 {dimension_numbers = #tpu.dot_dimension_numbers<[1], [0], [0], [1], [0, 0, 1, 1], [], []>} : vector<13x416xbf16>, vector<416x208xbf16>, vector<13x208xf32> -> vector<13x208xf32>
    %c0_44 = arith.constant 0 : index
    %c0_45 = arith.constant 0 : index
    %58 = vector.load %arg11[%c0_44, %c0_45] : memref<416x208xbf16, #tpu.memory_space<vmem>>, vector<416x208xbf16>
    %cst_46 = arith.constant dense<0.000000e+00> : vector<13x208xf32>
    %59 = tpu.matmul %55, %58, %cst_46 {dimension_numbers = #tpu.dot_dimension_numbers<[1], [0], [0], [1], [0, 0, 1, 1], [], []>} : vector<13x416xbf16>, vector<416x208xbf16>, vector<13x208xf32> -> vector<13x208xf32>
    %60 = arith.maximumf %57, %59 : vector<13x208xf32>
    %c0_47 = arith.constant 0 : index
    %c0_48 = arith.constant 0 : index
    %61 = vector.load %arg12[%c0_47, %c0_48] : memref<1x208xf32, #tpu.memory_space<vmem>>, vector<1x208xf32>
    %62 = vector.broadcast %61 : vector<1x208xf32> to vector<13x208xf32>
    %63 = arith.addf %60, %62 : vector<13x208xf32>
    %cst_49 = arith.constant 0.000000e+00 : f32
    %64 = vector.broadcast %cst_49 : f32 to vector<13x208xf32>
    %65 = arith.maximumf %63, %64 : vector<13x208xf32>
    %66 = vector.extract_strided_slice %65 {offsets = [0, 0], sizes = [9, 208], strides = [1, 1]} : vector<13x208xf32> to vector<9x208xf32>
    %67 = arith.truncf %66 : vector<9x208xf32> to vector<9x208xbf16>
    %c0_50 = arith.constant 0 : index
    %c0_51 = arith.constant 0 : index
    %c0_52 = arith.constant 0 : index
    %68 = vector.load %arg13[%c0_50, %c0_51, %c0_52] : memref<5x208x144xbf16, #tpu.memory_space<vmem>>, vector<1x208x144xbf16>
    %69 = vector.shape_cast %68 : vector<1x208x144xbf16> to vector<208x144xbf16>
    %cst_53 = arith.constant dense<0.000000e+00> : vector<9x144xf32>
    %70 = tpu.matmul %67, %69, %cst_53 {dimension_numbers = #tpu.dot_dimension_numbers<[1], [0], [0], [1], [0, 0, 1, 1], [], []>} : vector<9x208xbf16>, vector<208x144xbf16>, vector<9x144xf32> -> vector<9x144xf32>
    %71 = vector.extract_strided_slice %65 {offsets = [1, 0], sizes = [9, 208], strides = [1, 1]} : vector<13x208xf32> to vector<9x208xf32>
    %72 = arith.truncf %71 : vector<9x208xf32> to vector<9x208xbf16>
    %c1_54 = arith.constant 1 : index
    %c0_55 = arith.constant 0 : index
    %c0_56 = arith.constant 0 : index
    %73 = vector.load %arg13[%c1_54, %c0_55, %c0_56] : memref<5x208x144xbf16, #tpu.memory_space<vmem>>, vector<1x208x144xbf16>
    %74 = vector.shape_cast %73 : vector<1x208x144xbf16> to vector<208x144xbf16>
    %cst_57 = arith.constant dense<0.000000e+00> : vector<9x144xf32>
    %75 = tpu.matmul %72, %74, %cst_57 {dimension_numbers = #tpu.dot_dimension_numbers<[1], [0], [0], [1], [0, 0, 1, 1], [], []>} : vector<9x208xbf16>, vector<208x144xbf16>, vector<9x144xf32> -> vector<9x144xf32>
    %76 = arith.addf %70, %75 : vector<9x144xf32>
    %77 = vector.extract_strided_slice %65 {offsets = [2, 0], sizes = [9, 208], strides = [1, 1]} : vector<13x208xf32> to vector<9x208xf32>
    %78 = arith.truncf %77 : vector<9x208xf32> to vector<9x208xbf16>
    %c2_58 = arith.constant 2 : index
    %c0_59 = arith.constant 0 : index
    %c0_60 = arith.constant 0 : index
    %79 = vector.load %arg13[%c2_58, %c0_59, %c0_60] : memref<5x208x144xbf16, #tpu.memory_space<vmem>>, vector<1x208x144xbf16>
    %80 = vector.shape_cast %79 : vector<1x208x144xbf16> to vector<208x144xbf16>
    %cst_61 = arith.constant dense<0.000000e+00> : vector<9x144xf32>
    %81 = tpu.matmul %78, %80, %cst_61 {dimension_numbers = #tpu.dot_dimension_numbers<[1], [0], [0], [1], [0, 0, 1, 1], [], []>} : vector<9x208xbf16>, vector<208x144xbf16>, vector<9x144xf32> -> vector<9x144xf32>
    %82 = arith.addf %76, %81 : vector<9x144xf32>
    %83 = vector.extract_strided_slice %65 {offsets = [3, 0], sizes = [9, 208], strides = [1, 1]} : vector<13x208xf32> to vector<9x208xf32>
    %84 = arith.truncf %83 : vector<9x208xf32> to vector<9x208xbf16>
    %c3_62 = arith.constant 3 : index
    %c0_63 = arith.constant 0 : index
    %c0_64 = arith.constant 0 : index
    %85 = vector.load %arg13[%c3_62, %c0_63, %c0_64] : memref<5x208x144xbf16, #tpu.memory_space<vmem>>, vector<1x208x144xbf16>
    %86 = vector.shape_cast %85 : vector<1x208x144xbf16> to vector<208x144xbf16>
    %cst_65 = arith.constant dense<0.000000e+00> : vector<9x144xf32>
    %87 = tpu.matmul %84, %86, %cst_65 {dimension_numbers = #tpu.dot_dimension_numbers<[1], [0], [0], [1], [0, 0, 1, 1], [], []>} : vector<9x208xbf16>, vector<208x144xbf16>, vector<9x144xf32> -> vector<9x144xf32>
    %88 = arith.addf %82, %87 : vector<9x144xf32>
    %89 = vector.extract_strided_slice %65 {offsets = [4, 0], sizes = [9, 208], strides = [1, 1]} : vector<13x208xf32> to vector<9x208xf32>
    %90 = arith.truncf %89 : vector<9x208xf32> to vector<9x208xbf16>
    %c4_66 = arith.constant 4 : index
    %c0_67 = arith.constant 0 : index
    %c0_68 = arith.constant 0 : index
    %91 = vector.load %arg13[%c4_66, %c0_67, %c0_68] : memref<5x208x144xbf16, #tpu.memory_space<vmem>>, vector<1x208x144xbf16>
    %92 = vector.shape_cast %91 : vector<1x208x144xbf16> to vector<208x144xbf16>
    %cst_69 = arith.constant dense<0.000000e+00> : vector<9x144xf32>
    %93 = tpu.matmul %90, %92, %cst_69 {dimension_numbers = #tpu.dot_dimension_numbers<[1], [0], [0], [1], [0, 0, 1, 1], [], []>} : vector<9x208xbf16>, vector<208x144xbf16>, vector<9x144xf32> -> vector<9x144xf32>
    %94 = arith.addf %88, %93 : vector<9x144xf32>
    %95 = arith.truncf %94 : vector<9x144xf32> to vector<9x144xbf16>
    %c0_70 = arith.constant 0 : index
    %c0_71 = arith.constant 0 : index
    %96 = vector.load %arg14[%c0_70, %c0_71] : memref<4x9xbf16, #tpu.memory_space<vmem>>, vector<4x9xbf16>
    %cst_72 = arith.constant dense<0.000000e+00> : vector<4x144xf32>
    %97 = tpu.matmul %96, %95, %cst_72 {dimension_numbers = #tpu.dot_dimension_numbers<[1], [0], [0], [1], [0, 0, 1, 1], [], []>} : vector<4x9xbf16>, vector<9x144xbf16>, vector<4x144xf32> -> vector<4x144xf32>
    %c0_73 = arith.constant 0 : index
    %c0_74 = arith.constant 0 : index
    %98 = vector.load %arg15[%c0_73, %c0_74] : memref<4x9xbf16, #tpu.memory_space<vmem>>, vector<4x9xbf16>
    %cst_75 = arith.constant dense<0.000000e+00> : vector<4x144xf32>
    %99 = tpu.matmul %98, %95, %cst_75 {dimension_numbers = #tpu.dot_dimension_numbers<[1], [0], [0], [1], [0, 0, 1, 1], [], []>} : vector<4x9xbf16>, vector<9x144xbf16>, vector<4x144xf32> -> vector<4x144xf32>
    %100 = arith.maximumf %97, %99 : vector<4x144xf32>
    %101 = arith.truncf %100 : vector<4x144xf32> to vector<4x144xbf16>
    %c0_76 = arith.constant 0 : index
    %c0_77 = arith.constant 0 : index
    %102 = vector.load %arg16[%c0_76, %c0_77] : memref<144x64xbf16, #tpu.memory_space<vmem>>, vector<144x64xbf16>
    %cst_78 = arith.constant dense<0.000000e+00> : vector<4x64xf32>
    %103 = tpu.matmul %101, %102, %cst_78 {dimension_numbers = #tpu.dot_dimension_numbers<[1], [0], [0], [1], [0, 0, 1, 1], [], []>} : vector<4x144xbf16>, vector<144x64xbf16>, vector<4x64xf32> -> vector<4x64xf32>
    %c0_79 = arith.constant 0 : index
    %c0_80 = arith.constant 0 : index
    %104 = vector.load %arg17[%c0_79, %c0_80] : memref<144x64xbf16, #tpu.memory_space<vmem>>, vector<144x64xbf16>
    %cst_81 = arith.constant dense<0.000000e+00> : vector<4x64xf32>
    %105 = tpu.matmul %101, %104, %cst_81 {dimension_numbers = #tpu.dot_dimension_numbers<[1], [0], [0], [1], [0, 0, 1, 1], [], []>} : vector<4x144xbf16>, vector<144x64xbf16>, vector<4x64xf32> -> vector<4x64xf32>
    %106 = arith.maximumf %103, %105 : vector<4x64xf32>
    %c0_82 = arith.constant 0 : index
    %c0_83 = arith.constant 0 : index
    %107 = vector.load %arg18[%c0_82, %c0_83] : memref<1x64xf32, #tpu.memory_space<vmem>>, vector<1x64xf32>
    %108 = vector.broadcast %107 : vector<1x64xf32> to vector<4x64xf32>
    %109 = arith.addf %106, %108 : vector<4x64xf32>
    %cst_84 = arith.constant 0.000000e+00 : f32
    %110 = vector.broadcast %cst_84 : f32 to vector<4x64xf32>
    %111 = arith.maximumf %109, %110 : vector<4x64xf32>
    %112 = vector.extract_strided_slice %111 {offsets = [0, 0], sizes = [1, 64], strides = [1, 1]} : vector<4x64xf32> to vector<1x64xf32>
    %113 = arith.truncf %112 : vector<1x64xf32> to vector<1x64xbf16>
    %c0_85 = arith.constant 0 : index
    %c0_86 = arith.constant 0 : index
    %c0_87 = arith.constant 0 : index
    %114 = vector.load %arg19[%c0_85, %c0_86, %c0_87] : memref<4x64x120xbf16, #tpu.memory_space<vmem>>, vector<1x64x120xbf16>
    %115 = vector.shape_cast %114 : vector<1x64x120xbf16> to vector<64x120xbf16>
    %cst_88 = arith.constant dense<0.000000e+00> : vector<1x120xf32>
    %116 = tpu.matmul %113, %115, %cst_88 {dimension_numbers = #tpu.dot_dimension_numbers<[1], [0], [0], [1], [0, 0, 1, 1], [], []>} : vector<1x64xbf16>, vector<64x120xbf16>, vector<1x120xf32> -> vector<1x120xf32>
    %117 = vector.extract_strided_slice %111 {offsets = [1, 0], sizes = [1, 64], strides = [1, 1]} : vector<4x64xf32> to vector<1x64xf32>
    %118 = arith.truncf %117 : vector<1x64xf32> to vector<1x64xbf16>
    %c1_89 = arith.constant 1 : index
    %c0_90 = arith.constant 0 : index
    %c0_91 = arith.constant 0 : index
    %119 = vector.load %arg19[%c1_89, %c0_90, %c0_91] : memref<4x64x120xbf16, #tpu.memory_space<vmem>>, vector<1x64x120xbf16>
    %120 = vector.shape_cast %119 : vector<1x64x120xbf16> to vector<64x120xbf16>
    %cst_92 = arith.constant dense<0.000000e+00> : vector<1x120xf32>
    %121 = tpu.matmul %118, %120, %cst_92 {dimension_numbers = #tpu.dot_dimension_numbers<[1], [0], [0], [1], [0, 0, 1, 1], [], []>} : vector<1x64xbf16>, vector<64x120xbf16>, vector<1x120xf32> -> vector<1x120xf32>
    %122 = arith.addf %116, %121 : vector<1x120xf32>
    %123 = vector.extract_strided_slice %111 {offsets = [2, 0], sizes = [1, 64], strides = [1, 1]} : vector<4x64xf32> to vector<1x64xf32>
    %124 = arith.truncf %123 : vector<1x64xf32> to vector<1x64xbf16>
    %c2_93 = arith.constant 2 : index
    %c0_94 = arith.constant 0 : index
    %c0_95 = arith.constant 0 : index
    %125 = vector.load %arg19[%c2_93, %c0_94, %c0_95] : memref<4x64x120xbf16, #tpu.memory_space<vmem>>, vector<1x64x120xbf16>
    %126 = vector.shape_cast %125 : vector<1x64x120xbf16> to vector<64x120xbf16>
    %cst_96 = arith.constant dense<0.000000e+00> : vector<1x120xf32>
    %127 = tpu.matmul %124, %126, %cst_96 {dimension_numbers = #tpu.dot_dimension_numbers<[1], [0], [0], [1], [0, 0, 1, 1], [], []>} : vector<1x64xbf16>, vector<64x120xbf16>, vector<1x120xf32> -> vector<1x120xf32>
    %128 = arith.addf %122, %127 : vector<1x120xf32>
    %129 = vector.extract_strided_slice %111 {offsets = [3, 0], sizes = [1, 64], strides = [1, 1]} : vector<4x64xf32> to vector<1x64xf32>
    %130 = arith.truncf %129 : vector<1x64xf32> to vector<1x64xbf16>
    %c3_97 = arith.constant 3 : index
    %c0_98 = arith.constant 0 : index
    %c0_99 = arith.constant 0 : index
    %131 = vector.load %arg19[%c3_97, %c0_98, %c0_99] : memref<4x64x120xbf16, #tpu.memory_space<vmem>>, vector<1x64x120xbf16>
    %132 = vector.shape_cast %131 : vector<1x64x120xbf16> to vector<64x120xbf16>
    %cst_100 = arith.constant dense<0.000000e+00> : vector<1x120xf32>
    %133 = tpu.matmul %130, %132, %cst_100 {dimension_numbers = #tpu.dot_dimension_numbers<[1], [0], [0], [1], [0, 0, 1, 1], [], []>} : vector<1x64xbf16>, vector<64x120xbf16>, vector<1x120xf32> -> vector<1x120xf32>
    %134 = arith.addf %128, %133 : vector<1x120xf32>
    %c0_101 = arith.constant 0 : index
    %c0_102 = arith.constant 0 : index
    %135 = vector.load %arg20[%c0_101, %c0_102] : memref<1x120xf32, #tpu.memory_space<vmem>>, vector<1x120xf32>
    %136 = arith.addf %134, %135 : vector<1x120xf32>
    %cst_103 = arith.constant 0.000000e+00 : f32
    %137 = vector.broadcast %cst_103 : f32 to vector<1x120xf32>
    %138 = arith.maximumf %136, %137 : vector<1x120xf32>
    %139 = arith.truncf %138 : vector<1x120xf32> to vector<1x120xbf16>
    %c0_104 = arith.constant 0 : index
    %c0_105 = arith.constant 0 : index
    %140 = vector.load %arg21[%c0_104, %c0_105] : memref<120x84xbf16, #tpu.memory_space<vmem>>, vector<120x84xbf16>
    %cst_106 = arith.constant dense<0.000000e+00> : vector<1x84xf32>
    %141 = tpu.matmul %139, %140, %cst_106 {dimension_numbers = #tpu.dot_dimension_numbers<[1], [0], [0], [1], [0, 0, 1, 1], [], []>} : vector<1x120xbf16>, vector<120x84xbf16>, vector<1x84xf32> -> vector<1x84xf32>
    %c0_107 = arith.constant 0 : index
    %c0_108 = arith.constant 0 : index
    %142 = vector.load %arg22[%c0_107, %c0_108] : memref<1x84xf32, #tpu.memory_space<vmem>>, vector<1x84xf32>
    %143 = arith.addf %141, %142 : vector<1x84xf32>
    %cst_109 = arith.constant 0.000000e+00 : f32
    %144 = vector.broadcast %cst_109 : f32 to vector<1x84xf32>
    %145 = arith.maximumf %143, %144 : vector<1x84xf32>
    %146 = arith.truncf %145 : vector<1x84xf32> to vector<1x84xbf16>
    %c0_110 = arith.constant 0 : index
    %c0_111 = arith.constant 0 : index
    %147 = vector.load %arg23[%c0_110, %c0_111] : memref<84x16xbf16, #tpu.memory_space<vmem>>, vector<84x16xbf16>
    %cst_112 = arith.constant dense<0.000000e+00> : vector<1x16xf32>
    %148 = tpu.matmul %146, %147, %cst_112 {dimension_numbers = #tpu.dot_dimension_numbers<[1], [0], [0], [1], [0, 0, 1, 1], [], []>} : vector<1x84xbf16>, vector<84x16xbf16>, vector<1x16xf32> -> vector<1x16xf32>
    %c0_113 = arith.constant 0 : index
    %c0_114 = arith.constant 0 : index
    %149 = vector.load %arg24[%c0_113, %c0_114] : memref<1x16xf32, #tpu.memory_space<vmem>>, vector<1x16xf32>
    %150 = arith.addf %148, %149 : vector<1x16xf32>
    %cst_115 = arith.constant dense<0xFF800000> : vector<1xf32>
    %151 = vector.multi_reduction <maximumf>, %150, %cst_115 [1] : vector<1x16xf32> to vector<1xf32>
    %152 = vector.shape_cast %151 : vector<1xf32> to vector<1x1xf32>
    %153 = vector.broadcast %152 : vector<1x1xf32> to vector<1x16xf32>
    %154 = arith.subf %150, %153 : vector<1x16xf32>
    %155 = math.exp %154 : vector<1x16xf32>
    %cst_116 = arith.constant dense<0.000000e+00> : vector<1xf32>
    %156 = vector.multi_reduction <add>, %155, %cst_116 [1] : vector<1x16xf32> to vector<1xf32>
    %157 = vector.shape_cast %156 : vector<1xf32> to vector<1x1xf32>
    %158 = vector.broadcast %157 : vector<1x1xf32> to vector<1x16xf32>
    %159 = arith.divf %155, %158 : vector<1x16xf32>
    %c0_117 = arith.constant 0 : index
    %c0_118 = arith.constant 0 : index
    %c0_119 = arith.constant 0 : index
    %160 = vector.load %arg25[%c0_117, %c0_118, %c0_119] : memref<1x1x16xf32, #tpu.memory_space<vmem>>, vector<1x1x16xf32>
    %161 = vector.shape_cast %160 : vector<1x1x16xf32> to vector<1x16xf32>
    %162 = vector.shape_cast %159 : vector<1x16xf32> to vector<1x1x16xf32>
    tpu.vector_store %arg25[%c0_117, %c0_118, %c0_119], %162 {strides = array<i32>} : memref<1x1x16xf32, #tpu.memory_space<vmem>>, vector<1x1x16xf32>,
    return
  }
  func.func @transform_0(%arg0: i32) -> (i32, i32, i32) {
    %c0_i32 = arith.constant 0 : i32
    %c0_i32_0 = arith.constant 0 : i32
    %c0_i32_1 = arith.constant 0 : i32
    return %arg0, %c0_i32, %c0_i32_0 : i32, i32, i32
  }
  func.func @transform_1(%arg0: i32) -> (i32, i32, i32) {
    %c0_i32 = arith.constant 0 : i32
    %c0_i32_0 = arith.constant 0 : i32
    %c0_i32_1 = arith.constant 0 : i32
    return %arg0, %c0_i32, %c0_i32_0 : i32, i32, i32
  }
  func.func @transform_2(%arg0: i32) -> (i32, i32) {
    %c0_i32 = arith.constant 0 : i32
    %c0_i32_0 = arith.constant 0 : i32
    %c0_i32_1 = arith.constant 0 : i32
    return %c0_i32, %c0_i32_0 : i32, i32
  }
  func.func @transform_3(%arg0: i32) -> (i32, i32) {
    %c0_i32 = arith.constant 0 : i32
    %c0_i32_0 = arith.constant 0 : i32
    %c0_i32_1 = arith.constant 0 : i32
    return %c0_i32, %c0_i32_0 : i32, i32
  }
  func.func @transform_4(%arg0: i32) -> (i32, i32) {
    %c0_i32 = arith.constant 0 : i32
    %c0_i32_0 = arith.constant 0 : i32
    %c0_i32_1 = arith.constant 0 : i32
    return %c0_i32, %c0_i32_0 : i32, i32
  }
  func.func @transform_5(%arg0: i32) -> (i32, i32) {
    %c0_i32 = arith.constant 0 : i32
    %c0_i32_0 = arith.constant 0 : i32
    %c0_i32_1 = arith.constant 0 : i32
    return %c0_i32, %c0_i32_0 : i32, i32
  }
  func.func @transform_6(%arg0: i32) -> (i32, i32, i32) {
    %c0_i32 = arith.constant 0 : i32
    %c0_i32_0 = arith.constant 0 : i32
    %c0_i32_1 = arith.constant 0 : i32
    %c0_i32_2 = arith.constant 0 : i32
    return %c0_i32, %c0_i32_0, %c0_i32_1 : i32, i32, i32
  }
  func.func @transform_7(%arg0: i32) -> (i32, i32) {
    %c0_i32 = arith.constant 0 : i32
    %c0_i32_0 = arith.constant 0 : i32
    %c0_i32_1 = arith.constant 0 : i32
    return %c0_i32, %c0_i32_0 : i32, i32
  }
  func.func @transform_8(%arg0: i32) -> (i32, i32) {
    %c0_i32 = arith.constant 0 : i32
    %c0_i32_0 = arith.constant 0 : i32
    %c0_i32_1 = arith.constant 0 : i32
    return %c0_i32, %c0_i32_0 : i32, i32
  }
  func.func @transform_9(%arg0: i32) -> (i32, i32) {
    %c0_i32 = arith.constant 0 : i32
    %c0_i32_0 = arith.constant 0 : i32
    %c0_i32_1 = arith.constant 0 : i32
    return %c0_i32, %c0_i32_0 : i32, i32
  }
  func.func @transform_10(%arg0: i32) -> (i32, i32) {
    %c0_i32 = arith.constant 0 : i32
    %c0_i32_0 = arith.constant 0 : i32
    %c0_i32_1 = arith.constant 0 : i32
    return %c0_i32, %c0_i32_0 : i32, i32
  }
  func.func @transform_11(%arg0: i32) -> (i32, i32) {
    %c0_i32 = arith.constant 0 : i32
    %c0_i32_0 = arith.constant 0 : i32
    %c0_i32_1 = arith.constant 0 : i32
    return %c0_i32, %c0_i32_0 : i32, i32
  }
  func.func @transform_12(%arg0: i32) -> (i32, i32, i32) {
    %c0_i32 = arith.constant 0 : i32
    %c0_i32_0 = arith.constant 0 : i32
    %c0_i32_1 = arith.constant 0 : i32
    %c0_i32_2 = arith.constant 0 : i32
    return %c0_i32, %c0_i32_0, %c0_i32_1 : i32, i32, i32
  }
  func.func @transform_13(%arg0: i32) -> (i32, i32) {
    %c0_i32 = arith.constant 0 : i32
    %c0_i32_0 = arith.constant 0 : i32
    %c0_i32_1 = arith.constant 0 : i32
    return %c0_i32, %c0_i32_0 : i32, i32
  }
  func.func @transform_14(%arg0: i32) -> (i32, i32) {
    %c0_i32 = arith.constant 0 : i32
    %c0_i32_0 = arith.constant 0 : i32
    %c0_i32_1 = arith.constant 0 : i32
    return %c0_i32, %c0_i32_0 : i32, i32
  }
  func.func @transform_15(%arg0: i32) -> (i32, i32) {
    %c0_i32 = arith.constant 0 : i32
    %c0_i32_0 = arith.constant 0 : i32
    %c0_i32_1 = arith.constant 0 : i32
    return %c0_i32, %c0_i32_0 : i32, i32
  }
  func.func @transform_16(%arg0: i32) -> (i32, i32) {
    %c0_i32 = arith.constant 0 : i32
    %c0_i32_0 = arith.constant 0 : i32
    %c0_i32_1 = arith.constant 0 : i32
    return %c0_i32, %c0_i32_0 : i32, i32
  }
  func.func @transform_17(%arg0: i32) -> (i32, i32) {
    %c0_i32 = arith.constant 0 : i32
    %c0_i32_0 = arith.constant 0 : i32
    %c0_i32_1 = arith.constant 0 : i32
    return %c0_i32, %c0_i32_0 : i32, i32
  }
  func.func @transform_18(%arg0: i32) -> (i32, i32, i32) {
    %c0_i32 = arith.constant 0 : i32
    %c0_i32_0 = arith.constant 0 : i32
    %c0_i32_1 = arith.constant 0 : i32
    %c0_i32_2 = arith.constant 0 : i32
    return %c0_i32, %c0_i32_0, %c0_i32_1 : i32, i32, i32
  }
  func.func @transform_19(%arg0: i32) -> (i32, i32) {
    %c0_i32 = arith.constant 0 : i32
    %c0_i32_0 = arith.constant 0 : i32
    %c0_i32_1 = arith.constant 0 : i32
    return %c0_i32, %c0_i32_0 : i32, i32
  }
  func.func @transform_20(%arg0: i32) -> (i32, i32) {
    %c0_i32 = arith.constant 0 : i32
    %c0_i32_0 = arith.constant 0 : i32
    %c0_i32_1 = arith.constant 0 : i32
    return %c0_i32, %c0_i32_0 : i32, i32
  }
  func.func @transform_21(%arg0: i32) -> (i32, i32) {
    %c0_i32 = arith.constant 0 : i32
    %c0_i32_0 = arith.constant 0 : i32
    %c0_i32_1 = arith.constant 0 : i32
    return %c0_i32, %c0_i32_0 : i32, i32
  }
  func.func @transform_22(%arg0: i32) -> (i32, i32) {
    %c0_i32 = arith.constant 0 : i32
    %c0_i32_0 = arith.constant 0 : i32
    %c0_i32_1 = arith.constant 0 : i32
    return %c0_i32, %c0_i32_0 : i32, i32
  }
  func.func @transform_23(%arg0: i32) -> (i32, i32) {
    %c0_i32 = arith.constant 0 : i32
    %c0_i32_0 = arith.constant 0 : i32
    %c0_i32_1 = arith.constant 0 : i32
    return %c0_i32, %c0_i32_0 : i32, i32
  }
  func.func @transform_24(%arg0: i32) -> (i32, i32, i32) {
    %c0_i32 = arith.constant 0 : i32
    %c0_i32_0 = arith.constant 0 : i32
    %c0_i32_1 = arith.constant 0 : i32
    return %arg0, %c0_i32, %c0_i32_0 : i32, i32, i32
  }
}

</mosaic_0001>

<bundles_post_ra>
// kernel: forward.1
= control target key start
LH: loop header
LB: loop body
LE: loop exit
PB: predicated region body
PF: predicated region fallthrough
CT: control target
= control target key end

     0   :  { %s15821_s0 = inlined_call_operand.vmem [shape: bf16[2,30,960], index: 0, kind: input, shape index: {}]   ;;  %s15822_s1 = inlined_call_operand.vmem [shape: bf16[2,30,960], index: 1, kind: input, shape index: {}]   ;;  %s15823_s2 = inlined_call_operand.vmem [shape: bf16[960,360], index: 2, kind: input, shape index: {}]   ;;  %s15824_s3 = inlined_call_operand.vmem [shape: bf16[360,180], index: 3, kind: input, shape index: {}]   ;;  %s15825_s4 = inlined_call_operand.vmem [shape: bf16[360,180], index: 4, kind: input, shape index: {}]   ;;  %s15826_s5 = inlined_call_operand.vmem [shape: f32[1,180], index: 5, kind: input, shape index: {}]   ;;  %s15827_s6 = inlined_call_operand.vmem [shape: bf16[5,180,416], index: 6, kind: input, shape index: {}]   ;;  %s15828_s7 = inlined_call_operand.vmem [shape: bf16[13,26], index: 7, kind: input, shape index: {}]   ;;  %s15829_s8 = inlined_call_operand.vmem [shape: bf16[13,26], index: 8, kind: input, shape index: {}]   ;;  %s15830_s9 = inlined_call_operand.vmem [shape: bf16[416,208], index: 9, kind: input, shape index: {}]   ;;  %s15831_s10 = inlined_call_operand.vmem [shape: bf16[416,208], index: 10, kind: input, shape index: {}]   ;;  %s15832_s11 = inlined_call_operand.vmem [shape: f32[1,208], index: 11, kind: input, shape index: {}]   ;;  %s15833_s12 = inlined_call_operand.vmem [shape: bf16[5,208,144], index: 12, kind: input, shape index: {}]   ;;  %s15834_s13 = inlined_call_operand.vmem [shape: bf16[4,9], index: 13, kind: input, shape index: {}]   ;;  %s15835_s14 = inlined_call_operand.vmem [shape: bf16[4,9], index: 14, kind: input, shape index: {}]   ;;  %s15836_s15 = inlined_call_operand.vmem [shape: bf16[144,64], index: 15, kind: input, shape index: {}]   ;;  %s15837_s16 = inlined_call_operand.vmem [shape: bf16[144,64], index: 16, kind: input, shape index: {}]   ;;  %s15838_s17 = inlined_call_operand.vmem [shape: f32[1,64], index: 17, kind: input, shape index: {}]   ;;  %s15839_s18 = inlined_call_operand.vmem [shape: bf16[4,64,120], index: 18, kind: input, shape index: {}]   ;;  %s15840_s19 = inlined_call_operand.vmem [shape: f32[1,120], index: 19, kind: input, shape index: {}]   ;;  %s15841_s20 = inlined_call_operand.vmem [shape: bf16[120,84], index: 20, kind: input, shape index: {}]   ;;  %s15842_s21 = inlined_call_operand.vmem [shape: f32[1,84], index: 21, kind: input, shape index: {}]   ;;  %s15843_s22 = inlined_call_operand.vmem [shape: bf16[84,16], index: 22, kind: input, shape index: {}]   ;;  %s15844_s23 = inlined_call_operand.vmem [shape: f32[1,16], index: 23, kind: input, shape index: {}]   ;;  %s15845_s24 = inlined_call_operand.hbm [shape: f32[2,1,16], index: 24, kind: output, shape index: {}]  }
   0x1   :  { %15867 = sst [smem:[#allocation26_spill]] %s15821_s0 }
   0x2   :  { %15868 = sst [smem:[#allocation27_spill]] %s15822_s1 }
   0x3   :  { %15869 = sst [smem:[#allocation28_spill]] %s15823_s2 }
   0x4   :  { %15870 = sst [smem:[#allocation29_spill]] %s15824_s3 }
   0x5   :  { %15871 = sst [smem:[#allocation30_spill]] %s15825_s4 }
   0x6   :  { %15872 = sst [smem:[#allocation31_spill]] %s15826_s5 }
   0x7   :  { %15873 = sst [smem:[#allocation32_spill]] %s15827_s6 }
   0x8   :  { %15874 = sst [smem:[#allocation33_spill]] %s15828_s7 }
   0x9   :  { %15875 = sst [smem:[#allocation34_spill]] %s15829_s8 }
   0xa   :  { %15876 = sst [smem:[#allocation35_spill]] %s15830_s9 }
   0xb   :  { %15877 = sst [smem:[#allocation36_spill]] %s15845_s24 }
   0xc   :  { %29 = vsyncpa [#allocation3], 0 }
   0xd   :  { %31 = vsyncpa [#allocation3 + $0x1], 0  ;;  %s12045_s5 = smov 0   ;;  %s12047_s26 = smov 0  }
   0xe   :  { %s12049_s27 = smov 0   ;;  %s12051_s28 = smov 0  }
   0xf LB: > { %15878 = sst [smem:[#allocation5_spill]] %s11901_s5  ;;  %s12066_s6 = sadd.s32 4294967295, %s11913_s28   ;;  %s11913_s28 = sphi %s12051_s28, %s15935_s28   ;;  %s11909_s27 = sphi %s12049_s27, %s15937_s27   ;;  %s11905_s26 = sphi %s12047_s26, %s15939_s26   ;;  %s11901_s5 = sphi %s12045_s5, %s15938_s5  }
  0x10   : > { %15879 = sst [smem:[#allocation6_spill]] %s11909_s27  ;;  %s8988_s2 = sadd.s32 4294967294, %s11913_s28  }
  0x11   : > { %15880 = sst [smem:[#allocation7_spill]] %s11913_s28  ;;  %s12070_s29 = sadd.s32 1, %s11913_s28  }
  0x12   : > { %15881 = sst [smem:[#allocation8_spill]] %s12070_s29  ;;  %s558_s0 = sadd.s32 1, %s11909_s27 }
  0x13   : > { %s555_s7 = ssub.s32 %s11913_s28, %s12070_s29  ;;  %p568_p0 = scmp.ne.s32.totalorder %s11909_s27, %s11905_s26 }
  0x14   : > { %p556_p1 = scmp.eq.s32.totalorder %s555_s7, 0  ;;  %p569_p2 = scmp.eq.s32.totalorder %s12066_s6, 1 }
  0x15   : > { %p574_p3 = scmp.ne.s32.totalorder %s11905_s26, %s11901_s5  ;;  %p575_p4 = scmp.eq.s32.totalorder %s8988_s2, 1 }
  0x16   : > { %s12081_s30 = scalar_select %p556_p1, %s11909_s27, %s558_s0  }
  0x17   : > { %p12083_p5 = por %p569_p2, %p568_p0  ;;  %p12087_p6 = por %p575_p4, %p574_p3 }
  0x18   : > { %15882 = sst [smem:[#allocation9_spill]] %s12081_s30  ;;  %p8991_p7 = scmp.ge.s32.totalorder %s11913_s28, 1 }
  0x19   : > { %s15884_s25 = scalar_select %p12087_p6, 1, 0 }
  0x1a   : > { %p675_p8 = scmp.lt.s32.totalorder %s11913_s28, 3 }
  0x1b   : > { %15885 = sst [smem:[#allocation10_spill]] %s15884_s25 }
  0x1c   : > { %p676_p9 = pnand %p8991_p7, %p675_p8 }
  0x1e   : > { %679 = sbr.rel (%p676_p9) target bundleno = 3530 (0xdca), region = 116 }
  0x23   : > { %s15886_s1 = sld [smem:[#allocation28_spill]]  ;;  %p745_p10 = scmp.lt.s32.totalorder %s12066_s6, 1  ;;  %vm2050_vm0 = vcmask 523264   ;;  %vm3268_vm1 = vcmask 1043456   ;;  %vm3261_vm2 = vcmask 850944   ;;  %vm4166_vm3 = vcmask 1041408  }
  0x24   : > { %s15887_s4 = sld [smem:[#allocation26_spill]]  ;;  %vm4688_vm4 = vcmask 1046528   ;;  %vm3896_vm5 = vsmask.f32 7424  ;;  %vm5548_vm6 = vcmask 1045504   ;;  %vm4159_vm7 = vcmask 424960  }
  0x25   : > { %s12206_s30 = scalar_select %p745_p10, %s12066_s6, 1  ;;  %vm5114_vm8 = vsmask.f32 6400  ;;  %vm5946_vm9 = vcmask 1044480   ;;  %vm5942_vm10 = vcmask 211968   ;;  %vm6465_vm11 = vcmask 261120  }
  0x26   : > { %s15890_s8 = sld [smem:[#allocation29_spill]]  ;;  %vm7177_vm12 = vcmask 654336   ;;  %vm8038_vm13 = vcmask 72704   ;;  %vm8212_vm14 = vcmask 130048   ;;  %vm11918_vm15 = vmmov 0   ;;  %s10206_s0 = sshll.u32 %s12066_s6, 4 }
  0x27   : > { %s15857_s2 = sshll.u32 %s12206_s30, 7  ;;  %s15893_s25 = sld [smem:[#allocation32_spill]] }
  0x28   : > { %s15895_s29 = sld [smem:[#allocation31_spill]] }
  0x29   : > { %v10542_v0 = vld [vmem:[%s15886_s1 + $0xac] ss:$12 sps:$4 sm:$0xff]   ;;  %v10546_v2 = vld [vmem:[%s15886_s1 + $0xa8] ss:$12 sps:$4 sm:$0xff]   ;;  %v10552_v6 = vld [vmem:[%s15886_s1 + $0x90] ss:$12 sps:$4 sm:$0xff]  }
  0x2a   : > { %v10544_v1 = vld [vmem:[%s15886_s1 + $0x22c] ss:$12 sps:$4 sm:$0xff]   ;;  %2057 = vmatprep.subr.bf16.mxu0 %v10542_v0  ;;  %v10547_v3 = vld [vmem:[%s15886_s1 + $0x228] ss:$12 sps:$4 sm:$0xff]   ;;  %v10553_v7 = vld [vmem:[%s15886_s1 + $0x210] ss:$12 sps:$4 sm:$0xff]   ;;  %s12235_s7 = scalar_lea.vmem %s15887_s4, %s15857_s2 }
  0x2b   : > { %2110 = vmatprep.subr.bf16.mxu1 %v10544_v1  ;;  %v10548_v4 = vld [vmem:[%s15886_s1 + $0x94] ss:$12 sps:$4 sm:$0xff]   ;;  %2058 = vmatpush1.bf16.msra.mxu0 %v10546_v2  ;;  %v10554_v8 = vld [vmem:[%s15886_s1 + $0x7c] ss:$12 sps:$4 sm:$0xff]   ;;  %v10558_v10 = vld [vmem:[%s15886_s1 + $0x78] ss:$12 sps:$4 sm:$0xff]  }
  0x2c   : > { %2111 = vmatpush1.bf16.msra.mxu1 %v10547_v3  ;;  %v10550_v5 = vld [vmem:[%s15886_s1 + $0x214] ss:$12 sps:$4 sm:$0xff]   ;;  %2059 = vmatprep.subr.bf16.mxu0 %v10548_v4  ;;  %v10556_v9 = vld [vmem:[%s15886_s1 + $0x1fc] ss:$12 sps:$4 sm:$0xff]   ;;  %v10559_v11 = vld [vmem:[%s15886_s1 + $0x1f8] ss:$12 sps:$4 sm:$0xff]  }
  0x2d   : > { %2112 = vmatprep.subr.bf16.mxu1 %v10550_v5  ;;  %v10560_v12 = vld [vmem:[%s15886_s1 + $0x64] ss:$12 sps:$4 sm:$0xff]   ;;  %v10564_v14 = vld [vmem:[%s15886_s1 + $0x60] ss:$12 sps:$4 sm:$0xff]   ;;  %v10570_v18 = vld [vmem:[%s15886_s1 + $0x48] ss:$12 sps:$4 sm:$0xff]  }
  0x2e   : > { %v10562_v13 = vld [vmem:[%s15886_s1 + $0x1e4] ss:$12 sps:$4 sm:$0xff]   ;;  %v10565_v15 = vld [vmem:[%s15886_s1 + $0x1e0] ss:$12 sps:$4 sm:$0xff]   ;;  %v10571_v19 = vld [vmem:[%s15886_s1 + $0x1c8] ss:$12 sps:$4 sm:$0xff]  }
  0x2f   : > { %2060 = vmatpush1.bf16.msra.mxu0 %v10552_v6  ;;  %v10566_v16 = vld [vmem:[%s15886_s1 + $0x4c] ss:$12 sps:$4 sm:$0xff]   ;;  %v10572_v20 = vld [vmem:[%s15886_s1 + $0x34] ss:$12 sps:$4 sm:$0xff]   ;;  %v10576_v22 = vld [vmem:[%s15886_s1 + $0x30] ss:$12 sps:$4 sm:$0xff]  }
  0x30   : > { %2113 = vmatpush1.bf16.msra.mxu1 %v10553_v7  ;;  %2061 = vmatprep.subr.bf16.mxu0 %v10554_v8  ;;  %v10568_v17 = vld [vmem:[%s15886_s1 + $0x1cc] ss:$12 sps:$4 sm:$0xff]   ;;  %v10574_v21 = vld [vmem:[%s15886_s1 + $0x1b4] ss:$12 sps:$4 sm:$0xff]   ;;  %v10577_v23 = vld [vmem:[%s15886_s1 + $0x1b0] ss:$12 sps:$4 sm:$0xff]  }
  0x31   : > { %2114 = vmatprep.subr.bf16.mxu1 %v10556_v9  ;;  %v10578_v24 = vld [vmem:[%s15886_s1 + $0x1c] ss:$12 sps:$4 sm:$0xff]   ;;  %v10582_v26 = vld [vmem:[%s15886_s1 + $0x18] ss:$12 sps:$4 sm:$0xff]   ;;  %v10588_v30 = vld [vmem:[%s15886_s1] ss:$12 sps:$4 sm:$0xff]  }
  0x32   : > { %v10580_v25 = vld [vmem:[%s15886_s1 + $0x19c] ss:$12 sps:$4 sm:$0xff]   ;;  %v10583_v27 = vld [vmem:[%s15886_s1 + $0x198] ss:$12 sps:$4 sm:$0xff]   ;;  %v10589_v31 = vld [vmem:[%s15886_s1 + $0x180] ss:$12 sps:$4 sm:$0xff]  }
  0x33   : > { %2062 = vmatpush1.bf16.msra.mxu0 %v10558_v10  ;;  %v10584_v28 = vld [vmem:[%s15886_s1 + $0x4] ss:$12 sps:$4 sm:$0xff]   ;;  %v10590_v32 = vld [vmem:[%s15886_s1 + $0x16c] ss:$12 sps:$4 sm:$0xff]   ;;  %v10594_v34 = vld [vmem:[%s15886_s1 + $0x168] ss:$12 sps:$4 sm:$0xff]  }
  0x34   : > { %2115 = vmatpush1.bf16.msra.mxu1 %v10559_v11  ;;  %2063 = vmatprep.subr.bf16.mxu0 %v10560_v12  ;;  %v10586_v29 = vld [vmem:[%s15886_s1 + $0x184] ss:$12 sps:$4 sm:$0xff]   ;;  %v10592_v33 = vld [vmem:[%s15886_s1 + $0x2ec] ss:$12 sps:$4 sm:$0xff]   ;;  %v10595_v35 = vld [vmem:[%s15886_s1 + $0x2e8] ss:$12 sps:$4 sm:$0xff]  }
  0x35   : > { %2116 = vmatprep.subr.bf16.mxu1 %v10562_v13  ;;  %v10596_v36 = vld [vmem:[%s15886_s1 + $0x154] ss:$12 sps:$4 sm:$0xff]   ;;  %v10600_v38 = vld [vmem:[%s15886_s1 + $0x150] ss:$12 sps:$4 sm:$0xff]   ;;  %v10606_v42 = vld [vmem:[%s15886_s1 + $0x138] ss:$12 sps:$4 sm:$0xff]  }
  0x36   : > { %v10598_v37 = vld [vmem:[%s15886_s1 + $0x2d4] ss:$12 sps:$4 sm:$0xff]   ;;  %v10601_v39 = vld [vmem:[%s15886_s1 + $0x2d0] ss:$12 sps:$4 sm:$0xff]   ;;  %v10607_v43 = vld [vmem:[%s15886_s1 + $0x2b8] ss:$12 sps:$4 sm:$0xff]  }
  0x37   : > { %2064 = vmatpush1.bf16.msra.mxu0 %v10564_v14  ;;  %v10602_v40 = vld [vmem:[%s15886_s1 + $0x13c] ss:$12 sps:$4 sm:$0xff]   ;;  %v10608_v44 = vld [vmem:[%s15886_s1 + $0x124] ss:$12 sps:$4 sm:$0xff]   ;;  %v10612_v46 = vld [vmem:[%s15886_s1 + $0x120] ss:$12 sps:$4 sm:$0xff]  }
  0x38   : > { %2117 = vmatpush1.bf16.msra.mxu1 %v10565_v15  ;;  %2065 = vmatprep.subr.bf16.mxu0 %v10566_v16  ;;  %v10604_v41 = vld [vmem:[%s15886_s1 + $0x2bc] ss:$12 sps:$4 sm:$0xff]   ;;  %v10610_v45 = vld [vmem:[%s15886_s1 + $0x2a4] ss:$12 sps:$4 sm:$0xff]   ;;  %v10613_v47 = vld [vmem:[%s15886_s1 + $0x2a0] ss:$12 sps:$4 sm:$0xff]  }
  0x39   : > { %2118 = vmatprep.subr.bf16.mxu1 %v10568_v17  ;;  %v756_v48 = vld [vmem:[%s12235_s7] sm:$0xff]  ;;  %v757_v50 = vld [vmem:[%s12235_s7 + $0x8] sm:$0xff]  ;;  %v10624_v60 = vld [vmem:[%s15886_s1 + $0xf0] ss:$12 sps:$4 sm:$0xff]   ;;  %s15888_s2 = sshll.u32 %s12206_s30, 7  ;;  %s15889_s4 = sld [smem:[#allocation27_spill]] }
  0x3a   : > { %v760_v49 = vld [vmem:[%s12235_s7 + $0x20] sm:$0xff]  ;;  %v761_v51 = vld [vmem:[%s12235_s7 + $0x28] sm:$0xff]  ;;  %v10625_v61 = vld [vmem:[%s15886_s1 + $0x270] ss:$12 sps:$4 sm:$0xff]   ;;  %s15898_s9 = sld [smem:[#allocation35_spill]] }
  0x3b   : > { %2066 = vmatpush1.bf16.msra.mxu0 %v10570_v18  ;;  %v10614_v52 = vld [vmem:[%s15886_s1 + $0x10c] ss:$12 sps:$4 sm:$0xff]   ;;  %v12256_v53 = vcombine.high %v756_v48, %v760_v49  ;;  %v12261_v55 = vcombine.high %v757_v50, %v761_v51  ;;  %v10618_v56 = vld [vmem:[%s15886_s1 + $0x108] ss:$12 sps:$4 sm:$0xff]   ;;  %v10632_v2 = vld [vmem:[%s15886_s1 + $0xc4] ss:$12 sps:$4 sm:$0xff]   ;;  %v12313_v8 = vcombine.low %v756_v48, %v760_v49  ;;  %v12315_v9 = vcombine.low %v757_v50, %v761_v51 }
  0x3c   : > { %2119 = vmatpush1.bf16.msra.mxu1 %v10571_v19  ;;  %2067 = vmatprep.subr.bf16.mxu0 %v10572_v20  ;;  %v10616_v54 = vld [vmem:[%s15886_s1 + $0x28c] ss:$12 sps:$4 sm:$0xff]   ;;  %v10619_v57 = vld [vmem:[%s15886_s1 + $0x288] ss:$12 sps:$4 sm:$0xff]   ;;  %v10634_v3 = vld [vmem:[%s15886_s1 + $0x244] ss:$12 sps:$4 sm:$0xff]  }
  0x3d   : > { %2120 = vmatprep.subr.bf16.mxu1 %v10574_v21  ;;  %2089 = vmatprep.mubr.bf16.mxu0 %v12256_v53  ;;  %v10620_v58 = vld [vmem:[%s15886_s1 + $0xf4] ss:$12 sps:$4 sm:$0xff]   ;;  %v10626_v62 = vld [vmem:[%s15886_s1 + $0xdc] ss:$12 sps:$4 sm:$0xff]   ;;  %v10630_v0 = vld [vmem:[%s15886_s1 + $0xd8] ss:$12 sps:$4 sm:$0xff]  }
  0x3e   : > { %2142 = vmatprep.mubr.bf16.mxu1 %v12261_v55  ;;  %v10622_v59 = vld [vmem:[%s15886_s1 + $0x274] ss:$12 sps:$4 sm:$0xff]   ;;  %v10628_v63 = vld [vmem:[%s15886_s1 + $0x25c] ss:$12 sps:$4 sm:$0xff]   ;;  %v10631_v1 = vld [vmem:[%s15886_s1 + $0x258] ss:$12 sps:$4 sm:$0xff]  }
  0x3f   : > { %2068 = vmatpush1.bf16.msra.mxu0 %v10576_v22  ;;  %v10636_v4 = vld [vmem:[%s15886_s1 + $0xc0] ss:$12 sps:$4 sm:$0xff]   ;;  %v10638_v10 = vld [vmem:[%s15886_s1 + $0x3a8] ss:$12 sps:$4 sm:$0xff]   ;;  %v10644_v14 = vld [vmem:[%s15886_s1 + $0x390] ss:$12 sps:$4 sm:$0xff]   ;;  %s12734_s28 = scalar_lea.vmem %s15889_s4, %s15888_s2 }
  0x40   : > { %2121 = vmatpush1.bf16.msra.mxu1 %v10577_v23  ;;  %2069 = vmatprep.subr.bf16.mxu0 %v10578_v24  ;;  %v10637_v5 = vld [vmem:[%s15886_s1 + $0x240] ss:$12 sps:$4 sm:$0xff]   ;;  %v10641_v11 = vld [vmem:[%s15886_s1 + $0x528] ss:$12 sps:$4 sm:$0xff]   ;;  %v10647_v15 = vld [vmem:[%s15886_s1 + $0x510] ss:$12 sps:$4 sm:$0xff]  }
  0x41   : > { %2122 = vmatprep.subr.bf16.mxu1 %v10580_v25  ;;  %v10640_v6 = vld [vmem:[%s15886_s1 + $0x3ac] ss:$12 sps:$4 sm:$0xff]   ;;  %v10646_v12 = vld [vmem:[%s15886_s1 + $0x394] ss:$12 sps:$4 sm:$0xff]   ;;  %v10652_v16 = vld [vmem:[%s15886_s1 + $0x37c] ss:$12 sps:$4 sm:$0xff]  }
  0x42   : > { %v10643_v7 = vld [vmem:[%s15886_s1 + $0x52c] ss:$12 sps:$4 sm:$0xff]   ;;  %v10649_v13 = vld [vmem:[%s15886_s1 + $0x514] ss:$12 sps:$4 sm:$0xff]   ;;  %v10655_v17 = vld [vmem:[%s15886_s1 + $0x4fc] ss:$12 sps:$4 sm:$0xff]  }
  0x43   : > { %2070 = vmatpush1.bf16.msra.mxu0 %v10582_v26  ;;  %v765_v18 = vld [vmem:[%s12235_s7 + $0x48] sm:$0xff]  ;;  %v10650_v20 = vld [vmem:[%s15886_s1 + $0x378] ss:$12 sps:$4 sm:$0xff]   ;;  %v12438_v51 = vld [vmem:[%s12235_s7 + $0x10] sm:$0xff]  ;;  %s15927_s4 = sld [smem:[#allocation34_spill]]  ;;  %s11919_s2 = smov [#allocation2]  }
  0x44   : > { %2123 = vmatpush1.bf16.msra.mxu1 %v10583_v27  ;;  %2071 = vmatprep.subr.bf16.mxu0 %v10584_v28  ;;  %v769_v19 = vld [vmem:[%s12235_s7 + $0x68] sm:$0x77]  ;;  %v10653_v21 = vld [vmem:[%s15886_s1 + $0x4f8] ss:$12 sps:$4 sm:$0xff]  }
  0x45   : > { %2124 = vmatprep.subr.bf16.mxu1 %v10586_v29  ;;  %v12351_v22 = vcombine.high %v765_v18, %v769_v19  ;;  %v12353_v23 = vcombine.low %v765_v18, %v769_v19  ;;  %v10658_v24 = vld [vmem:[%s15886_s1 + $0x364] ss:$12 sps:$4 sm:$0xff]   ;;  %v10656_v26 = vld [vmem:[%s15886_s1 + $0x360] ss:$12 sps:$4 sm:$0xff]  }
  0x46   : > { %v10661_v25 = vld [vmem:[%s15886_s1 + $0x4e4] ss:$12 sps:$4 sm:$0xff]   ;;  %v10659_v27 = vld [vmem:[%s15886_s1 + $0x4e0] ss:$12 sps:$4 sm:$0xff]  }
  0x47   : > { %2072 = vmatpush1.bf16.msra.mxu0 %v10588_v30  ;;  %v10664_v28 = vld [vmem:[%s15886_s1 + $0x34c] ss:$12 sps:$4 sm:$0xff]   ;;  %v10662_v30 = vld [vmem:[%s15886_s1 + $0x348] ss:$12 sps:$4 sm:$0xff]   ;;  %v10685_v48 = vld [vmem:[%s15886_s1 + $0x484] ss:$12 sps:$4 sm:$0xff]  }
  0x48   : > { %2125 = vmatpush1.bf16.msra.mxu1 %v10589_v31  ;;  %2073 = vmatprep.subr.bf16.mxu0 %v10590_v32  ;;  %v10667_v29 = vld [vmem:[%s15886_s1 + $0x4cc] ss:$12 sps:$4 sm:$0xff]   ;;  %v10665_v31 = vld [vmem:[%s15886_s1 + $0x4c8] ss:$12 sps:$4 sm:$0xff]   ;;  %v10715_v19 = vld [vmem:[%s15886_s1 + $0x3f0] ss:$12 sps:$4 sm:$0xff]  }
  0x49   : > { %2126 = vmatprep.subr.bf16.mxu1 %v10592_v33  ;;  %v12382_v32 = vld [vmem:[%s12235_s7 + $0x18] sm:$0xff]  ;;  %v10680_v49 = vld [vmem:[%s15886_s1 + $0x300] ss:$12 sps:$4 sm:$0xff]  }
  0x4a   : > { %v12385_v33 = vld [vmem:[%s12235_s7 + $0x38] sm:$0xff]  ;;  %v10683_v50 = vld [vmem:[%s15886_s1 + $0x480] ss:$12 sps:$4 sm:$0xff]  }
  0x4b   : > { %2074 = vmatpush2.bf16.msra.mxu0 %v10594_v34  ;;  %v10670_v34 = vld [vmem:[%s15886_s1 + $0x334] ss:$12 sps:$4 sm:$0xff]   ;;  %v10718_v18 = vld [vmem:[%s15886_s1 + $0x158] ss:$12 sps:$4 sm:$0xff]  }
  0x4c   : > { %2127 = vmatpush2.bf16.msra.mxu1 %v10595_v35  ;;  %2075 = vmatprep.subr.bf16.mxu0 %v10596_v36  ;;  %v12392_v35 = vcombine.high %v12382_v32, %v12385_v33  ;;  %v10673_v36 = vld [vmem:[%s15886_s1 + $0x4b4] ss:$12 sps:$4 sm:$0xff]  }
  0x4d   : > { %2128 = vmatprep.subr.bf16.mxu1 %v10598_v37  ;;  %v764_v37 = vld [vmem:[%s12235_s7 + $0x40] sm:$0xff] }
  0x4f   : > { %2076 = vmatpush2.bf16.msra.mxu0 %v10600_v38  ;;  %v768_v38 = vld [vmem:[%s12235_s7 + $0x60] sm:$0x77] }
  0x50   : > { %2129 = vmatpush2.bf16.msra.mxu1 %v10601_v39  ;;  %2077 = vmatprep.subr.bf16.mxu0 %v10602_v40  ;;  %v12401_v39 = vcombine.high %v764_v37, %v768_v38  ;;  %v10668_v40 = vld [vmem:[%s15886_s1 + $0x330] ss:$12 sps:$4 sm:$0xff]  }
  0x51   : > { %2130 = vmatprep.subr.bf16.mxu1 %v10604_v41  ;;  %v12406_v41 = vcombine.low %v764_v37, %v768_v38  ;;  %v10733_v37 = vld [vmem:[%s15886_s1 + $0x230] ss:$12 sps:$4 sm:$0xff]  }
  0x52   : > { %v766_v38 = vld [vmem:[%s12235_s7 + $0x50] sm:$0xff] }
  0x53   : > { %2078 = vmatpush2.bf16.msra.mxu0 %v10606_v42  ;;  %v10671_v42 = vld [vmem:[%s15886_s1 + $0x4b0] ss:$12 sps:$4 sm:$0xff]  }
  0x54   : > { %2131 = vmatpush2.bf16.msra.mxu1 %v10607_v43  ;;  %2079 = vmatprep.subr.bf16.mxu0 %v10608_v44  ;;  %v10676_v43 = vld [vmem:[%s15886_s1 + $0x31c] ss:$12 sps:$4 sm:$0xff]  }
  0x55   : > { %2132 = vmatprep.subr.bf16.mxu1 %v10610_v45  ;;  %v10679_v44 = vld [vmem:[%s15886_s1 + $0x49c] ss:$12 sps:$4 sm:$0xff]   ;;  %v10674_v45 = vld [vmem:[%s15886_s1 + $0x318] ss:$12 sps:$4 sm:$0xff]  }
  0x57   : > { %2080 = vmatpush2.bf16.msra.mxu0 %v10612_v46  ;;  %v10677_v46 = vld [vmem:[%s15886_s1 + $0x498] ss:$12 sps:$4 sm:$0xff]  }
  0x58   : > { %2133 = vmatpush2.bf16.msra.mxu1 %v10613_v47  ;;  %2081 = vmatprep.subr.bf16.mxu0 %v10614_v52  ;;  %v10682_v47 = vld [vmem:[%s15886_s1 + $0x304] ss:$12 sps:$4 sm:$0xff]  }
  0x59   : > { %2134 = vmatprep.subr.bf16.mxu1 %v10616_v54  ;;  %v12441_v52 = vld [vmem:[%s12235_s7 + $0x30] sm:$0xff]  ;;  %v10688_v54 = vld [vmem:[%s15886_s1 + $0x46c] ss:$12 sps:$4 sm:$0xff]  }
  0x5b   : > { %2082 = vmatpush2.bf16.msra.mxu0 %v10618_v56  ;;  %v12448_v56 = vcombine.high %v12438_v51, %v12441_v52 }
  0x5c   : > { %2135 = vmatpush2.bf16.msra.mxu1 %v10619_v57  ;;  %2083 = vmatprep.subr.bf16.mxu0 %v10620_v58  ;;  %v10691_v57 = vld [vmem:[%s15886_s1 + $0x58c] ss:$12 sps:$4 sm:$0xff]   ;;  %v10686_v58 = vld [vmem:[%s15886_s1 + $0x468] ss:$12 sps:$4 sm:$0xff]  }
  0x5d   : > { %2136 = vmatprep.subr.bf16.mxu1 %v10622_v59  ;;  %v10689_v59 = vld [vmem:[%s15886_s1 + $0x588] ss:$12 sps:$4 sm:$0xff]  }
  0x5f   : > { %2084 = vmatpush2.bf16.msra.mxu0 %v10624_v60  ;;  %v10694_v60 = vld [vmem:[%s15886_s1 + $0x454] ss:$12 sps:$4 sm:$0xff]  }
  0x60   : > { %2137 = vmatpush2.bf16.msra.mxu1 %v10625_v61  ;;  %2085 = vmatprep.subr.bf16.mxu0 %v10626_v62  ;;  %v10697_v61 = vld [vmem:[%s15886_s1 + $0x574] ss:$12 sps:$4 sm:$0xff]   ;;  %v10692_v62 = vld [vmem:[%s15886_s1 + $0x450] ss:$12 sps:$4 sm:$0xff]  }
  0x61   : > { %2138 = vmatprep.subr.bf16.mxu1 %v10628_v63  ;;  %v10695_v63 = vld [vmem:[%s15886_s1 + $0x570] ss:$12 sps:$4 sm:$0xff]  }
  0x63   : > { %2086 = vmatpush2.bf16.msra.mxu0 %v10630_v0  ;;  %v10700_v0 = vld [vmem:[%s15886_s1 + $0x43c] ss:$12 sps:$4 sm:$0xff]  }
  0x64   : > { %2139 = vmatpush2.bf16.msra.mxu1 %v10631_v1  ;;  %2087 = vmatprep.subr.bf16.mxu0 %v10632_v2  ;;  %v10703_v1 = vld [vmem:[%s15886_s1 + $0x55c] ss:$12 sps:$4 sm:$0xff]   ;;  %v10698_v2 = vld [vmem:[%s15886_s1 + $0x438] ss:$12 sps:$4 sm:$0xff]  }
  0x65   : > { %2140 = vmatprep.subr.bf16.mxu1 %v10634_v3  ;;  %v10701_v3 = vld [vmem:[%s15886_s1 + $0x558] ss:$12 sps:$4 sm:$0xff]  }
  0x67   : > { %2088 = vmatpush2.bf16.msra.mxu0 %v10636_v4  ;;  %v10706_v4 = vld [vmem:[%s15886_s1 + $0x424] ss:$12 sps:$4 sm:$0xff]  }
  0x68   : > { %2141 = vmatpush2.bf16.msra.mxu1 %v10637_v5  ;;  %2163 = vmatprep.subr.bf16.mxu0 %v10640_v6  ;;  %v10709_v5 = vld [vmem:[%s15886_s1 + $0x544] ss:$12 sps:$4 sm:$0xff]   ;;  %v10704_v6 = vld [vmem:[%s15886_s1 + $0x420] ss:$12 sps:$4 sm:$0xff]  }
  0x69   : > { %2216 = vmatprep.subr.bf16.mxu1 %v10643_v7  ;;  %v10707_v7 = vld [vmem:[%s15886_s1 + $0x540] ss:$12 sps:$4 sm:$0xff]  }
  0x6a   : > { %2090 = vmatmul.mubr.bf16.vlgmr.msra.gmra.mxu0 %v12313_v8 }
  0x6b   : > { %2143 = vmatmul.mubr.bf16.vlgmr.msra.gmra.mxu1 %v12315_v9  ;;  %2164 = vmatpush1.bf16.msra.mxu0 %v10638_v10  ;;  %v10712_v10 = vld [vmem:[%s15886_s1 + $0x40c] ss:$12 sps:$4 sm:$0xff]  }
  0x6c   : > { %2217 = vmatpush1.bf16.msra.mxu1 %v10641_v11  ;;  %2165 = vmatprep.subr.bf16.mxu0 %v10646_v12  ;;  %v10713_v11 = vld [vmem:[%s15886_s1 + $0x170] ss:$12 sps:$4 sm:$0xff]   ;;  %v10710_v12 = vld [vmem:[%s15886_s1 + $0x408] ss:$12 sps:$4 sm:$0xff]  }
  0x6d   : > { %2218 = vmatprep.subr.bf16.mxu1 %v10649_v13  ;;  %2152 = vmatprep.mubr.bf16.mxu1 %v12351_v22  ;;  %v10714_v13 = vld [vmem:[%s15886_s1 + $0xb0] ss:$12 sps:$4 sm:$0xff]  }
  0x6e   : > { %2099 = vmatprep.mubr.bf16.mxu0 %v12401_v39 }
  0x6f   : > { %2166 = vmatpush1.bf16.msra.mxu0 %v10644_v14  ;;  %v767_v14 = vld [vmem:[%s12235_s7 + $0x58] sm:$0xff] }
  0x70   : > { %2219 = vmatpush1.bf16.msra.mxu1 %v10647_v15  ;;  %2167 = vmatprep.subr.bf16.mxu0 %v10652_v16  ;;  %v12511_v15 = vcombine.low %v12382_v32, %v12385_v33  ;;  %v771_v16 = vld [vmem:[%s12235_s7 + $0x78] sm:$0x77]  ;;  %v10729_v32 = vld [vmem:[%s15886_s1 + $0x68] ss:$12 sps:$4 sm:$0xff]  }
  0x71   : > { %2220 = vmatprep.subr.bf16.mxu1 %v10655_v17  ;;  %v10717_v17 = vld [vmem:[%s15886_s1 + $0x3f4] ss:$12 sps:$4 sm:$0xff]   ;;  %v10730_v33 = vld [vmem:[%s15886_s1 + $0x110] ss:$12 sps:$4 sm:$0xff]  }
  0x72   : > { %2100 = vmatmul.mubr.bf16.gmra.mxu0 %v12406_v41 }
  0x73   : > { %2153 = vmatmul.mubr.bf16.gmra.mxu1 %v12353_v23  ;;  %2168 = vmatpush1.bf16.msra.mxu0 %v10650_v20  ;;  %v12523_v20 = vcombine.high %v767_v14, %v771_v16 }
  0x74   : > { %2221 = vmatpush1.bf16.msra.mxu1 %v10653_v21  ;;  %2169 = vmatprep.subr.bf16.mxu0 %v10658_v24  ;;  %v10719_v21 = vld [vmem:[%s15886_s1 + $0x98] ss:$12 sps:$4 sm:$0xff]   ;;  %v10722_v24 = vld [vmem:[%s15886_s1 + $0x3dc] ss:$12 sps:$4 sm:$0xff]  }
  0x75   : > { %2222 = vmatprep.subr.bf16.mxu1 %v10661_v25  ;;  %9192 = vmatprep.mubr.msk.bf16.mxu1 %vm2050_vm0, %v12392_v35  ;;  %v10723_v25 = vld [vmem:[%s15886_s1 + $0x140] ss:$12 sps:$4 sm:$0xff]  }
  0x76   : > { %2195 = vmatprep.mubr.bf16.mxu0 %v12448_v56 }
  0x77   : > { %2170 = vmatpush1.bf16.msra.mxu0 %v10656_v26  ;;  %v10720_v26 = vld [vmem:[%s15886_s1 + $0x3d8] ss:$12 sps:$4 sm:$0xff]  }
  0x78   : > { %2223 = vmatpush1.bf16.msra.mxu1 %v10659_v27  ;;  %2171 = vmatprep.subr.bf16.mxu0 %v10664_v28  ;;  %v10724_v27 = vld [vmem:[%s15886_s1 + $0x80] ss:$12 sps:$4 sm:$0xff]   ;;  %v12543_v28 = vcombine.low %v767_v14, %v771_v16  ;;  %v10766_v14 = vld [vmem:[%s15886_s1 + $0x338] ss:$12 sps:$4 sm:$0xff]  }
  0x79   : > { %2224 = vmatprep.subr.bf16.mxu1 %v10667_v29  ;;  %v10727_v29 = vld [vmem:[%s15886_s1 + $0x3c4] ss:$12 sps:$4 sm:$0xff]  }
  0x7a   : > { %v10767_v16 = vld [vmem:[%s15886_s1 + $0x518] ss:$12 sps:$4 sm:$0xff]  }
  0x7b   : > { %2172 = vmatpush1.bf16.msra.mxu0 %v10662_v30  ;;  %v10728_v30 = vld [vmem:[%s15886_s1 + $0x128] ss:$12 sps:$4 sm:$0xff]  }
  0x7c   : > { %2225 = vmatpush1.bf16.msra.mxu1 %v10665_v31  ;;  %2173 = vmatprep.subr.bf16.mxu0 %v10670_v34  ;;  %v10725_v31 = vld [vmem:[%s15886_s1 + $0x3c0] ss:$12 sps:$4 sm:$0xff]   ;;  %v10731_v34 = vld [vmem:[%s15886_s1 + $0x2f0] ss:$12 sps:$4 sm:$0xff]  }
  0x7d   : > { %2226 = vmatprep.subr.bf16.mxu1 %v10673_v36  ;;  %v10732_v36 = vld [vmem:[%s15886_s1 + $0x50] ss:$12 sps:$4 sm:$0xff]  }
  0x7f   : > { %2174 = vmatpush1.bf16.msra.mxu0 %v10668_v40  ;;  %v12574_v40 = vcombine.low %v12438_v51, %v12441_v52  ;;  %v10741_v51 = vld [vmem:[%s15886_s1 + $0x200] ss:$12 sps:$4 sm:$0xff]   ;;  %v10742_v52 = vld [vmem:[%s15886_s1 + $0xc8] ss:$12 sps:$4 sm:$0xff]  }
  0x80   : > { %2227 = vmatpush1.bf16.msra.mxu1 %v10671_v42  ;;  %2175 = vmatprep.subr.bf16.mxu0 %v10676_v43  ;;  %v770_v42 = vld [vmem:[%s12235_s7 + $0x70] sm:$0x77]  ;;  %v10734_v43 = vld [vmem:[%s15886_s1 + $0xf8] ss:$12 sps:$4 sm:$0xff]  }
  0x81   : > { %2228 = vmatprep.subr.bf16.mxu1 %v10679_v44  ;;  %v10735_v44 = vld [vmem:[%s15886_s1 + $0x2d8] ss:$12 sps:$4 sm:$0xff]  }
  0x83   : > { %2176 = vmatpush1.bf16.msra.mxu0 %v10674_v45  ;;  %v12586_v45 = vcombine.high %v766_v38, %v770_v42 }
  0x84   : > { %2229 = vmatpush1.bf16.msra.mxu1 %v10677_v46  ;;  %2177 = vmatprep.subr.bf16.mxu0 %v10682_v47  ;;  %v10737_v46 = vld [vmem:[%s15886_s1 + $0x218] ss:$12 sps:$4 sm:$0xff]   ;;  %v10738_v47 = vld [vmem:[%s15886_s1 + $0xe0] ss:$12 sps:$4 sm:$0xff]  }
  0x85   : > { %2230 = vmatprep.subr.bf16.mxu1 %v10685_v48  ;;  %v10739_v48 = vld [vmem:[%s15886_s1 + $0x2c0] ss:$12 sps:$4 sm:$0xff]  }
  0x87   : > { %2178 = vmatpush1.bf16.msra.mxu0 %v10680_v49  ;;  %v10740_v49 = vld [vmem:[%s15886_s1 + $0x20] ss:$12 sps:$4 sm:$0xff]  }
  0x88   : > { %2231 = vmatpush1.bf16.msra.mxu1 %v10683_v50  ;;  %2179 = vmatprep.subr.bf16.mxu0 %v10688_v54  ;;  %v12602_v50 = vcombine.low %v766_v38, %v770_v42  ;;  %v10743_v54 = vld [vmem:[%s15886_s1 + $0x2a8] ss:$12 sps:$4 sm:$0xff]   ;;  %v11680_v38 = vld [vmem:[%s15886_s1 + $0x60] ss:$12 sps:$4 sm:$0xff]   ;;  %v10779_v42 = vld [vmem:[%s15886_s1 + $0x578] ss:$12 sps:$4 sm:$0xff]  }
  0x89   : > { %2240 = vmatprep.subr.bf16.mxu1 %v10691_v57  ;;  %v10744_v57 = vld [vmem:[%s15886_s1 + $0x8] ss:$12 sps:$4 sm:$0xff]  }
  0x8b   : > { %2180 = vmatpush2.bf16.msra.mxu0 %v10686_v58  ;;  %v10745_v58 = vld [vmem:[%s15886_s1 + $0x1e8] ss:$12 sps:$4 sm:$0xff]  }
  0x8c   : > { %2241 = vmatpush2.bf16.msra.mxu1 %v10689_v59  ;;  %2181 = vmatprep.subr.bf16.mxu0 %v10694_v60  ;;  %v10746_v59 = vld [vmem:[%s15886_s1 + $0x290] ss:$12 sps:$4 sm:$0xff]  }
  0x8d   : > { %2242 = vmatprep.subr.bf16.mxu1 %v10697_v61  ;;  %v10747_v60 = vld [vmem:[%s15886_s1 + $0x470] ss:$12 sps:$4 sm:$0xff]  }
  0x8e   : > { %v10748_v61 = vld [vmem:[%s15886_s1 + $0x1d0] ss:$12 sps:$4 sm:$0xff]  }
  0x8f   : > { %2182 = vmatpush2.bf16.msra.mxu0 %v10692_v62  ;;  %v10749_v62 = vld [vmem:[%s15886_s1 + $0x3b0] ss:$12 sps:$4 sm:$0xff]  }
  0x90   : > { %2243 = vmatpush2.bf16.msra.mxu1 %v10695_v63  ;;  %2183 = vmatprep.subr.bf16.mxu0 %v10700_v0  ;;  %v10750_v63 = vld [vmem:[%s15886_s1 + $0x278] ss:$12 sps:$4 sm:$0xff]  }
  0x91   : > { %2244 = vmatprep.subr.bf16.mxu1 %v10703_v1  ;;  %v10752_v0 = vld [vmem:[%s15886_s1 + $0x1b8] ss:$12 sps:$4 sm:$0xff]  }
  0x92   : > { %v10753_v1 = vld [vmem:[%s15886_s1 + $0x398] ss:$12 sps:$4 sm:$0xff]  }
  0x93   : > { %2184 = vmatpush2.bf16.msra.mxu0 %v10698_v2  ;;  %v10754_v2 = vld [vmem:[%s15886_s1 + $0x260] ss:$12 sps:$4 sm:$0xff]  }
  0x94   : > { %2245 = vmatpush2.bf16.msra.mxu1 %v10701_v3  ;;  %2185 = vmatprep.subr.bf16.mxu0 %v10706_v4  ;;  %v10755_v3 = vld [vmem:[%s15886_s1 + $0x440] ss:$12 sps:$4 sm:$0xff]  }
  0x95   : > { %2246 = vmatprep.subr.bf16.mxu1 %v10709_v5  ;;  %v10756_v4 = vld [vmem:[%s15886_s1 + $0x1a0] ss:$12 sps:$4 sm:$0xff]   ;;  %v10758_v5 = vld [vmem:[%s15886_s1 + $0x248] ss:$12 sps:$4 sm:$0xff]  }
  0x97   : > { %2186 = vmatpush2.bf16.msra.mxu0 %v10704_v6  ;;  %v10759_v6 = vld [vmem:[%s15886_s1 + $0x428] ss:$12 sps:$4 sm:$0xff]  }
  0x98   : > { %2247 = vmatpush2.bf16.msra.mxu1 %v10707_v7  ;;  %2187 = vmatprep.subr.bf16.mxu0 %v10712_v10  ;;  %v10760_v7 = vld [vmem:[%s15886_s1 + $0x188] ss:$12 sps:$4 sm:$0xff]   ;;  %v10762_v10 = vld [vmem:[%s15886_s1 + $0x410] ss:$12 sps:$4 sm:$0xff]  }
  0x99   : > { %10211 = vmatprep.subr.bf16.mxu1 %v10713_v11  ;;  %v10763_v11 = vld [vmem:[%s15886_s1 + $0x350] ss:$12 sps:$4 sm:$0xff]  }
  0x9b   : > { %2249 = vmatmul.mubr.bf16.vlgmr.msra.gmra.mxu1 %v12511_v15  ;;  %2188 = vmatpush2.bf16.msra.mxu0 %v10710_v12  ;;  %v10764_v12 = vld [vmem:[%s15886_s1 + $0x530] ss:$12 sps:$4 sm:$0xff]  }
  0x9c   : > { %10212 = vmatpush3.bf16.msra.mxu1 %v10714_v13  ;;  %2189 = vmatprep.subr.bf16.mxu0 %v10717_v17  ;;  %v10765_v13 = vld [vmem:[%s15886_s1 + $0x3f8] ss:$12 sps:$4 sm:$0xff]   ;;  %v10769_v17 = vld [vmem:[%s15886_s1 + $0x320] ss:$12 sps:$4 sm:$0xff]  }
  0x9d   : > { %10213 = vmatprep.subr.bf16.mxu1 %v10718_v18  ;;  %9193 = vmatprep.mubr.msk.bf16.mxu1 %vm2050_vm0, %v12523_v20  ;;  %v10770_v18 = vld [vmem:[%s15886_s1 + $0x500] ss:$12 sps:$4 sm:$0xff]  }
  0x9f   : > { %2190 = vmatpush2.bf16.msra.mxu0 %v10715_v19  ;;  %v10772_v19 = vld [vmem:[%s15886_s1 + $0x308] ss:$12 sps:$4 sm:$0xff]  }
  0xa0   : > { %10214 = vmatpush3.bf16.msra.mxu1 %v10719_v21  ;;  %2191 = vmatprep.subr.bf16.mxu0 %v10722_v24  ;;  %v10774_v21 = vld [vmem:[%s15886_s1 + $0x4d0] ss:$12 sps:$4 sm:$0xff]   ;;  %v10775_v24 = vld [vmem:[%s15886_s1 + $0x4b8] ss:$12 sps:$4 sm:$0xff]  }
  0xa1   : > { %10215 = vmatprep.subr.bf16.mxu1 %v10723_v25  ;;  %v11675_v25 = vld [vmem:[%s15886_s1 + $0x94] ss:$12 sps:$4 sm:$0xff]  }
  0xa3   : > { %2259 = vmatmul.mubr.bf16.gmra.mxu1 %v12543_v28  ;;  %2192 = vmatpush2.bf16.msra.mxu0 %v10720_v26  ;;  %v10776_v26 = vld [vmem:[%s15886_s1 + $0x4a0] ss:$12 sps:$4 sm:$0xff]  }
  0xa4   : > { %10216 = vmatpush3.bf16.msra.mxu1 %v10724_v27  ;;  %2193 = vmatprep.subr.bf16.mxu0 %v10727_v29  ;;  %v12748_v27 = vld [vmem:[%s12734_s28] sm:$0xff] }
  0xa5   : > { %10217 = vmatprep.subr.bf16.mxu1 %v10728_v30  ;;  %2301 = vmatprep.mubr.bf16.mxu1 %v12256_v53  ;;  %v10736_v53 = vld [vmem:[%s15886_s1 + $0x38] ss:$12 sps:$4 sm:$0xff]   ;;  %v11676_v30 = vld [vmem:[%s15886_s1 + $0x90] ss:$12 sps:$4 sm:$0xff]  }
  0xa6   : > { %v12751_v29 = vld [vmem:[%s12734_s28 + $0x20] sm:$0xff] }
  0xa7   : > { %2194 = vmatpush2.bf16.msra.mxu0 %v10725_v31  ;;  %v11677_v31 = vld [vmem:[%s15886_s1 + $0x7c] ss:$12 sps:$4 sm:$0xff]  }
  0xa8   : > { %10218 = vmatpush3.bf16.msra.mxu1 %v10729_v32  ;;  %10239 = vmatprep.subr.bf16.mxu0 %v10731_v34  ;;  %v10777_v32 = vld [vmem:[%s15886_s1 + $0x488] ss:$12 sps:$4 sm:$0xff]   ;;  %v11678_v34 = vld [vmem:[%s15886_s1 + $0x78] ss:$12 sps:$4 sm:$0xff]  }
  0xa9   : > { %10219 = vmatprep.subr.bf16.mxu1 %v10730_v33  ;;  %v12765_v33 = vcombine.high %v12748_v27, %v12751_v29 }
  0xaa   : > { %2196 = vmatmul.mubr.bf16.vlgmr.msra.gmra.mxu0 %v12574_v40 }
  0xab   : > { %10240 = vmatpush3.bf16.msra.mxu0 %v10733_v37  ;;  %2205 = vmatprep.mubr.bf16.mxu0 %v12586_v45  ;;  %v10778_v37 = vld [vmem:[%s15886_s1 + $0x590] ss:$12 sps:$4 sm:$0xff]  }
  0xac   : > { %10220 = vmatpush3.bf16.msra.mxu1 %v10732_v36  ;;  %10241 = vmatprep.subr.bf16.mxu0 %v10735_v44  ;;  %v11679_v36 = vld [vmem:[%s15886_s1 + $0x64] ss:$12 sps:$4 sm:$0xff]   ;;  %v11683_v44 = vld [vmem:[%s15886_s1 + $0x34] ss:$12 sps:$4 sm:$0xff]  }
  0xad   : > { %10221 = vmatprep.subr.bf16.mxu1 %v10734_v43  ;;  %v11682_v43 = vld [vmem:[%s15886_s1 + $0x48] ss:$12 sps:$4 sm:$0xff]  }
  0xaf   : > { %10242 = vmatpush3.bf16.msra.mxu0 %v10737_v46  ;;  %v11685_v46 = vld [vmem:[%s15886_s1 + $0x1c] ss:$12 sps:$4 sm:$0xff]  }
  0xb0   : > { %10222 = vmatpush3.bf16.msra.mxu1 %v10736_v53  ;;  %10243 = vmatprep.subr.bf16.mxu0 %v10739_v48  ;;  %v10780_v53 = vld [vmem:[%s15886_s1 + $0x560] ss:$12 sps:$4 sm:$0xff]   ;;  %v11686_v48 = vld [vmem:[%s15886_s1 + $0x18] ss:$12 sps:$4 sm:$0xff]  }
  0xb1   : > { %10223 = vmatprep.subr.bf16.mxu1 %v10738_v47  ;;  %v10781_v47 = vld [vmem:[%s15886_s1 + $0x548] ss:$12 sps:$4 sm:$0xff]  }
  0xb2   : > { %2206 = vmatmul.mubr.bf16.gmra.mxu0 %v12602_v50 }
  0xb3   : > { %10244 = vmatpush3.bf16.msra.mxu0 %v10741_v51  ;;  %2350 = vmatprep.mubr.bf16.mxu0 %v12261_v55  ;;  %v10751_v55 = vld [vmem:[%s15886_s1 + $0x458] ss:$12 sps:$4 sm:$0xff]  }
  0xb4   : > { %10224 = vmatpush3.bf16.msra.mxu1 %v10740_v49  ;;  %10245 = vmatprep.subr.bf16.mxu0 %v10743_v54  ;;  %v11687_v49 = vld [vmem:[%s15886_s1 + $0x4] ss:$12 sps:$4 sm:$0xff]   ;;  %v11689_v51 = vld [vmem:[%s15886_s1 + $0x16c] ss:$12 sps:$4 sm:$0xff]   ;;  %v11691_v54 = vld [vmem:[%s15886_s1 + $0x168] ss:$12 sps:$4 sm:$0xff]  }
  0xb5   : > { %10225 = vmatprep.subr.bf16.mxu1 %v10742_v52  ;;  %v11690_v52 = vld [vmem:[%s15886_s1 + $0x22c] ss:$12 sps:$4 sm:$0xff]  }
  0xb7   : > { %10246 = vmatpush3.bf16.msra.mxu0 %v10745_v58  ;;  %v11693_v58 = vld [vmem:[%s15886_s1 + $0x154] ss:$12 sps:$4 sm:$0xff]  }
  0xb8   : > { %10226 = vmatpush3.bf16.msra.mxu1 %v10744_v57  ;;  %10247 = vmatprep.subr.bf16.mxu0 %v10746_v59  ;;  %v11692_v57 = vld [vmem:[%s15886_s1 + $0x228] ss:$12 sps:$4 sm:$0xff]  }
  0xb9   : > { %10267 = vmatprep.subr.bf16.mxu1 %v10747_v60  ;;  %v11694_v59 = vld [vmem:[%s15886_s1 + $0x214] ss:$12 sps:$4 sm:$0xff]   ;;  %v12842_v60 = vld [vmem:[%s12734_s28 + $0x28] sm:$0xff] }
  0xbb   : > { %2302 = vmatmul.mubr.bf16.vlgmr.msra.gmra.mxu1 %v12313_v8  ;;  %10248 = vmatpush3.bf16.msra.mxu0 %v10748_v61  ;;  %v10757_v8 = vld [vmem:[%s15886_s1 + $0x380] ss:$12 sps:$4 sm:$0xff]   ;;  %v11695_v61 = vld [vmem:[%s15886_s1 + $0x150] ss:$12 sps:$4 sm:$0xff]  }
  0xbc   : > { %10268 = vmatpush3.bf16.msra.mxu1 %v10749_v62  ;;  %10249 = vmatprep.subr.bf16.mxu0 %v10750_v63  ;;  %v11696_v62 = vld [vmem:[%s15886_s1 + $0x210] ss:$12 sps:$4 sm:$0xff]  }
  0xbd   : > { %10269 = vmatprep.subr.bf16.mxu1 %v10751_v55  ;;  %2309 = vmatprep.mubr.bf16.mxu1 %v12401_v39  ;;  %v10761_v39 = vld [vmem:[%s15886_s1 + $0x368] ss:$12 sps:$4 sm:$0xff]  }
  0xbe   : > { %v11697_v63 = vld [vmem:[%s15886_s1 + $0x13c] ss:$12 sps:$4 sm:$0xff]  }
  0xbf   : > { %10250 = vmatpush3.bf16.msra.mxu0 %v10752_v0  ;;  %v11698_v55 = vld [vmem:[%s15886_s1 + $0x1fc] ss:$12 sps:$4 sm:$0xff]   ;;  %v11699_v0 = vld [vmem:[%s15886_s1 + $0x138] ss:$12 sps:$4 sm:$0xff]  }
  0xc0   : > { %10270 = vmatpush3.bf16.msra.mxu1 %v10753_v1  ;;  %10251 = vmatprep.subr.bf16.mxu0 %v10754_v2  ;;  %v11700_v1 = vld [vmem:[%s15886_s1 + $0x1f8] ss:$12 sps:$4 sm:$0xff]  }
  0xc1   : > { %10271 = vmatprep.subr.bf16.mxu1 %v10755_v3  ;;  %v11701_v2 = vld [vmem:[%s15886_s1 + $0x124] ss:$12 sps:$4 sm:$0xff]  }
  0xc2   : > { %v11702_v3 = vld [vmem:[%s15886_s1 + $0x1e4] ss:$12 sps:$4 sm:$0xff]  }
  0xc3   : > { %2310 = vmatmul.mubr.bf16.gmra.mxu1 %v12406_v41  ;;  %10252 = vmatpush3.bf16.msra.mxu0 %v10756_v4  ;;  %v15862_v41 = vmov 0   ;;  %v11704_v4 = vld [vmem:[%s15886_s1 + $0x1e0] ss:$12 sps:$4 sm:$0xff]  }
  0xc4   : > { %10272 = vmatpush3.bf16.msra.mxu1 %v10757_v8  ;;  %10253 = vmatprep.subr.bf16.mxu0 %v10758_v5  ;;  %v11705_v8 = vld [vmem:[%s15886_s1 + $0x10c] ss:$12 sps:$4 sm:$0xff]  }
  0xc5   : > { %10273 = vmatprep.subr.bf16.mxu1 %v10759_v6  ;;  %2399 = vmatprep.mubr.bf16.mxu1 %v12448_v56  ;;  %v10768_v56 = vld [vmem:[%s15886_s1 + $0x3e0] ss:$12 sps:$4 sm:$0xff]   ;;  %v11707_v6 = vld [vmem:[%s15886_s1 + $0x108] ss:$12 sps:$4 sm:$0xff]  }
  0xc6   : > { %v11706_v5 = vld [vmem:[%s15886_s1 + $0x1cc] ss:$12 sps:$4 sm:$0xff]  }
  0xc7   : > { %10254 = vmatpush3.bf16.msra.mxu0 %v10760_v7  ;;  %v11708_v7 = vld [vmem:[%s15886_s1 + $0x1c8] ss:$12 sps:$4 sm:$0xff]  }
  0xc8   : > { %10274 = vmatpush3.bf16.msra.mxu1 %v10761_v39  ;;  %2416 = vmatprep.subr.bf16.mxu0 %v15862_v41  ;;  %v11709_v39 = vld [vmem:[%s15886_s1 + $0xf4] ss:$12 sps:$4 sm:$0xff]  }
  0xc9   : > { %10275 = vmatprep.subr.bf16.mxu1 %v10762_v10  ;;  %v11710_v10 = vld [vmem:[%s15886_s1 + $0x1b4] ss:$12 sps:$4 sm:$0xff]  }
  0xca   : > { %2351 = vmatmul.mubr.bf16.vlgmr.msra.gmra.mxu0 %v12315_v9  ;;  %v10771_v9 = vld [vmem:[%s15886_s1 + $0x3c8] ss:$12 sps:$4 sm:$0xff]  }
  0xcb   : > { %2417 = vmatpush1.bf16.msra.mxu0 %v10764_v12  ;;  %2358 = vmatprep.mubr.bf16.mxu0 %v12351_v22  ;;  %v10773_v22 = vld [vmem:[%s15886_s1 + $0x4e8] ss:$12 sps:$4 sm:$0xff]   ;;  %v11712_v12 = vld [vmem:[%s15886_s1 + $0x1b0] ss:$12 sps:$4 sm:$0xff]  }
  0xcc   : > { %10276 = vmatpush3.bf16.msra.mxu1 %v10763_v11  ;;  %2418 = vmatprep.subr.bf16.mxu0 %v15862_v41  ;;  %v11711_v11 = vld [vmem:[%s15886_s1 + $0xf0] ss:$12 sps:$4 sm:$0xff]  }
  0xcd   : > { %10277 = vmatprep.subr.bf16.mxu1 %v10765_v13  ;;  %v11713_v13 = vld [vmem:[%s15886_s1 + $0xdc] ss:$12 sps:$4 sm:$0xff]  }
  0xcf   : > { %2419 = vmatpush1.bf16.msra.mxu0 %v10767_v16  ;;  %v11715_v16 = vld [vmem:[%s15886_s1 + $0xd8] ss:$12 sps:$4 sm:$0xff]  }
  0xd0   : > { %10278 = vmatpush3.bf16.msra.mxu1 %v10766_v14  ;;  %2420 = vmatprep.subr.bf16.mxu0 %v15862_v41  ;;  %v11714_v14 = vld [vmem:[%s15886_s1 + $0x19c] ss:$12 sps:$4 sm:$0xff]  }
  0xd1   : > { %10279 = vmatprep.subr.bf16.mxu1 %v10768_v56  ;;  %v11716_v56 = vld [vmem:[%s15886_s1 + $0x198] ss:$12 sps:$4 sm:$0xff]  }
  0xd2   : > { %2359 = vmatmul.mubr.bf16.gmra.mxu0 %v12353_v23  ;;  %v11673_v23 = vld [vmem:[%s15886_s1 + $0xac] ss:$12 sps:$4 sm:$0xff]  }
  0xd3   : > { %2421 = vmatpush1.bf16.msra.mxu0 %v10770_v18  ;;  %9194 = vmatprep.mubr.msk.bf16.mxu0 %vm2050_vm0, %v12392_v35  ;;  %v11674_v35 = vld [vmem:[%s15886_s1 + $0xa8] ss:$12 sps:$4 sm:$0xff]   ;;  %v11718_v18 = vld [vmem:[%s15886_s1 + $0x184] ss:$12 sps:$4 sm:$0xff]  }
  0xd4   : > { %10280 = vmatpush3.bf16.msra.mxu1 %v10769_v17  ;;  %2422 = vmatprep.subr.bf16.mxu0 %v15862_v41  ;;  %v11717_v17 = vld [vmem:[%s15886_s1 + $0xc4] ss:$12 sps:$4 sm:$0xff]  }
  0xd5   : > { %10281 = vmatprep.subr.bf16.mxu1 %v10771_v9  ;;  %v2473_v9 = vld [vmem:[%s12734_s28 + $0x40] sm:$0xff] }
  0xd7   : > { %2423 = vmatpush1.bf16.msra.mxu0 %v10773_v22  ;;  %v12928_v22 = vcombine.low %v12748_v27, %v12751_v29  ;;  %v11724_v27 = vld [vmem:[%s15886_s1 + $0x3a8] ss:$12 sps:$4 sm:$0xff]  }
  0xd8   : > { %10282 = vmatpush3.bf16.msra.mxu1 %v10772_v19  ;;  %2424 = vmatprep.subr.bf16.mxu0 %v15862_v41  ;;  %v2477_v19 = vld [vmem:[%s12734_s28 + $0x60] sm:$0x77] }
  0xd9   : > { %2565 = vmatprep.subr.bf16.mxu1 %v11673_v23  ;;  %v11720_v23 = vld [vmem:[%s15886_s1 + $0x180] ss:$12 sps:$4 sm:$0xff]  }
  0xda   : > { %v11725_v29 = vld [vmem:[%s15886_s1 + $0x2d4] ss:$12 sps:$4 sm:$0xff]  }
  0xdb   : > { %2400 = vmatmul.mubr.bf16.vlgmr.msra.gmra.mxu1 %v12574_v40  ;;  %2425 = vmatpush1.bf16.msra.mxu0 %v10774_v21  ;;  %v11681_v40 = vld [vmem:[%s15886_s1 + $0x4c] ss:$12 sps:$4 sm:$0xff]  }
  0xdc   : > { %2566 = vmatpush1.bf16.msra.mxu1 %v11674_v35  ;;  %2426 = vmatprep.subr.bf16.mxu0 %v15862_v41  ;;  %v11719_v21 = vld [vmem:[%s15886_s1 + $0xc0] ss:$12 sps:$4 sm:$0xff]  }
  0xdd   : > { %2567 = vmatprep.subr.bf16.mxu1 %v11675_v25  ;;  %2407 = vmatprep.mubr.bf16.mxu1 %v12586_v45  ;;  %v11684_v45 = vld [vmem:[%s15886_s1 + $0x30] ss:$12 sps:$4 sm:$0xff]   ;;  %v11722_v35 = vld [vmem:[%s15886_s1 + $0x3ac] ss:$12 sps:$4 sm:$0xff]   ;;  %v12942_v25 = vcombine.high %v2473_v9, %v2477_v19 }
  0xdf   : > { %2427 = vmatpush1.bf16.msra.mxu0 %v10775_v24  ;;  %v11721_v24 = vld [vmem:[%s15886_s1 + $0x2ec] ss:$12 sps:$4 sm:$0xff]  }
  0xe0   : > { %2568 = vmatpush1.bf16.msra.mxu1 %v11676_v30  ;;  %2428 = vmatprep.subr.bf16.mxu0 %v15862_v41  ;;  %v11726_v30 = vld [vmem:[%s15886_s1 + $0x394] ss:$12 sps:$4 sm:$0xff]  }
  0xe1   : > { %2569 = vmatprep.subr.bf16.mxu1 %v11677_v31  ;;  %v12958_v31 = vld [vmem:[%s12734_s28 + $0x10] sm:$0xff] }
  0xe3   : > { %2408 = vmatmul.mubr.bf16.gmra.mxu1 %v12602_v50  ;;  %2429 = vmatpush1.bf16.msra.mxu0 %v10776_v26  ;;  %v11688_v50 = vld [vmem:[%s15886_s1] ss:$12 sps:$4 sm:$0xff]   ;;  %v11723_v26 = vld [vmem:[%s15886_s1 + $0x2e8] ss:$12 sps:$4 sm:$0xff]  }
  0xe4   : > { %2570 = vmatpush1.bf16.msra.mxu1 %v11678_v34  ;;  %2430 = vmatprep.subr.bf16.mxu0 %v15862_v41  ;;  %v12964_v34 = vcombine.low %v2473_v9, %v2477_v19  ;;  %v11757_v19 = vld [vmem:[%s15886_s1 + $0x454] ss:$12 sps:$4 sm:$0xff]  }
  0xe5   : > { %2571 = vmatprep.subr.bf16.mxu1 %v11679_v36  ;;  %2597 = vmatprep.mubr.bf16.mxu1 %v12765_v33  ;;  %v11727_v36 = vld [vmem:[%s15886_s1 + $0x2d0] ss:$12 sps:$4 sm:$0xff]  }
  0xe7   : > { %2431 = vmatpush1.bf16.msra.mxu0 %v10777_v32  ;;  %v12961_v32 = vld [vmem:[%s12734_s28 + $0x30] sm:$0xff] }
  0xe8   : > { %2572 = vmatpush1.bf16.msra.mxu1 %v11680_v38  ;;  %2440 = vmatprep.subr.bf16.mxu0 %v15862_v41  ;;  %v11729_v38 = vld [vmem:[%s15886_s1 + $0x2bc] ss:$12 sps:$4 sm:$0xff]  }
  0xe9   : > { %2573 = vmatprep.subr.bf16.mxu1 %v11681_v40  ;;  %v11730_v40 = vld [vmem:[%s15886_s1 + $0x37c] ss:$12 sps:$4 sm:$0xff]  }
  0xeb   : > { %2441 = vmatpush2.bf16.msra.mxu0 %v10778_v37  ;;  %v11728_v37 = vld [vmem:[%s15886_s1 + $0x390] ss:$12 sps:$4 sm:$0xff]  }
  0xec   : > { %2574 = vmatpush1.bf16.msra.mxu1 %v11682_v43  ;;  %2442 = vmatprep.subr.bf16.mxu0 %v15862_v41  ;;  %v11731_v43 = vld [vmem:[%s15886_s1 + $0x2b8] ss:$12 sps:$4 sm:$0xff]  }
  0xed   : > { %2575 = vmatprep.subr.bf16.mxu1 %v11683_v44  ;;  %v11732_v44 = vld [vmem:[%s15886_s1 + $0x378] ss:$12 sps:$4 sm:$0xff]  }
  0xef   : > { %2443 = vmatpush2.bf16.msra.mxu0 %v10779_v42  ;;  %v12980_v42 = vcombine.high %v12958_v31, %v12961_v32 }
  0xf0   : > { %2576 = vmatpush1.bf16.msra.mxu1 %v11684_v45  ;;  %2444 = vmatprep.subr.bf16.mxu0 %v15862_v41  ;;  %v11734_v45 = vld [vmem:[%s15886_s1 + $0x364] ss:$12 sps:$4 sm:$0xff]  }
  0xf1   : > { %2577 = vmatprep.subr.bf16.mxu1 %v11685_v46  ;;  %v11735_v46 = vld [vmem:[%s15886_s1 + $0x2a0] ss:$12 sps:$4 sm:$0xff]  }
  0xf3   : > { %2445 = vmatpush2.bf16.msra.mxu0 %v10780_v53  ;;  %v11733_v53 = vld [vmem:[%s15886_s1 + $0x2a4] ss:$12 sps:$4 sm:$0xff]  }
  0xf4   : > { %2578 = vmatpush1.bf16.msra.mxu1 %v11686_v48  ;;  %2446 = vmatprep.subr.bf16.mxu0 %v15862_v41  ;;  %v11737_v48 = vld [vmem:[%s15886_s1 + $0x28c] ss:$12 sps:$4 sm:$0xff]  }
  0xf5   : > { %2579 = vmatprep.subr.bf16.mxu1 %v11687_v49  ;;  %v11738_v49 = vld [vmem:[%s15886_s1 + $0x34c] ss:$12 sps:$4 sm:$0xff]  }
  0xf7   : > { %2447 = vmatpush2.bf16.msra.mxu0 %v10781_v47  ;;  %v11736_v47 = vld [vmem:[%s15886_s1 + $0x360] ss:$12 sps:$4 sm:$0xff]  }
  0xf8   : > { %2580 = vmatpush1.bf16.msra.mxu1 %v11688_v50  ;;  %2618 = vmatprep.subr.bf16.mxu0 %v11690_v52 }
  0xf9   : > { %2581 = vmatprep.subr.bf16.mxu1 %v11689_v51 }
  0xfa   : > { %2449 = vmatmul.mubr.bf16.vlgmr.msra.gmra.mxu0 %v12511_v15  ;;  %v12839_v15 = vld [vmem:[%s12734_s28 + $0x8] sm:$0xff] }
  0xfb   : > { %2619 = vmatpush1.bf16.msra.mxu0 %v11692_v57  ;;  %9195 = vmatprep.mubr.msk.bf16.mxu0 %vm2050_vm0, %v12523_v20  ;;  %v12860_v20 = vcombine.high %v12839_v15, %v12842_v60  ;;  %v11740_v57 = vld [vmem:[%s15886_s1 + $0x348] ss:$12 sps:$4 sm:$0xff]  }
  0xfc   : > { %2582 = vmatpush2.bf16.msra.mxu1 %v11691_v54  ;;  %2620 = vmatprep.subr.bf16.mxu0 %v11694_v59  ;;  %v11739_v54 = vld [vmem:[%s15886_s1 + $0x288] ss:$12 sps:$4 sm:$0xff]  }
  0xfd   : > { %2583 = vmatprep.subr.bf16.mxu1 %v11693_v58 }
  0xff   : > { %2621 = vmatpush1.bf16.msra.mxu0 %v11696_v62  ;;  %v11742_v62 = vld [vmem:[%s15886_s1 + $0x334] ss:$12 sps:$4 sm:$0xff]  }
 0x100   : > { %2584 = vmatpush2.bf16.msra.mxu1 %v11695_v61  ;;  %2622 = vmatprep.subr.bf16.mxu0 %v11698_v55  ;;  %v11741_v61 = vld [vmem:[%s15886_s1 + $0x274] ss:$12 sps:$4 sm:$0xff]  }
 0x101   : > { %2585 = vmatprep.subr.bf16.mxu1 %v11697_v63 }
 0x102   : > { %2457 = vmatmul.mubr.bf16.gmra.mxu0 %v12543_v28  ;;  %v11703_v28 = vld [vmem:[%s15886_s1 + $0x120] ss:$12 sps:$4 sm:$0xff]  }
 0x103   : > { %2623 = vmatpush1.bf16.msra.mxu0 %v11700_v1  ;;  %2650 = vmatprep.mubr.bf16.mxu0 %v12860_v20 }
 0x104   : > { %2586 = vmatpush2.bf16.msra.mxu1 %v11699_v0  ;;  %2624 = vmatprep.subr.bf16.mxu0 %v11702_v3  ;;  %v11744_v3 = vld [vmem:[%s15886_s1 + $0x330] ss:$12 sps:$4 sm:$0xff]  }
 0x105   : > { %2587 = vmatprep.subr.bf16.mxu1 %v11701_v2  ;;  %v11743_v2 = vld [vmem:[%s15886_s1 + $0x270] ss:$12 sps:$4 sm:$0xff]  }
 0x107   : > { %2625 = vmatpush1.bf16.msra.mxu0 %v11704_v4  ;;  %v11746_v4 = vld [vmem:[%s15886_s1 + $0x31c] ss:$12 sps:$4 sm:$0xff]  }
 0x108   : > { %2588 = vmatpush2.bf16.msra.mxu1 %v11703_v28  ;;  %2626 = vmatprep.subr.bf16.mxu0 %v11706_v5  ;;  %v11745_v28 = vld [vmem:[%s15886_s1 + $0x25c] ss:$12 sps:$4 sm:$0xff]   ;;  %v11748_v5 = vld [vmem:[%s15886_s1 + $0x318] ss:$12 sps:$4 sm:$0xff]  }
 0x109   : > { %2589 = vmatprep.subr.bf16.mxu1 %v11705_v8  ;;  %v11747_v8 = vld [vmem:[%s15886_s1 + $0x258] ss:$12 sps:$4 sm:$0xff]  }
 0x10b   : > { %2627 = vmatpush1.bf16.msra.mxu0 %v11708_v7  ;;  %v11750_v7 = vld [vmem:[%s15886_s1 + $0x304] ss:$12 sps:$4 sm:$0xff]  }
 0x10c   : > { %2590 = vmatpush2.bf16.msra.mxu1 %v11707_v6  ;;  %2628 = vmatprep.subr.bf16.mxu0 %v11710_v10  ;;  %v11749_v6 = vld [vmem:[%s15886_s1 + $0x244] ss:$12 sps:$4 sm:$0xff]   ;;  %v2478_v10 = vld [vmem:[%s12734_s28 + $0x68] sm:$0x77] }
 0x10d   : > { %2591 = vmatprep.subr.bf16.mxu1 %v11709_v39  ;;  %v2474_v39 = vld [vmem:[%s12734_s28 + $0x48] sm:$0xff] }
 0x10f   : > { %2629 = vmatpush1.bf16.msra.mxu0 %v11712_v12  ;;  %v11751_v12 = vld [vmem:[%s15886_s1 + $0x240] ss:$12 sps:$4 sm:$0xff]  }
 0x110   : > { %2592 = vmatpush2.bf16.msra.mxu1 %v11711_v11  ;;  %2630 = vmatprep.subr.bf16.mxu0 %v11714_v14  ;;  %v13054_v11 = vcombine.low %v12839_v15, %v12842_v60  ;;  %v11754_v15 = vld [vmem:[%s15886_s1 + $0x52c] ss:$12 sps:$4 sm:$0xff]   ;;  %v13070_v60 = vcombine.high %v2474_v39, %v2478_v10 }
 0x111   : > { %2593 = vmatprep.subr.bf16.mxu1 %v11713_v13  ;;  %v11752_v13 = vld [vmem:[%s15886_s1 + $0x300] ss:$12 sps:$4 sm:$0xff]  }
 0x113   : > { %2631 = vmatpush1.bf16.msra.mxu0 %v11716_v56 }
 0x114   : > { %2594 = vmatpush2.bf16.msra.mxu1 %v11715_v16  ;;  %2632 = vmatprep.subr.bf16.mxu0 %v11718_v18  ;;  %v11753_v16 = vld [vmem:[%s15886_s1 + $0x46c] ss:$12 sps:$4 sm:$0xff]   ;;  %v11756_v18 = vld [vmem:[%s15886_s1 + $0x528] ss:$12 sps:$4 sm:$0xff]  }
 0x115   : > { %2595 = vmatprep.subr.bf16.mxu1 %v11717_v17  ;;  %v11755_v17 = vld [vmem:[%s15886_s1 + $0x468] ss:$12 sps:$4 sm:$0xff]  }
 0x117   : > { %2633 = vmatpush1.bf16.msra.mxu0 %v11720_v23  ;;  %v13088_v23 = vld [vmem:[%s12734_s28 + $0x18] sm:$0xff] }
 0x118   : > { %2596 = vmatpush2.bf16.msra.mxu1 %v11719_v21  ;;  %2634 = vmatprep.subr.bf16.mxu0 %v11721_v24  ;;  %v11758_v21 = vld [vmem:[%s15886_s1 + $0x514] ss:$12 sps:$4 sm:$0xff]   ;;  %v13091_v24 = vld [vmem:[%s12734_s28 + $0x38] sm:$0xff] }
 0x119   : > { %2671 = vmatprep.subr.bf16.mxu1 %v11722_v35 }
 0x11b   : > { %2598 = vmatmul.mubr.bf16.vlgmr.msra.gmra.mxu1 %v12928_v22  ;;  %2635 = vmatpush2.bf16.msra.mxu0 %v11723_v26  ;;  %v13094_v26 = vcombine.low %v2474_v39, %v2478_v10  ;;  %v2479_v39 = vld [vmem:[%s12734_s28 + $0x70] sm:$0x77]  ;;  %v13185_v10 = vcombine.low %v12958_v31, %v12961_v32 }
 0x11c   : > { %2672 = vmatpush1.bf16.msra.mxu1 %v11724_v27  ;;  %2636 = vmatprep.subr.bf16.mxu0 %v11725_v29  ;;  %v11759_v29 = vld [vmem:[%s15886_s1 + $0x450] ss:$12 sps:$4 sm:$0xff]  }
 0x11d   : > { %2673 = vmatprep.subr.bf16.mxu1 %v11726_v30  ;;  %2607 = vmatprep.mubr.bf16.mxu1 %v12942_v25  ;;  %v11760_v30 = vld [vmem:[%s15886_s1 + $0x510] ss:$12 sps:$4 sm:$0xff]  }
 0x11e   : > { %v11786_v31 = vld [vmem:[%s15886_s1 + $0x170] ss:$12 sps:$4 sm:$0xff]  }
 0x11f   : > { %2637 = vmatpush2.bf16.msra.mxu0 %v11727_v36 }
 0x120   : > { %2674 = vmatpush1.bf16.msra.mxu1 %v11728_v37  ;;  %2638 = vmatprep.subr.bf16.mxu0 %v11729_v38  ;;  %v11761_v37 = vld [vmem:[%s15886_s1 + $0x43c] ss:$12 sps:$4 sm:$0xff]  }
 0x121   : > { %2675 = vmatprep.subr.bf16.mxu1 %v11730_v40  ;;  %v11762_v38 = vld [vmem:[%s15886_s1 + $0x4fc] ss:$12 sps:$4 sm:$0xff]  }
 0x123   : > { %2608 = vmatmul.mubr.bf16.gmra.mxu1 %v12964_v34  ;;  %2639 = vmatpush2.bf16.msra.mxu0 %v11731_v43 }
 0x124   : > { %2676 = vmatpush1.bf16.msra.mxu1 %v11732_v44  ;;  %2640 = vmatprep.subr.bf16.mxu0 %v11733_v53  ;;  %v13114_v44 = vcombine.high %v13088_v23, %v13091_v24 }
 0x125   : > { %2677 = vmatprep.subr.bf16.mxu1 %v11734_v45  ;;  %2703 = vmatprep.mubr.bf16.mxu1 %v12980_v42 }
 0x127   : > { %2641 = vmatpush2.bf16.msra.mxu0 %v11735_v46  ;;  %v11763_v46 = vld [vmem:[%s15886_s1 + $0x438] ss:$12 sps:$4 sm:$0xff]  }
 0x128   : > { %2678 = vmatpush1.bf16.msra.mxu1 %v11736_v47  ;;  %2642 = vmatprep.subr.bf16.mxu0 %v11737_v48  ;;  %v11764_v47 = vld [vmem:[%s15886_s1 + $0x4f8] ss:$12 sps:$4 sm:$0xff]  }
 0x129   : > { %2679 = vmatprep.subr.bf16.mxu1 %v11738_v49  ;;  %v11765_v49 = vld [vmem:[%s15886_s1 + $0x424] ss:$12 sps:$4 sm:$0xff]  }
 0x12a   : > { %v2091_v50 = vpop.f32.mrf.mxu0 }
 0x12b   : > { %v2144_v51 = vpop.f32.mrf.mxu1  ;;  %2643 = vmatpush2.bf16.msra.mxu0 %v11739_v54  ;;  %v11768_v54 = vld [vmem:[%s15886_s1 + $0x4e0] ss:$12 sps:$4 sm:$0xff]  }
 0x12c   : > { %v13008_v52 = vadd.f32 %v2144_v51, %v2091_v50  ;;  %2680 = vmatpush1.bf16.msra.mxu1 %v11740_v57  ;;  %v2093_v58 = vpop.f32.mrf.mxu0  ;;  %2644 = vmatprep.subr.bf16.mxu0 %v11741_v61  ;;  %v11766_v50 = vld [vmem:[%s15886_s1 + $0x4e4] ss:$12 sps:$4 sm:$0xff]   ;;  %v11767_v51 = vld [vmem:[%s15886_s1 + $0x420] ss:$12 sps:$4 sm:$0xff]   ;;  %v11772_v61 = vld [vmem:[%s15886_s1 + $0x4c8] ss:$12 sps:$4 sm:$0xff]  }
 0x12d   : > { %v2146_v59 = vpop.f32.mrf.mxu1  ;;  %2681 = vmatprep.subr.bf16.mxu1 %v11742_v62  ;;  %v11769_v57 = vld [vmem:[%s15886_s1 + $0x40c] ss:$12 sps:$4 sm:$0xff]   ;;  %v11773_v62 = vld [vmem:[%s15886_s1 + $0x3f4] ss:$12 sps:$4 sm:$0xff]  }
 0x12e   : > { %v13022_v63 = vadd.f32 %v2146_v59, %v2093_v58  ;;  %v2095_v55 = vpop.f32.mrf.mxu0  ;;  %v11770_v58 = vld [vmem:[%s15886_s1 + $0x4cc] ss:$12 sps:$4 sm:$0xff]   ;;  %v11771_v59 = vld [vmem:[%s15886_s1 + $0x408] ss:$12 sps:$4 sm:$0xff]  }
 0x12f   : > { %v2148_v0 = vpop.f32.mrf.mxu1  ;;  %2645 = vmatpush2.bf16.msra.mxu0 %v11743_v2  ;;  %v11776_v2 = vld [vmem:[%s15886_s1 + $0x4b0] ss:$12 sps:$4 sm:$0xff]  }
 0x130   : > { %v13024_v1 = vadd.f32 %v2148_v0, %v2095_v55  ;;  %2682 = vmatpush1.bf16.msra.mxu1 %v11744_v3  ;;  %2646 = vmatprep.subr.bf16.mxu0 %v11745_v28  ;;  %v13079_v9 = vpop.f32.mrf.mxu0  ;;  %v11774_v55 = vld [vmem:[%s15886_s1 + $0x4b4] ss:$12 sps:$4 sm:$0xff]   ;;  %v11775_v0 = vld [vmem:[%s15886_s1 + $0x3f0] ss:$12 sps:$4 sm:$0xff]  }
 0x131   : > { %2683 = vmatprep.subr.bf16.mxu1 %v11746_v4  ;;  %v13062_v14 = vpop.f32.mrf.mxu1  ;;  %v11777_v3 = vld [vmem:[%s15886_s1 + $0x3dc] ss:$12 sps:$4 sm:$0xff]   ;;  %v11779_v4 = vld [vmem:[%s15886_s1 + $0x3d8] ss:$12 sps:$4 sm:$0xff]  }
 0x132   : > { %v2101_v35 = vpop.f32.mrf.mxu0  ;;  %v11778_v28 = vld [vmem:[%s15886_s1 + $0x49c] ss:$12 sps:$4 sm:$0xff]  }
 0x133   : > { %2647 = vmatpush2.bf16.msra.mxu0 %v11747_v8  ;;  %v2154_v56 = vpop.f32.mrf.mxu1  ;;  %v11780_v8 = vld [vmem:[%s15886_s1 + $0x498] ss:$12 sps:$4 sm:$0xff]  }
 0x134   : > { %2684 = vmatpush1.bf16.msra.mxu1 %v11748_v5  ;;  %2648 = vmatprep.subr.bf16.mxu0 %v11749_v6  ;;  %v13102_v36 = vadd.f32 %v2154_v56, %v2101_v35  ;;  %v2103_v40 = vpop.f32.mrf.mxu0  ;;  %v11781_v5 = vld [vmem:[%s15886_s1 + $0x3c4] ss:$12 sps:$4 sm:$0xff]   ;;  %v11787_v56 = vld [vmem:[%s15886_s1 + $0x588] ss:$12 sps:$4 sm:$0xff]  }
 0x135   : > { %2685 = vmatprep.subr.bf16.mxu1 %v11750_v7  ;;  %v2156_v27 = vpop.f32.mrf.mxu1  ;;  %v11782_v6 = vld [vmem:[%s15886_s1 + $0x484] ss:$12 sps:$4 sm:$0xff]  }
 0x136   : > { %v13110_v43 = vadd.f32 %v2156_v27, %v2103_v40  ;;  %v2105_v53 = vpop.f32.mrf.mxu0  ;;  %v2475_v7 = vld [vmem:[%s12734_s28 + $0x50] sm:$0xff]  ;;  %v11795_v40 = vld [vmem:[%s15886_s1 + $0x558] ss:$12 sps:$4 sm:$0xff]  }
 0x137   : > { %2649 = vmatpush2.bf16.msra.mxu0 %v11751_v12  ;;  %v2158_v45 = vpop.f32.mrf.mxu1  ;;  %v11783_v12 = vld [vmem:[%s15886_s1 + $0x3c0] ss:$12 sps:$4 sm:$0xff]   ;;  %v13199_v32 = vcombine.high %v2475_v7, %v2479_v39  ;;  %v13217_v35 = vcombine.low %v2475_v7, %v2479_v39  ;;  %v11791_v27 = vld [vmem:[%s15886_s1 + $0x570] ss:$12 sps:$4 sm:$0xff]  }
 0x138   : > { %2686 = vmatpush1.bf16.msra.mxu1 %v11752_v13  ;;  %2724 = vmatprep.subr.bf16.mxu0 %v11754_v15  ;;  %v13123_v48 = vadd.f32 %v2158_v45, %v2105_v53  ;;  %v11784_v13 = vld [vmem:[%s15886_s1 + $0x480] ss:$12 sps:$4 sm:$0xff]   ;;  %v11797_v45 = vld [vmem:[%s15886_s1 + $0x544] ss:$12 sps:$4 sm:$0xff]  }
 0x139   : > { %2687 = vmatprep.subr.bf16.mxu1 %v11753_v16  ;;  %v11785_v16 = vld [vmem:[%s15886_s1 + $0x58c] ss:$12 sps:$4 sm:$0xff]   ;;  %v13202_v15 = vpop.f32.mrf.mxu1 }
 0x13a   : > { %2651 = vmatmul.mubr.bf16.vlgmr.msra.gmra.mxu0 %v13054_v11  ;;  %v11796_v53 = vld [vmem:[%s15886_s1 + $0x80] ss:$12 sps:$4 sm:$0xff]  }
 0x13b   : > { %2725 = vmatpush1.bf16.msra.mxu0 %v11756_v18  ;;  %2660 = vmatprep.mubr.bf16.mxu0 %v13070_v60  ;;  %v11789_v18 = vld [vmem:[%s15886_s1 + $0x574] ss:$12 sps:$4 sm:$0xff]  }
 0x13c   : > { %2688 = vmatpush2.bf16.msra.mxu1 %v11755_v17  ;;  %2726 = vmatprep.subr.bf16.mxu0 %v11758_v21  ;;  %v11788_v17 = vld [vmem:[%s15886_s1 + $0xb0] ss:$12 sps:$4 sm:$0xff]  }
 0x13d   : > { %2689 = vmatprep.subr.bf16.mxu1 %v11757_v19  ;;  %v11790_v19 = vld [vmem:[%s15886_s1 + $0x158] ss:$12 sps:$4 sm:$0xff]  }
 0x13f   : > { %2727 = vmatpush1.bf16.msra.mxu0 %v11760_v30  ;;  %v11793_v30 = vld [vmem:[%s15886_s1 + $0x55c] ss:$12 sps:$4 sm:$0xff]  }
 0x140   : > { %2690 = vmatpush2.bf16.msra.mxu1 %v11759_v29  ;;  %2728 = vmatprep.subr.bf16.mxu0 %v11762_v38  ;;  %v11792_v29 = vld [vmem:[%s15886_s1 + $0x98] ss:$12 sps:$4 sm:$0xff]  }
 0x141   : > { %2691 = vmatprep.subr.bf16.mxu1 %v11761_v37  ;;  %v11794_v37 = vld [vmem:[%s15886_s1 + $0x140] ss:$12 sps:$4 sm:$0xff]  }
 0x142   : > { %2661 = vmatmul.mubr.bf16.gmra.mxu0 %v13094_v26 }
 0x143   : > { %2729 = vmatpush1.bf16.msra.mxu0 %v11764_v47  ;;  %9212 = vmatprep.mubr.msk.bf16.mxu0 %vm2050_vm0, %v13114_v44 }
 0x144   : > { %2692 = vmatpush2.bf16.msra.mxu1 %v11763_v46  ;;  %2730 = vmatprep.subr.bf16.mxu0 %v11766_v50  ;;  %v11798_v46 = vld [vmem:[%s15886_s1 + $0x128] ss:$12 sps:$4 sm:$0xff]   ;;  %v2480_v50 = vld [vmem:[%s12734_s28 + $0x78] sm:$0x77] }
 0x145   : > { %2693 = vmatprep.subr.bf16.mxu1 %v11765_v49  ;;  %v2476_v49 = vld [vmem:[%s12734_s28 + $0x58] sm:$0xff]  ;;  %s15891_s28 = sld [smem:[#allocation30_spill]] }
 0x147   : > { %2731 = vmatpush1.bf16.msra.mxu0 %v11768_v54  ;;  %v11799_v54 = vld [vmem:[%s15886_s1 + $0x540] ss:$12 sps:$4 sm:$0xff]  }
 0x148   : > { %2694 = vmatpush2.bf16.msra.mxu1 %v11767_v51  ;;  %2732 = vmatprep.subr.bf16.mxu0 %v11770_v58  ;;  %v13249_v51 = vcombine.low %v13088_v23, %v13091_v24  ;;  %v13257_v58 = vpop.f32.mrf.mxu0  ;;  %v11802_v23 = vld [vmem:[%s15886_s1 + $0x2f0] ss:$12 sps:$4 sm:$0xff]  }
 0x149   : > { %2695 = vmatprep.subr.bf16.mxu1 %v11769_v57  ;;  %v11800_v57 = vld [vmem:[%s15886_s1 + $0x68] ss:$12 sps:$4 sm:$0xff]  }
 0x14b   : > { %2733 = vmatpush1.bf16.msra.mxu0 %v11772_v61  ;;  %s15892_s7 = smov %s15891_s28 }
 0x14c   : > { %2696 = vmatpush2.bf16.msra.mxu1 %v11771_v59  ;;  %2734 = vmatprep.subr.bf16.mxu0 %v11774_v55  ;;  %v13267_v59 = vcombine.high %v2476_v49, %v2480_v50  ;;  %v11803_v55 = vld [vmem:[%s15886_s1 + $0x50] ss:$12 sps:$4 sm:$0xff]  }
 0x14d   : > { %2697 = vmatprep.subr.bf16.mxu1 %v11773_v62 }
 0x14f   : > { %2735 = vmatpush1.bf16.msra.mxu0 %v11776_v2 }
 0x150   : > { %2698 = vmatpush2.bf16.msra.mxu1 %v11775_v0  ;;  %2736 = vmatprep.subr.bf16.mxu0 %v11778_v28  ;;  %v11804_v0 = vld [vmem:[%s15886_s1 + $0x230] ss:$12 sps:$4 sm:$0xff]  }
 0x151   : > { %2699 = vmatprep.subr.bf16.mxu1 %v11777_v3  ;;  %v11805_v3 = vld [vmem:[%s15886_s1 + $0xf8] ss:$12 sps:$4 sm:$0xff]  }
 0x153   : > { %2737 = vmatpush1.bf16.msra.mxu0 %v11780_v8 }
 0x154   : > { %2700 = vmatpush2.bf16.msra.mxu1 %v11779_v4  ;;  %2738 = vmatprep.subr.bf16.mxu0 %v11782_v6  ;;  %v13288_v6 = vcombine.low %v2476_v49, %v2480_v50 }
 0x155   : > { %2701 = vmatprep.subr.bf16.mxu1 %v11781_v5 }
 0x157   : > { %2739 = vmatpush1.bf16.msra.mxu0 %v11784_v13 }
 0x158   : > { %2702 = vmatpush2.bf16.msra.mxu1 %v11783_v12  ;;  %2748 = vmatprep.subr.bf16.mxu0 %v11785_v16  ;;  %v11807_v12 = vld [vmem:[%s15886_s1 + $0x38] ss:$12 sps:$4 sm:$0xff]   ;;  %v11809_v16 = vld [vmem:[%s15886_s1 + $0xe0] ss:$12 sps:$4 sm:$0xff]  }
 0x159   : > { %10295 = vmatprep.subr.bf16.mxu1 %v11786_v31 }
 0x15b   : > { %2704 = vmatmul.mubr.bf16.vlgmr.msra.gmra.mxu1 %v13185_v10  ;;  %2749 = vmatpush2.bf16.msra.mxu0 %v11787_v56  ;;  %v2250_v21 = vpop.f32.mrf.mxu1 }
 0x15c   : > { %10296 = vmatpush3.bf16.msra.mxu1 %v11788_v17  ;;  %2750 = vmatprep.subr.bf16.mxu0 %v11789_v18 }
 0x15d   : > { %10297 = vmatprep.subr.bf16.mxu1 %v11790_v19  ;;  %2713 = vmatprep.mubr.bf16.mxu1 %v13199_v32  ;;  %v2252_v38 = vpop.f32.mrf.mxu1  ;;  %v11811_v19 = vld [vmem:[%s15886_s1 + $0x20] ss:$12 sps:$4 sm:$0xff]  }
 0x15f   : > { %2751 = vmatpush2.bf16.msra.mxu0 %v11791_v27  ;;  %v2254_v47 = vpop.f32.mrf.mxu1 }
 0x160   : > { %10298 = vmatpush3.bf16.msra.mxu1 %v11792_v29  ;;  %2752 = vmatprep.subr.bf16.mxu0 %v11793_v30  ;;  %v11813_v29 = vld [vmem:[%s15886_s1 + $0xc8] ss:$12 sps:$4 sm:$0xff]  }
 0x161   : > { %10299 = vmatprep.subr.bf16.mxu1 %v11794_v37  ;;  %v13265_v24 = vpop.f32.mrf.mxu1 }
 0x163   : > { %2714 = vmatmul.mubr.bf16.gmra.mxu1 %v13217_v35  ;;  %2753 = vmatpush2.bf16.msra.mxu0 %v11795_v40  ;;  %v2260_v28 = vpop.f32.mrf.mxu1 }
 0x164   : > { %10300 = vmatpush3.bf16.msra.mxu1 %v11796_v53  ;;  %2754 = vmatprep.subr.bf16.mxu0 %v11797_v45 }
 0x165   : > { %10301 = vmatprep.subr.bf16.mxu1 %v11798_v46  ;;  %2809 = vmatprep.mubr.bf16.mxu1 %v12765_v33  ;;  %v11801_v33 = vld [vmem:[%s15886_s1 + $0x110] ss:$12 sps:$4 sm:$0xff]   ;;  %v2262_v31 = vpop.f32.mrf.mxu1  ;;  %v11815_v46 = vld [vmem:[%s15886_s1 + $0x8] ss:$12 sps:$4 sm:$0xff]  }
 0x167   : > { %2755 = vmatpush2.bf16.msra.mxu0 %v11799_v54  ;;  %v2264_v30 = vpop.f32.mrf.mxu1  ;;  %v11819_v54 = vld [vmem:[%s15886_s1 + $0x1d0] ss:$12 sps:$4 sm:$0xff]  }
 0x168   : > { %10302 = vmatpush3.bf16.msra.mxu1 %v11800_v57  ;;  %10323 = vmatprep.subr.bf16.mxu0 %v11802_v23  ;;  %v11820_v57 = vld [vmem:[%s15886_s1 + $0x3b0] ss:$12 sps:$4 sm:$0xff]  }
 0x169   : > { %10303 = vmatprep.subr.bf16.mxu1 %v11801_v33  ;;  %v11821_v33 = vld [vmem:[%s15886_s1 + $0x278] ss:$12 sps:$4 sm:$0xff]  }
 0x16a   : > { %v2197_v61 = vpop.f32.mrf.mxu0  ;;  %2757 = vmatmul.mubr.bf16.vlgmr.msra.gmra.mxu0 %v13249_v51 }
 0x16b   : > { %v2198_v62 = vadd.f32 %v2197_v61, %v13008_v52  ;;  %10324 = vmatpush3.bf16.msra.mxu0 %v11804_v0  ;;  %v11806_v52 = vld [vmem:[%s15886_s1 + $0x2d8] ss:$12 sps:$4 sm:$0xff]   ;;  %9213 = vmatprep.mubr.msk.bf16.mxu0 %vm2050_vm0, %v13267_v59 }
 0x16c   : > { %10304 = vmatpush3.bf16.msra.mxu1 %v11803_v55  ;;  %v2199_v2 = vpop.f32.mrf.mxu0  ;;  %10325 = vmatprep.subr.bf16.mxu0 %v11806_v52  ;;  %v11823_v55 = vld [vmem:[%s15886_s1 + $0x1b8] ss:$12 sps:$4 sm:$0xff]  }
 0x16d   : > { %10305 = vmatprep.subr.bf16.mxu1 %v11805_v3  ;;  %v2200_v4 = vadd.f32 %v2199_v2, %v13022_v63  ;;  %v13284_v8 = vadd.f32 %v2250_v21, %v2198_v62  ;;  %v11808_v63 = vld [vmem:[%s15886_s1 + $0x218] ss:$12 sps:$4 sm:$0xff]   ;;  %v11812_v21 = vld [vmem:[%s15886_s1 + $0x200] ss:$12 sps:$4 sm:$0xff]  }
 0x16e   : > { %v2201_v5 = vpop.f32.mrf.mxu0  ;;  %v11824_v0 = vld [vmem:[%s15886_s1 + $0x398] ss:$12 sps:$4 sm:$0xff]   ;;  %v11825_v2 = vld [vmem:[%s15886_s1 + $0x260] ss:$12 sps:$4 sm:$0xff]  }
 0x16f   : > { %v2202_v7 = vadd.f32 %v2201_v5, %v13024_v1  ;;  %v13291_v39 = vadd.f32 %v2252_v38, %v2200_v4  ;;  %10326 = vmatpush3.bf16.msra.mxu0 %v11808_v63  ;;  %v11810_v1 = vld [vmem:[%s15886_s1 + $0x2c0] ss:$12 sps:$4 sm:$0xff]   ;;  %v11829_v5 = vld [vmem:[%s15886_s1 + $0x248] ss:$12 sps:$4 sm:$0xff]  }
 0x170   : > { %10306 = vmatpush3.bf16.msra.mxu1 %v11807_v12  ;;  %v13299_v13 = vpop.f32.mrf.mxu0  ;;  %10327 = vmatprep.subr.bf16.mxu0 %v11810_v1  ;;  %v11828_v4 = vld [vmem:[%s15886_s1 + $0x380] ss:$12 sps:$4 sm:$0xff]   ;;  %v11831_v63 = vld [vmem:[%s15886_s1 + $0x188] ss:$12 sps:$4 sm:$0xff]  }
 0x171   : > { %10307 = vmatprep.subr.bf16.mxu1 %v11809_v16  ;;  %v13307_v56 = vadd.f32 %v2254_v47, %v2202_v7  ;;  %v11816_v47 = vld [vmem:[%s15886_s1 + $0x1e8] ss:$12 sps:$4 sm:$0xff]  }
 0x172   : > { %v2207_v17 = vpop.f32.mrf.mxu0  ;;  %2767 = vmatmul.mubr.bf16.gmra.mxu0 %v13288_v6  ;;  %v11830_v7 = vld [vmem:[%s15886_s1 + $0x428] ss:$12 sps:$4 sm:$0xff]  }
 0x173   : > { %v2208_v18 = vadd.f32 %v2207_v17, %v13102_v36  ;;  %10328 = vmatpush3.bf16.msra.mxu0 %v11812_v21  ;;  %v11814_v36 = vld [vmem:[%s15886_s1 + $0x2a8] ss:$12 sps:$4 sm:$0xff]   ;;  %2858 = vmatprep.mubr.bf16.mxu0 %v12860_v20  ;;  %v11817_v20 = vld [vmem:[%s15886_s1 + $0x290] ss:$12 sps:$4 sm:$0xff]   ;;  %v11836_v21 = vld [vmem:[%s15886_s1 + $0x3f8] ss:$12 sps:$4 sm:$0xff]  }
 0x174   : > { %10308 = vmatpush3.bf16.msra.mxu1 %v11811_v19  ;;  %v2209_v27 = vpop.f32.mrf.mxu0  ;;  %10329 = vmatprep.subr.bf16.mxu0 %v11814_v36  ;;  %v11832_v16 = vld [vmem:[%s15886_s1 + $0x368] ss:$12 sps:$4 sm:$0xff]   ;;  %v11834_v17 = vld [vmem:[%s15886_s1 + $0x350] ss:$12 sps:$4 sm:$0xff]   ;;  %v11837_v36 = vld [vmem:[%s15886_s1 + $0x338] ss:$12 sps:$4 sm:$0xff]  }
 0x175   : > { %10309 = vmatprep.subr.bf16.mxu1 %v11813_v29  ;;  %v2210_v37 = vadd.f32 %v2209_v27, %v13110_v43  ;;  %v13324_v38 = vadd.f32 %v2260_v28, %v2208_v18  ;;  %v13336_v43 = vpop.f32.mrf.mxu1  ;;  %v11827_v28 = vld [vmem:[%s15886_s1 + $0x1a0] ss:$12 sps:$4 sm:$0xff]   ;;  %v11835_v18 = vld [vmem:[%s15886_s1 + $0x530] ss:$12 sps:$4 sm:$0xff]  }
 0x176   : > { %v2211_v40 = vpop.f32.mrf.mxu0 }
 0x177   : > { %v2212_v53 = vadd.f32 %v2211_v40, %v13123_v48  ;;  %v13328_v45 = vadd.f32 %v2262_v31, %v2210_v37  ;;  %10330 = vmatpush3.bf16.msra.mxu0 %v11816_v47  ;;  %v11818_v48 = vld [vmem:[%s15886_s1 + $0x470] ss:$12 sps:$4 sm:$0xff]  }
 0x178   : > { %10310 = vmatpush3.bf16.msra.mxu1 %v11815_v46  ;;  %10331 = vmatprep.subr.bf16.mxu0 %v11817_v20  ;;  %v13392_v1 = vpop.f32.mrf.mxu0  ;;  %v11833_v31 = vld [vmem:[%s15886_s1 + $0x410] ss:$12 sps:$4 sm:$0xff]  }
 0x179   : > { %10351 = vmatprep.subr.bf16.mxu1 %v11818_v48  ;;  %v13344_v49 = vadd.f32 %v2264_v30, %v2212_v53  ;;  %v11838_v30 = vld [vmem:[%s15886_s1 + $0x518] ss:$12 sps:$4 sm:$0xff]   ;;  %v11839_v53 = vld [vmem:[%s15886_s1 + $0x3e0] ss:$12 sps:$4 sm:$0xff]   ;;  %v10784_v20 = vld [vmem:[%s15890_s8 + $0x74] ss:$8 sps:$4 sm:$0xff]  }
 0x17b   : > { %2810 = vmatmul.mubr.bf16.vlgmr.msra.gmra.mxu1 %v12928_v22  ;;  %v10227_v50 = vpop.f32.mrf.mxu1  ;;  %10332 = vmatpush3.bf16.msra.mxu0 %v11819_v54  ;;  %v11822_v22 = vld [vmem:[%s15886_s1 + $0x458] ss:$12 sps:$4 sm:$0xff]   ;;  %v11841_v54 = vld [vmem:[%s15886_s1 + $0x500] ss:$12 sps:$4 sm:$0xff]  }
 0x17c   : > { %10352 = vmatpush3.bf16.msra.mxu1 %v11820_v57  ;;  %10333 = vmatprep.subr.bf16.mxu0 %v11821_v33 }
 0x17d   : > { %10353 = vmatprep.subr.bf16.mxu1 %v11822_v22  ;;  %v10228_v23 = vpop.f32.mrf.mxu1  ;;  %2817 = vmatprep.mubr.bf16.mxu1 %v12942_v25  ;;  %v11826_v25 = vld [vmem:[%s15886_s1 + $0x440] ss:$12 sps:$4 sm:$0xff]  }
 0x17e   : > { %v10229_v61 = vadd.f32 %v10228_v23, %v10227_v50  ;;  %v11840_v50 = vld [vmem:[%s15886_s1 + $0x320] ss:$12 sps:$4 sm:$0xff]  }
 0x17f   : > { %v10230_v62 = vpop.f32.mrf.mxu1  ;;  %10334 = vmatpush3.bf16.msra.mxu0 %v11823_v55  ;;  %v11844_v55 = vld [vmem:[%s15886_s1 + $0x4e8] ss:$12 sps:$4 sm:$0xff]  }
 0x180   : > { %10354 = vmatpush3.bf16.msra.mxu1 %v11824_v0  ;;  %10335 = vmatprep.subr.bf16.mxu0 %v11825_v2 }
 0x181   : > { %10355 = vmatprep.subr.bf16.mxu1 %v11826_v25  ;;  %v10231_v3 = vpop.f32.mrf.mxu1 }
 0x182   : > { %v10232_v37 = vadd.f32 %v10231_v3, %v10230_v62  ;;  %v11843_v62 = vld [vmem:[%s15886_s1 + $0x308] ss:$12 sps:$4 sm:$0xff]   ;;  %v10787_v3 = vld [vmem:[%s15890_s8 + $0x64] ss:$8 sps:$4 sm:$0xff]  }
 0x183   : > { %v10233_v52 = vpop.f32.mrf.mxu1  ;;  %2818 = vmatmul.mubr.bf16.gmra.mxu1 %v12964_v34  ;;  %10336 = vmatpush3.bf16.msra.mxu0 %v11827_v28  ;;  %v11845_v28 = vld [vmem:[%s15886_s1 + $0x4d0] ss:$12 sps:$4 sm:$0xff]  }
 0x184   : > { %10356 = vmatpush3.bf16.msra.mxu1 %v11828_v4  ;;  %10337 = vmatprep.subr.bf16.mxu0 %v11829_v5 }
 0x185   : > { %10357 = vmatprep.subr.bf16.mxu1 %v11830_v7  ;;  %v10234_v34 = vpop.f32.mrf.mxu1  ;;  %2907 = vmatprep.mubr.bf16.mxu1 %v12980_v42  ;;  %v10785_v7 = vld [vmem:[%s15890_s8 + $0x60] ss:$8 sps:$4 sm:$0xff]  }
 0x186   : > { %v10235_v12 = vadd.f32 %v10234_v34, %v10233_v52 }
 0x187   : > { %10338 = vmatpush3.bf16.msra.mxu0 %v11831_v63  ;;  %v10236_v46 = vpop.f32.mrf.mxu1 }
 0x188   : > { %10358 = vmatpush3.bf16.msra.mxu1 %v11832_v16  ;;  %2924 = vmatprep.subr.bf16.mxu0 %v15862_v41 }
 0x189   : > { %10359 = vmatprep.subr.bf16.mxu1 %v11833_v31  ;;  %v10237_v22 = vpop.f32.mrf.mxu1  ;;  %v10788_v31 = vld [vmem:[%s15890_s8 + $0x50] ss:$8 sps:$4 sm:$0xff]  }
 0x18a   : > { %v10255_v42 = vpop.f32.mrf.mxu0  ;;  %2859 = vmatmul.mubr.bf16.vlgmr.msra.gmra.mxu0 %v13054_v11  ;;  %v10238_v0 = vadd.f32 %v10237_v22, %v10236_v46  ;;  %v10799_v46 = vld [vmem:[%s15890_s8 + $0x24] ss:$8 sps:$4 sm:$0xff]   ;;  %v10803_v22 = vld [vmem:[%s15890_s8] ss:$8 sps:$4 sm:$0xff]  }
 0x18b   : > { %2925 = vmatpush1.bf16.msra.mxu0 %v11835_v18  ;;  %2866 = vmatprep.mubr.bf16.mxu0 %v13070_v60 }
 0x18c   : > { %10360 = vmatpush3.bf16.msra.mxu1 %v11834_v17  ;;  %v10256_v19 = vpop.f32.mrf.mxu0  ;;  %2926 = vmatprep.subr.bf16.mxu0 %v15862_v41  ;;  %v10793_v17 = vld [vmem:[%s15890_s8 + $0x44] ss:$8 sps:$4 sm:$0xff]  }
 0x18d   : > { %10361 = vmatprep.subr.bf16.mxu1 %v11836_v21  ;;  %v10257_v27 = vadd.f32 %v10256_v19, %v10255_v42  ;;  %v11847_v19 = vld [vmem:[%s15886_s1 + $0x4a0] ss:$12 sps:$4 sm:$0xff]  }
 0x18e   : > { %v10258_v11 = vpop.f32.mrf.mxu0 }
 0x18f   : > { %v2353_v29 = vadd.f32 %v10257_v27, %v10229_v61  ;;  %2927 = vmatpush1.bf16.msra.mxu0 %v11838_v30  ;;  %v10782_v61 = vld [vmem:[%s15890_s8 + $0x70] ss:$8 sps:$4 sm:$0xff]   ;;  %v11848_v30 = vld [vmem:[%s15886_s1 + $0x488] ss:$12 sps:$4 sm:$0xff]  }
 0x190   : > { %10362 = vmatpush3.bf16.msra.mxu1 %v11837_v36  ;;  %v10259_v40 = vpop.f32.mrf.mxu0  ;;  %2928 = vmatprep.subr.bf16.mxu0 %v15862_v41 }
 0x191   : > { %10363 = vmatprep.subr.bf16.mxu1 %v11839_v53  ;;  %v10260_v60 = vadd.f32 %v10259_v40, %v10258_v11  ;;  %v10791_v11 = vld [vmem:[%s15890_s8 + $0x40] ss:$8 sps:$4 sm:$0xff]   ;;  %v10794_v53 = vld [vmem:[%s15890_s8 + $0x30] ss:$8 sps:$4 sm:$0xff]  }
 0x192   : > { %2867 = vmatmul.mubr.bf16.gmra.mxu0 %v13094_v26  ;;  %v10261_v47 = vpop.f32.mrf.mxu0  ;;  %v11842_v26 = vld [vmem:[%s15886_s1 + $0x3c8] ss:$12 sps:$4 sm:$0xff]  }
 0x193   : > { %v2356_v48 = vadd.f32 %v10260_v60, %v10232_v37  ;;  %2929 = vmatpush1.bf16.msra.mxu0 %v11841_v54  ;;  %9214 = vmatprep.mubr.msk.bf16.mxu0 %vm2050_vm0, %v13114_v44  ;;  %v11850_v54 = vld [vmem:[%s15886_s1 + $0x578] ss:$12 sps:$4 sm:$0xff]  }
 0x194   : > { %10364 = vmatpush3.bf16.msra.mxu1 %v11840_v50  ;;  %2930 = vmatprep.subr.bf16.mxu0 %v15862_v41  ;;  %v10262_v57 = vpop.f32.mrf.mxu0  ;;  %v10802_v50 = vld [vmem:[%s15890_s8 + $0x14] ss:$8 sps:$4 sm:$0xff]  }
 0x195   : > { %10365 = vmatprep.subr.bf16.mxu1 %v11842_v26  ;;  %v10263_v33 = vadd.f32 %v10262_v57, %v10261_v47  ;;  %v11849_v47 = vld [vmem:[%s15886_s1 + $0x590] ss:$12 sps:$4 sm:$0xff]   ;;  %v10805_v57 = vld [vmem:[%s15890_s8 + $0x4] ss:$8 sps:$4 sm:$0xff]  }
 0x196   : > { %v10264_v23 = vpop.f32.mrf.mxu0  ;;  %v10800_v26 = vld [vmem:[%s15890_s8 + $0x10] ss:$8 sps:$4 sm:$0xff]  }
 0x197   : > { %2931 = vmatpush1.bf16.msra.mxu0 %v11844_v55  ;;  %v2361_v2 = vadd.f32 %v10263_v33, %v10235_v12  ;;  %v11851_v33 = vld [vmem:[%s15886_s1 + $0x560] ss:$12 sps:$4 sm:$0xff]  }
 0x198   : > { %10366 = vmatpush3.bf16.msra.mxu1 %v11843_v62  ;;  %2932 = vmatprep.subr.bf16.mxu0 %v15862_v41  ;;  %v10265_v44 = vpop.f32.mrf.mxu0  ;;  %v10806_v62 = vld [vmem:[%s15890_s8 + $0xf0] ss:$8 sps:$4 sm:$0xff]   ;;  %v10811_v55 = vld [vmem:[%s15890_s8 + $0xe4] ss:$8 sps:$4 sm:$0xff]  }
 0x199   : > { %3275 = vmatprep.subr.bf16.mxu1 %v10784_v20  ;;  %v10266_v25 = vadd.f32 %v10265_v44, %v10264_v23  ;;  %v10808_v23 = vld [vmem:[%s15890_s8 + $0xf4] ss:$8 sps:$4 sm:$0xff]  }
 0x19b   : > { %v10283_v52 = vpop.f32.mrf.mxu1  ;;  %2908 = vmatmul.mubr.bf16.vlgmr.msra.gmra.mxu1 %v13185_v10  ;;  %2933 = vmatpush1.bf16.msra.mxu0 %v11845_v28  ;;  %v2364_v4 = vadd.f32 %v10266_v25, %v10238_v0  ;;  %v10790_v10 = vld [vmem:[%s15890_s8 + $0x54] ss:$8 sps:$4 sm:$0xff]   ;;  %v10809_v25 = vld [vmem:[%s15890_s8 + $0xe0] ss:$8 sps:$4 sm:$0xff]  }
 0x19c   : > { %2915 = vmatprep.mubr.bf16.mxu1 %v13199_v32  ;;  %2934 = vmatprep.subr.bf16.mxu0 %v15862_v41  ;;  %v11846_v32 = vld [vmem:[%s15886_s1 + $0x4b8] ss:$12 sps:$4 sm:$0xff]  }
 0x19d   : > { %v10284_v5 = vpop.f32.mrf.mxu1  ;;  %3276 = vmatpush1.bf16.msra.mxu1 %v10782_v61  ;;  %v11852_v61 = vld [vmem:[%s15886_s1 + $0x548] ss:$12 sps:$4 sm:$0xff]  }
 0x19e   : > { %v10285_v34 = vadd.f32 %v10284_v5, %v10283_v52  ;;  %3277 = vmatprep.subr.bf16.mxu1 %v10787_v3  ;;  %v10814_v3 = vld [vmem:[%s15890_s8 + $0xd4] ss:$8 sps:$4 sm:$0xff]  }
 0x19f   : > { %v10286_v12 = vpop.f32.mrf.mxu1  ;;  %2935 = vmatpush1.bf16.msra.mxu0 %v11846_v32 }
 0x1a0   : > { %v2402_v63 = vadd.f32 %v10285_v34, %v2353_v29  ;;  %2936 = vmatprep.subr.bf16.mxu0 %v15862_v41 }
 0x1a1   : > { %v10287_v16 = vpop.f32.mrf.mxu1  ;;  %3278 = vmatpush1.bf16.msra.mxu1 %v10785_v7 }
 0x1a2   : > { %v10288_v42 = vadd.f32 %v10287_v16, %v10286_v12  ;;  %3279 = vmatprep.subr.bf16.mxu1 %v10790_v10  ;;  %v10815_v10 = vld [vmem:[%s15890_s8 + $0xc0] ss:$8 sps:$4 sm:$0xff]   ;;  %v10820_v12 = vld [vmem:[%s15890_s8 + $0xb4] ss:$8 sps:$4 sm:$0xff]  }
 0x1a3   : > { %2916 = vmatmul.mubr.bf16.gmra.mxu1 %v13217_v35  ;;  %v10289_v18 = vpop.f32.mrf.mxu1  ;;  %2937 = vmatpush1.bf16.msra.mxu0 %v11847_v19  ;;  %v10796_v35 = vld [vmem:[%s15890_s8 + $0x34] ss:$8 sps:$4 sm:$0xff]   ;;  %v10829_v19 = vld [vmem:[%s15890_s8 + $0x84] ss:$8 sps:$4 sm:$0xff]  }
 0x1a4   : > { %v2405_v21 = vadd.f32 %v10288_v42, %v2356_v48  ;;  %2938 = vmatprep.subr.bf16.mxu0 %v15862_v41  ;;  %v10797_v48 = vld [vmem:[%s15890_s8 + $0x20] ss:$8 sps:$4 sm:$0xff]  }
 0x1a5   : > { %v10290_v27 = vpop.f32.mrf.mxu1  ;;  %3280 = vmatpush1.bf16.msra.mxu1 %v10788_v31  ;;  %v10823_v31 = vld [vmem:[%s15890_s8 + $0xa4] ss:$8 sps:$4 sm:$0xff]   ;;  %v10821_v42 = vld [vmem:[%s15890_s8 + $0xa0] ss:$8 sps:$4 sm:$0xff]  }
 0x1a6   : > { %v10291_v29 = vadd.f32 %v10290_v27, %v10289_v18  ;;  %3281 = vmatprep.subr.bf16.mxu1 %v10793_v17  ;;  %v10826_v17 = vld [vmem:[%s15890_s8 + $0x94] ss:$8 sps:$4 sm:$0xff]   ;;  %v10824_v18 = vld [vmem:[%s15890_s8 + $0x90] ss:$8 sps:$4 sm:$0xff]   ;;  %v3035_v27 = vld [vmem:[%s15890_s8 + $0x160] sm:$0xff] }
 0x1a7   : > { %v10292_v36 = vpop.f32.mrf.mxu1  ;;  %2939 = vmatpush1.bf16.msra.mxu0 %v11848_v30 }
 0x1a8   : > { %v2410_v37 = vadd.f32 %v10291_v29, %v2361_v2  ;;  %2948 = vmatprep.subr.bf16.mxu0 %v15862_v41  ;;  %v9261_v29 = vcombine.high %v3035_v27, %v3035_v27 }
 0x1a9   : > { %v10293_v40 = vpop.f32.mrf.mxu1  ;;  %3282 = vmatpush1.bf16.msra.mxu1 %v10791_v11  ;;  %v13589_v11 = vld [vmem:[%s15891_s28 + $0x160] sm:$0xff] }
 0x1aa   : > { %v10294_v60 = vadd.f32 %v10293_v40, %v10292_v36  ;;  %3283 = vmatprep.subr.bf16.mxu1 %v10796_v35  ;;  %v9260_v35 = vcombine.low %v3035_v27, %v3035_v27  ;;  %v9310_v36 = vcombine.high %v13589_v11, %v13589_v11  ;;  %v10836_v40 = vld [vmem:[%s15890_s8 + $0x154] ss:$8 sps:$4 sm:$0xff]  }
 0x1ab   : > { %2949 = vmatpush2.bf16.msra.mxu0 %v11849_v47  ;;  %v10846_v47 = vld [vmem:[%s15890_s8 + $0x130] ss:$8 sps:$4 sm:$0xff]  }
 0x1ac   : > { %v2413_v20 = vadd.f32 %v10294_v60, %v2364_v4  ;;  %2950 = vmatprep.subr.bf16.mxu0 %v15862_v41  ;;  %v10817_v4 = vld [vmem:[%s15890_s8 + $0xc4] ss:$8 sps:$4 sm:$0xff]   ;;  %v3270_v30 = vsel %vm3268_vm1, %v9260_v35, 0  ;;  %v10840_v60 = vld [vmem:[%s15890_s8 + $0x140] ss:$8 sps:$4 sm:$0xff]  }
 0x1ad   : > { %3284 = vmatpush1.bf16.msra.mxu1 %v10794_v53  ;;  %v10842_v53 = vld [vmem:[%s15890_s8 + $0x144] ss:$8 sps:$4 sm:$0xff]  }
 0x1ae   : > { %3285 = vmatprep.subr.bf16.mxu1 %v10799_v46  ;;  %v10848_v46 = vld [vmem:[%s15890_s8 + $0x134] ss:$8 sps:$4 sm:$0xff]  }
 0x1af   : > { %2951 = vmatpush2.bf16.msra.mxu0 %v11850_v54  ;;  %v10858_v54 = vld [vmem:[%s15890_s8 + $0x110] ss:$8 sps:$4 sm:$0xff]  }
 0x1b0   : > { %2952 = vmatprep.subr.bf16.mxu0 %v15862_v41 }
 0x1b1   : > { %3286 = vmatpush1.bf16.msra.mxu1 %v10797_v48  ;;  %v10852_v48 = vld [vmem:[%s15890_s8 + $0x120] ss:$8 sps:$4 sm:$0xff]  }
 0x1b2   : > { %3287 = vmatprep.subr.bf16.mxu1 %v10802_v50  ;;  %v10860_v50 = vld [vmem:[%s15890_s8 + $0x114] ss:$8 sps:$4 sm:$0xff]  }
 0x1b3   : > { %2953 = vmatpush2.bf16.msra.mxu0 %v11851_v33  ;;  %v10864_v33 = vld [vmem:[%s15890_s8 + $0x100] ss:$8 sps:$4 sm:$0xff]  }
 0x1b4   : > { %2954 = vmatprep.subr.bf16.mxu0 %v15862_v41 }
 0x1b5   : > { %3288 = vmatpush1.bf16.msra.mxu1 %v10800_v26 }
 0x1b6   : > { %3289 = vmatprep.subr.bf16.mxu1 %v10805_v57  ;;  %v10866_v57 = vld [vmem:[%s15890_s8 + $0x104] ss:$8 sps:$4 sm:$0xff]  }
 0x1b7   : > { %2955 = vmatpush2.bf16.msra.mxu0 %v11852_v61 }
 0x1b8   : > { %9262 = vmatprep.subr.msk.bf16.mxu0 %vm3268_vm1, %v9261_v29 }
 0x1b9   : > { %3290 = vmatpush1.bf16.msra.mxu1 %v10803_v22 }
 0x1ba   : > { %3291 = vmatprep.subr.bf16.mxu1 %v10808_v23  ;;  %v2450_v0 = vpop.f32.mrf.mxu0  ;;  %2957 = vmatmul.mubr.bf16.vlgmr.msra.gmra.mxu0 %v13249_v51  ;;  %v10872_v23 = vld [vmem:[%s15892_s7 + $0x74] ss:$8 sps:$4 sm:$0xff]  }
 0x1bb   : > { %v13532_v2 = vadd.f32 %v2450_v0, %v2402_v63  ;;  %9215 = vmatprep.mubr.msk.bf16.mxu0 %vm2050_vm0, %v13267_v59  ;;  %v10812_v59 = vld [vmem:[%s15890_s8 + $0xd0] ss:$8 sps:$4 sm:$0xff]   ;;  %3331 = vmatpush1.bf16.msra.mxu0 %v3270_v30 }
 0x1bc   : > { %v2452_v44 = vpop.f32.mrf.mxu0  ;;  %3332 = vmatprep.subr.bf16.mxu0 %v10836_v40 }
 0x1bd   : > { %3292 = vmatpush2.bf16.msra.mxu1 %v10806_v62 }
 0x1be   : > { %3293 = vmatprep.subr.bf16.mxu1 %v10811_v55  ;;  %v2453_v52 = vpop.f32.mrf.mxu0 }
 0x1bf   : > { %v13542_v28 = vadd.f32 %v2453_v52, %v2405_v21  ;;  %v10827_v21 = vld [vmem:[%s15890_s8 + $0x80] ss:$8 sps:$4 sm:$0xff]  }
 0x1c0   : > { %v2455_v51 = vpop.f32.mrf.mxu0 }
 0x1c1   : > { %3294 = vmatpush2.bf16.msra.mxu1 %v10809_v25 }
 0x1c2   : > { %3295 = vmatprep.subr.bf16.mxu1 %v10814_v3  ;;  %v2458_v5 = vpop.f32.mrf.mxu0  ;;  %2965 = vmatmul.mubr.bf16.gmra.mxu0 %v13288_v6  ;;  %v10818_v6 = vld [vmem:[%s15890_s8 + $0xb0] ss:$8 sps:$4 sm:$0xff]  }
 0x1c3   : > { %v13551_v7 = vadd.f32 %v2458_v5, %v2410_v37  ;;  %3360 = vmatprep.mubr.bf16.mxu0 %v15862_v41  ;;  %v10834_v37 = vld [vmem:[%s15890_s8 + $0x150] ss:$8 sps:$4 sm:$0xff]  }
 0x1c4   : > { %v2460_v34 = vpop.f32.mrf.mxu0  ;;  %3333 = vmatpush1.bf16.msra.mxu0 %v10834_v37 }
 0x1c5   : > { %3296 = vmatpush2.bf16.msra.mxu1 %v10812_v59  ;;  %3334 = vmatprep.subr.bf16.mxu0 %v10842_v53 }
 0x1c6   : > { %3297 = vmatprep.subr.bf16.mxu1 %v10817_v4  ;;  %v2461_v32 = vpop.f32.mrf.mxu0 }
 0x1c7   : > { %v13560_v63 = vadd.f32 %v2461_v32, %v2413_v20  ;;  %v10854_v20 = vld [vmem:[%s15890_s8 + $0x124] ss:$8 sps:$4 sm:$0xff]   ;;  %s11857_s8 = sshll.u32 %s11919_s2, 4  ;;  %s11858_s8 = int_to_ptr.vmem [resolvable:$false] %s11857_s8 }
 0x1c8   : > { %v2463_v16 = vpop.f32.mrf.mxu0  ;;  %3335 = vmatpush1.bf16.msra.mxu0 %v10840_v60  ;;  %s11859_s6 = scalar_lea.vmem %s11858_s8, 32 }
 0x1c9   : > { %3298 = vmatpush2.bf16.msra.mxu1 %v10815_v10  ;;  %3336 = vmatprep.subr.bf16.mxu0 %v10848_v46 }
 0x1ca   : > { %3299 = vmatprep.subr.bf16.mxu1 %v10820_v12 }
 0x1cc   : > { %3337 = vmatpush1.bf16.msra.mxu0 %v10846_v47 }
 0x1cd   : > { %3300 = vmatpush2.bf16.msra.mxu1 %v10818_v6  ;;  %3338 = vmatprep.subr.bf16.mxu0 %v10854_v20 }
 0x1ce   : > { %3301 = vmatprep.subr.bf16.mxu1 %v10823_v31 }
 0x1d0   : > { %3339 = vmatpush1.bf16.msra.mxu0 %v10852_v48 }
 0x1d1   : > { %3302 = vmatpush2.bf16.msra.mxu1 %v10821_v42  ;;  %3340 = vmatprep.subr.bf16.mxu0 %v10860_v50 }
 0x1d2   : > { %3303 = vmatprep.subr.bf16.mxu1 %v10826_v17  ;;  %v2151_v17 = vadd.f32 %v13062_v14, %v13079_v9 }
 0x1d4   : > { %3341 = vmatpush1.bf16.msra.mxu0 %v10858_v54  ;;  %v2204_v29 = vadd.f32 %v13299_v13, %v2151_v17 }
 0x1d5   : > { %3304 = vmatpush2.bf16.msra.mxu1 %v10824_v18  ;;  %3342 = vmatprep.subr.bf16.mxu0 %v10866_v57 }
 0x1d6   : > { %3305 = vmatprep.subr.bf16.mxu1 %v10829_v19  ;;  %v2257_v50 = vadd.f32 %v13265_v24, %v2204_v29 }
 0x1d8   : > { %3343 = vmatpush1.bf16.msra.mxu0 %v10864_v33 }
 0x1d9   : > { %3306 = vmatpush2.bf16.msra.mxu1 %v10827_v21  ;;  %3657 = vmatprep.subr.bf16.mxu0 %v10872_v23 }
 0x1da   : > { %9311 = vmatprep.subr.msk.bf16.mxu1 %vm3268_vm1, %v9310_v36 }
 0x1db   : > { %v2599_v26 = vpop.f32.mrf.mxu1 }
 0x1dd   : > { %v2601_v22 = vpop.f32.mrf.mxu1 }
 0x1df   : > { %v2603_v61 = vpop.f32.mrf.mxu1 }
 0x1e1   : > { %v2605_v62 = vpop.f32.mrf.mxu1 }
 0x1e3   : > { %v2609_v55 = vpop.f32.mrf.mxu1 }
 0x1e5   : > { %v2611_v44 = vpop.f32.mrf.mxu1 }
 0x1e7   : > { %v2613_v3 = vpop.f32.mrf.mxu1 }
 0x1e9   : > { %v2615_v51 = vpop.f32.mrf.mxu1 }
 0x1fa   : > { %v2652_v0 = vpop.f32.mrf.mxu0 }
 0x1fb   : > { %v2653_v42 = vadd.f32 %v2652_v0, %v2599_v26 }
 0x1fc   : > { %v2654_v25 = vpop.f32.mrf.mxu0 }
 0x1fd   : > { %v2655_v19 = vadd.f32 %v2654_v25, %v2601_v22  ;;  %v2161_v22 = vadd.f32 %v13202_v15, %v13257_v58 }
 0x1fe   : > { %v2656_v52 = vpop.f32.mrf.mxu0 }
 0x1ff   : > { %v2657_v21 = vadd.f32 %v2656_v52, %v2603_v61  ;;  %v9309_v61 = vcombine.low %v13589_v11, %v13589_v11 }
 0x200   : > { %v2658_v59 = vpop.f32.mrf.mxu0 }
 0x201   : > { %v2659_v30 = vadd.f32 %v2658_v59, %v2605_v62  ;;  %v3652_v58 = vsel %vm3268_vm1, %v9309_v61, 0 }
 0x202   : > { %v2662_v34 = vpop.f32.mrf.mxu0 }
 0x203   : > { %v2663_v46 = vadd.f32 %v2662_v34, %v2609_v55 }
 0x204   : > { %v2664_v12 = vpop.f32.mrf.mxu0 }
 0x205   : > { %v2665_v14 = vadd.f32 %v2664_v12, %v2611_v44  ;;  %v2214_v44 = vadd.f32 %v13392_v1, %v2161_v22 }
 0x206   : > { %v2666_v16 = vpop.f32.mrf.mxu0 }
 0x207   : > { %v2667_v26 = vadd.f32 %v2666_v16, %v2613_v3  ;;  %v10837_v16 = vld [vmem:[%s15892_s7 + $0x150] ss:$8 sps:$4 sm:$0xff]  }
 0x208   : > { %v2668_v31 = vpop.f32.mrf.mxu0 }
 0x209   : > { %v2669_v25 = vadd.f32 %v2668_v31, %v2615_v51  ;;  %v2267_v51 = vadd.f32 %v13336_v43, %v2214_v44 }
 0x21b   : > { %v2705_v4 = vpop.f32.mrf.mxu1 }
 0x21c   : > { %v2706_v27 = vadd.f32 %v2705_v4, %v2653_v42 }
 0x21d   : > { %v2707_v5 = vpop.f32.mrf.mxu1 }
 0x21e   : > { %v2708_v37 = vadd.f32 %v2707_v5, %v2655_v19 }
 0x21f   : > { %v2709_v10 = vpop.f32.mrf.mxu1 }
 0x220   : > { %v2710_v40 = vadd.f32 %v2709_v10, %v2657_v21  ;;  %v10855_v21 = vld [vmem:[%s15892_s7 + $0x120] ss:$8 sps:$4 sm:$0xff]  }
 0x221   : > { %v2711_v32 = vpop.f32.mrf.mxu1 }
 0x222   : > { %v2712_v47 = vadd.f32 %v2711_v32, %v2659_v30 }
 0x223   : > { %v2715_v6 = vpop.f32.mrf.mxu1 }
 0x224   : > { %v2716_v62 = vadd.f32 %v2715_v6, %v2663_v46  ;;  %v10845_v6 = vld [vmem:[%s15892_s7 + $0x144] ss:$8 sps:$4 sm:$0xff]  }
 0x225   : > { %v2717_v35 = vpop.f32.mrf.mxu1 }
 0x227   : > { %v2719_v9 = vpop.f32.mrf.mxu1 }
 0x228   : > { %v2720_v52 = vadd.f32 %v2719_v9, %v2667_v26 }
 0x22a   : > { %v2758_v18 = vpop.f32.mrf.mxu0 }
 0x22b   : > { %v2759_v53 = vadd.f32 %v2758_v18, %v2706_v27  ;;  %v10857_v18 = vld [vmem:[%s15892_s7 + $0x124] ss:$8 sps:$4 sm:$0xff]   ;;  %v10863_v27 = vld [vmem:[%s15892_s7 + $0x114] ss:$8 sps:$4 sm:$0xff]  }
 0x22c   : > { %v2760_v36 = vpop.f32.mrf.mxu0 }
 0x22d   : > { %v2761_v20 = vadd.f32 %v2760_v36, %v2708_v37  ;;  %v2973_v57 = vmax.f32 %v13284_v8, %v2759_v53  ;;  %v2721_v8 = vpop.f32.mrf.mxu1  ;;  %v10869_v36 = vld [vmem:[%s15892_s7 + $0x104] ss:$8 sps:$4 sm:$0xff]   ;;  %v10867_v37 = vld [vmem:[%s15892_s7 + $0x100] ss:$8 sps:$4 sm:$0xff]  }
 0x22e   : > { %v2762_v60 = vpop.f32.mrf.mxu0  ;;  %v2722_v11 = vadd.f32 %v2721_v8, %v2669_v25 }
 0x22f   : > { %v2763_v48 = vadd.f32 %v2762_v60, %v2710_v40  ;;  %v2974_v55 = vmax.f32 %v13291_v39, %v2761_v20  ;;  %v10839_v39 = vld [vmem:[%s15892_s7 + $0x154] ss:$8 sps:$4 sm:$0xff]  }
 0x230   : > { %v2764_v54 = vpop.f32.mrf.mxu0 }
 0x231   : > { %v2976_v13 = vmax.f32 %v13307_v56, %v2763_v48  ;;  %v2765_v33 = vadd.f32 %v2764_v54, %v2712_v47  ;;  %v2718_v56 = vadd.f32 %v2717_v35, %v2665_v14  ;;  %v10861_v35 = vld [vmem:[%s15892_s7 + $0x110] ss:$8 sps:$4 sm:$0xff]  }
 0x232   : > { %v2768_v23 = vpop.f32.mrf.mxu0 }
 0x233   : > { %v13646_v24 = vpack.c.bf16 %v2976_v13, %v2973_v57  ;;  %v2977_v0 = vmax.f32 %v2257_v50, %v2765_v33  ;;  %v2769_v59 = vadd.f32 %v2768_v23, %v2716_v62 }
 0x234   : > { %v2770_v3 = vpop.f32.mrf.mxu0 }
 0x235   : > { %v13649_v4 = vpack.c.bf16 %v2977_v0, %v2974_v55  ;;  %v2771_v5 = vadd.f32 %v2770_v3, %v2718_v56  ;;  %v2979_v10 = vmax.f32 %v13324_v38, %v2769_v59  ;;  %v10843_v38 = vld [vmem:[%s15892_s7 + $0x140] ss:$8 sps:$4 sm:$0xff]  }
 0x236   : > { %v2772_v15 = vpop.f32.mrf.mxu0 }
 0x237   : > { %v2773_v34 = vadd.f32 %v2772_v15, %v2720_v52  ;;  %3307 = vmatprep.mubr.bf16.mxu1 %v13649_v4  ;;  %v2980_v31 = vmax.f32 %v13328_v45, %v2771_v5  ;;  %v10849_v45 = vld [vmem:[%s15892_s7 + $0x130] ss:$8 sps:$4 sm:$0xff]  }
 0x238   : > { %v2774_v1 = vpop.f32.mrf.mxu0  ;;  %3308 = vmatmul.mubr.bf16.vlgmr.msra.gmra.mxu1 %v13646_v24 }
 0x239   : > { %v2982_v12 = vmax.f32 %v13344_v49, %v2773_v34  ;;  %v2775_v32 = vadd.f32 %v2774_v1, %v2722_v11  ;;  %3713 = vmatpush1.bf16.msra.mxu1 %v3652_v58  ;;  %v10851_v49 = vld [vmem:[%s15892_s7 + $0x134] ss:$8 sps:$4 sm:$0xff]  }
 0x23a   : > { %3714 = vmatprep.subr.bf16.mxu1 %v10839_v39 }
 0x23b   : > { %v2983_v42 = vmax.f32 %v2267_v51, %v2775_v32  ;;  %v13667_v17 = vpack.c.bf16 %v2982_v12, %v2979_v10  ;;  %v10311_v19 = vpop.f32.mrf.mxu1 }
 0x23d   : > { %v13669_v43 = vpack.c.bf16 %v2983_v42, %v2980_v31  ;;  %3715 = vmatpush1.bf16.msra.mxu1 %v10837_v16  ;;  %v10312_v29 = vpop.f32.mrf.mxu1 }
 0x23e   : > { %3716 = vmatprep.subr.bf16.mxu1 %v10845_v6  ;;  %v10313_v61 = vadd.f32 %v10312_v29, %v10311_v19 }
 0x23f   : > { %3317 = vmatprep.mubr.bf16.mxu1 %v13669_v43  ;;  %v10314_v30 = vpop.f32.mrf.mxu1 }
 0x240   : > { %3318 = vmatmul.mubr.bf16.gmra.mxu1 %v13667_v17 }
 0x241   : > { %3717 = vmatpush1.bf16.msra.mxu1 %v10843_v38  ;;  %3742 = vmatprep.mubr.bf16.mxu1 %v15862_v41  ;;  %v10315_v40 = vpop.f32.mrf.mxu1 }
 0x242   : > { %3718 = vmatprep.subr.bf16.mxu1 %v10851_v49  ;;  %v10316_v0 = vadd.f32 %v10315_v40, %v10314_v30 }
 0x243   : > { %v10317_v53 = vpop.f32.mrf.mxu1 }
 0x245   : > { %3719 = vmatpush1.bf16.msra.mxu1 %v10849_v45  ;;  %v10318_v60 = vpop.f32.mrf.mxu1 }
 0x246   : > { %3720 = vmatprep.subr.bf16.mxu1 %v10857_v18  ;;  %v10319_v58 = vadd.f32 %v10318_v60, %v10317_v53  ;;  %v10878_v53 = vld [vmem:[%s15892_s7 + $0x54] ss:$8 sps:$4 sm:$0xff]  }
 0x247   : > { %v10320_v46 = vpop.f32.mrf.mxu1 }
 0x249   : > { %3721 = vmatpush1.bf16.msra.mxu1 %v10855_v21  ;;  %v10321_v20 = vpop.f32.mrf.mxu1  ;;  %v10870_v21 = vld [vmem:[%s15892_s7 + $0x70] ss:$8 sps:$4 sm:$0xff]  }
 0x24a   : > { %3722 = vmatprep.subr.bf16.mxu1 %v10863_v27  ;;  %v10339_v47 = vpop.f32.mrf.mxu0  ;;  %v10322_v34 = vadd.f32 %v10321_v20, %v10320_v46  ;;  %v10876_v20 = vld [vmem:[%s15892_s7 + $0x50] ss:$8 sps:$4 sm:$0xff]  }
 0x24c   : > { %v10340_v48 = vpop.f32.mrf.mxu0 }
 0x24d   : > { %3723 = vmatpush1.bf16.msra.mxu1 %v10861_v35  ;;  %v10341_v62 = vadd.f32 %v10340_v48, %v10339_v47  ;;  %v10875_v35 = vld [vmem:[%s15892_s7 + $0x64] ss:$8 sps:$4 sm:$0xff]  }
 0x24e   : > { %3724 = vmatprep.subr.bf16.mxu1 %v10869_v36  ;;  %v10342_v14 = vpop.f32.mrf.mxu0 }
 0x24f   : > { %v2861_v3 = vadd.f32 %v10341_v62, %v10313_v61  ;;  %v10897_v61 = vld [vmem:[%s15892_s7 + $0xe0] ss:$8 sps:$4 sm:$0xff]   ;;  %v10902_v62 = vld [vmem:[%s15892_s7 + $0xd4] ss:$8 sps:$4 sm:$0xff]  }
 0x250   : > { %v10343_v54 = vpop.f32.mrf.mxu0 }
 0x251   : > { %3725 = vmatpush1.bf16.msra.mxu1 %v10867_v37  ;;  %v10344_v44 = vadd.f32 %v10343_v54, %v10342_v14  ;;  %v10873_v37 = vld [vmem:[%s15892_s7 + $0x60] ss:$8 sps:$4 sm:$0xff]   ;;  %v10882_v14 = vld [vmem:[%s15892_s7 + $0x30] ss:$8 sps:$4 sm:$0xff]   ;;  %v10890_v54 = vld [vmem:[%s15892_s7 + $0x14] ss:$8 sps:$4 sm:$0xff]  }
 0x252   : > { %v10345_v57 = vpop.f32.mrf.mxu0 }
 0x253   : > { %v2864_v15 = vadd.f32 %v10344_v44, %v10316_v0  ;;  %v10905_v0 = vld [vmem:[%s15892_s7 + $0xc4] ss:$8 sps:$4 sm:$0xff]   ;;  %v10903_v44 = vld [vmem:[%s15892_s7 + $0xc0] ss:$8 sps:$4 sm:$0xff]  }
 0x254   : > { %v10346_v33 = vpop.f32.mrf.mxu0 }
 0x255   : > { %v10347_v39 = vadd.f32 %v10346_v33, %v10345_v57  ;;  %v10893_v57 = vld [vmem:[%s15892_s7 + $0x4] ss:$8 sps:$4 sm:$0xff]   ;;  %v10896_v33 = vld [vmem:[%s15892_s7 + $0xf4] ss:$8 sps:$4 sm:$0xff]  }
 0x256   : > { %v10348_v23 = vpop.f32.mrf.mxu0 }
 0x257   : > { %v2869_v16 = vadd.f32 %v10347_v39, %v10319_v58  ;;  %v10915_v58 = vld [vmem:[%s15892_s7 + $0x80] ss:$8 sps:$4 sm:$0xff]  }
 0x258   : > { %v10349_v8 = vpop.f32.mrf.mxu0  ;;  %v10918_v39 = vld [vmem:[%s15893_s25 + $0x250] ss:$16 sps:$4 sm:$0xff]  }
 0x259   : > { %v10350_v1 = vadd.f32 %v10349_v8, %v10348_v23  ;;  %v10899_v23 = vld [vmem:[%s15892_s7 + $0xe4] ss:$8 sps:$4 sm:$0xff]   ;;  %v10906_v8 = vld [vmem:[%s15892_s7 + $0xb0] ss:$8 sps:$4 sm:$0xff]  }
 0x25b   : > { %v10367_v50 = vpop.f32.mrf.mxu1  ;;  %v2872_v38 = vadd.f32 %v10350_v1, %v10322_v34  ;;  %v10924_v34 = vld [vmem:[%s15893_s25 + $0x230] ss:$16 sps:$4 sm:$0xff]   ;;  %v10927_v1 = vld [vmem:[%s15893_s25 + $0x238] ss:$16 sps:$4 sm:$0xff]  }
 0x25d   : > { %v10368_v9 = vpop.f32.mrf.mxu1 }
 0x25e   : > { %v10369_v25 = vadd.f32 %v10368_v9, %v10367_v50  ;;  %v10881_v50 = vld [vmem:[%s15892_s7 + $0x44] ss:$8 sps:$4 sm:$0xff]  }
 0x25f   : > { %v10370_v26 = vpop.f32.mrf.mxu1  ;;  %v10887_v9 = vld [vmem:[%s15892_s7 + $0x24] ss:$8 sps:$4 sm:$0xff]  }
 0x260   : > { %v2910_v11 = vadd.f32 %v10369_v25, %v2861_v3  ;;  %v10908_v25 = vld [vmem:[%s15892_s7 + $0xb4] ss:$8 sps:$4 sm:$0xff]   ;;  %v10911_v3 = vld [vmem:[%s15892_s7 + $0xa4] ss:$8 sps:$4 sm:$0xff]  }
 0x261   : > { %v10371_v13 = vpop.f32.mrf.mxu1 }
 0x262   : > { %v10372_v56 = vadd.f32 %v10371_v13, %v10370_v26  ;;  %v10888_v26 = vld [vmem:[%s15892_s7 + $0x10] ss:$8 sps:$4 sm:$0xff]   ;;  %v10891_v13 = vld [vmem:[%s15892_s7] ss:$8 sps:$4 sm:$0xff]  }
 0x263   : > { %v10373_v22 = vpop.f32.mrf.mxu1 }
 0x264   : > { %v2913_v10 = vadd.f32 %v10372_v56, %v2864_v15  ;;  %v10909_v56 = vld [vmem:[%s15892_s7 + $0xa0] ss:$8 sps:$4 sm:$0xff]   ;;  %v10917_v15 = vld [vmem:[%s15892_s7 + $0x84] ss:$8 sps:$4 sm:$0xff]  }
 0x265   : > { %v10374_v55 = vpop.f32.mrf.mxu1 }
 0x266   : > { %v10375_v6 = vadd.f32 %v10374_v55, %v10373_v22  ;;  %v10894_v22 = vld [vmem:[%s15892_s7 + $0xf0] ss:$8 sps:$4 sm:$0xff]  }
 0x267   : > { %v10376_v52 = vpop.f32.mrf.mxu1  ;;  %v10900_v55 = vld [vmem:[%s15892_s7 + $0xd0] ss:$8 sps:$4 sm:$0xff]  }
 0x268   : > { %v2918_v29 = vadd.f32 %v10375_v6, %v2869_v16  ;;  %v10938_v16 = vld [vmem:[%s15893_s25 + $0x1f4] ss:$16 sps:$4 sm:$0xff]   ;;  %v10941_v6 = vld [vmem:[%s15893_s25 + $0x1fc] ss:$16 sps:$4 sm:$0xff]  }
 0x269   : > { %v10377_v12 = vpop.f32.mrf.mxu1 }
 0x26a   : > { %v10378_v49 = vadd.f32 %v10377_v12, %v10376_v52  ;;  %v10914_v52 = vld [vmem:[%s15892_s7 + $0x94] ss:$8 sps:$4 sm:$0xff]   ;;  %v10930_v12 = vld [vmem:[%s15893_s25 + $0x210] ss:$16 sps:$4 sm:$0xff]  }
 0x27a   : > { %v2958_v59 = vpop.f32.mrf.mxu0 }
 0x27b   : > { %v2959_v51 = vadd.f32 %v2958_v59, %v2910_v11  ;;  %v10912_v59 = vld [vmem:[%s15892_s7 + $0x90] ss:$8 sps:$4 sm:$0xff]   ;;  %v10920_v11 = vld [vmem:[%s15893_s25 + $0x254] ss:$16 sps:$4 sm:$0xff]  }
 0x27c   : > { %v2960_v5 = vpop.f32.mrf.mxu0  ;;  %4179 = vmatprep.subr.bf16.mxu1 %v10920_v11 }
 0x27d   : > { %v2975_v45 = vmax.f32 %v13532_v2, %v2959_v51  ;;  %v2921_v2 = vadd.f32 %v10378_v49, %v2872_v38  ;;  %v10921_v5 = vld [vmem:[%s15893_s25 + $0x258] ss:$16 sps:$4 sm:$0xff]   ;;  %v10932_v51 = vld [vmem:[%s15893_s25 + $0x214] ss:$16 sps:$4 sm:$0xff]   ;;  %v10947_v49 = vld [vmem:[%s15893_s25 + $0x1dc] ss:$16 sps:$4 sm:$0xff]  }
 0x27e   : > { %v2961_v32 = vpop.f32.mrf.mxu0  ;;  %v10944_v38 = vld [vmem:[%s15893_s25 + $0x1d4] ss:$16 sps:$4 sm:$0xff]  }
 0x27f   : > { %v2962_v31 = vadd.f32 %v2961_v32, %v2913_v10  ;;  %v10935_v10 = vld [vmem:[%s15893_s25 + $0x21c] ss:$16 sps:$4 sm:$0xff]   ;;  %v10933_v32 = vld [vmem:[%s15893_s25 + $0x218] ss:$16 sps:$4 sm:$0xff]  }
 0x280   : > { %v2963_v42 = vpop.f32.mrf.mxu0 }
 0x281   : > { %v2978_v18 = vmax.f32 %v13542_v28, %v2962_v31  ;;  %v10936_v31 = vld [vmem:[%s15893_s25 + $0x1f0] ss:$16 sps:$4 sm:$0xff]   ;;  %v10939_v42 = vld [vmem:[%s15893_s25 + $0x1f8] ss:$16 sps:$4 sm:$0xff]  }
 0x282   : > { %v2966_v19 = vpop.f32.mrf.mxu0 }
 0x283   : > { %v2987_v27 = vpack.c.bf16 %v2978_v18, %v2975_v45  ;;  %v2967_v30 = vadd.f32 %v2966_v19, %v2918_v29  ;;  %v10942_v45 = vld [vmem:[%s15893_s25 + $0x1d0] ss:$16 sps:$4 sm:$0xff]   ;;  %v10945_v18 = vld [vmem:[%s15893_s25 + $0x1d8] ss:$16 sps:$4 sm:$0xff]   ;;  %v10950_v19 = vld [vmem:[%s15893_s25 + $0x1b4] ss:$16 sps:$4 sm:$0xff]  }
 0x284   : > { %v2968_v36 = vpop.f32.mrf.mxu0  ;;  %v10951_v29 = vld [vmem:[%s15893_s25 + $0x1b8] ss:$16 sps:$4 sm:$0xff]  }
 0x285   : > { %9263 = vmatmul.mubr.msk.bf16.vlgmr.msra.gmra.mxu0 %vm3261_vm2, %v2987_v27  ;;  %9312 = vmatmul.mubr.msk.bf16.vlgmr.msra.gmra.mxu1 %vm3261_vm2, %v2987_v27  ;;  %v2981_v46 = vmax.f32 %v13551_v7, %v2967_v30  ;;  %v10879_v7 = vld [vmem:[%s15892_s7 + $0x40] ss:$8 sps:$4 sm:$0xff]   ;;  %v10959_v36 = vld [vmem:[%s15893_s25 + $0x19c] ss:$16 sps:$4 sm:$0xff]  }
 0x286   : > { %3658 = vmatpush1.bf16.msra.mxu0 %v10870_v21  ;;  %v2969_v28 = vpop.f32.mrf.mxu0  ;;  %3370 = vmatprep.mubr.bf16.mxu0 %v15862_v41  ;;  %v10953_v21 = vld [vmem:[%s15893_s25 + $0x1bc] ss:$16 sps:$4 sm:$0xff]   ;;  %v10948_v27 = vld [vmem:[%s15893_s25 + $0x1b0] ss:$16 sps:$4 sm:$0xff]  }
 0x287   : > { %v2970_v40 = vadd.f32 %v2969_v28, %v2921_v2  ;;  %3659 = vmatprep.subr.bf16.mxu0 %v10875_v35  ;;  %3752 = vmatprep.mubr.bf16.mxu1 %v15862_v41  ;;  %v10956_v35 = vld [vmem:[%s15893_s25 + $0x194] ss:$16 sps:$4 sm:$0xff]   ;;  %v10954_v30 = vld [vmem:[%s15893_s25 + $0x190] ss:$16 sps:$4 sm:$0xff]   ;;  %v10957_v2 = vld [vmem:[%s15893_s25 + $0x198] ss:$16 sps:$4 sm:$0xff]  }
 0x288   : > { %v2971_v60 = vpop.f32.mrf.mxu0  ;;  %4180 = vmatpush1.bf16.msra.mxu1 %v10918_v39  ;;  %v10962_v28 = vld [vmem:[%s15893_s25 + $0x174] ss:$16 sps:$4 sm:$0xff]  }
 0x289   : > { %v2984_v47 = vmax.f32 %v13560_v63, %v2970_v40  ;;  %v10884_v63 = vld [vmem:[%s15892_s7 + $0x34] ss:$8 sps:$4 sm:$0xff]   ;;  %v10960_v40 = vld [vmem:[%s15893_s25 + $0x170] ss:$16 sps:$4 sm:$0xff]  }
 0x28a   : > { %3660 = vmatpush1.bf16.msra.mxu0 %v10873_v37  ;;  %v10965_v37 = vld [vmem:[%s15893_s25 + $0x17c] ss:$16 sps:$4 sm:$0xff]   ;;  %v9358_v60 = vld [vmem:[%s15893_s25 + $0x2d0] sm:$0x33] }
 0x28b   : > { %v2990_v48 = vpack.c.bf16 %v2984_v47, %v2981_v46  ;;  %3661 = vmatprep.subr.bf16.mxu0 %v10878_v53  ;;  %v10963_v53 = vld [vmem:[%s15893_s25 + $0x178] ss:$16 sps:$4 sm:$0xff]   ;;  %v9405_v47 = vcombine.high %v9358_v60, %v9358_v60 }
 0x28c   : > { %v9359_v46 = vld [vmem:[%s15893_s25 + $0x2d8] sm:$0x33] }
 0x28d   : > { %9264 = vmatmul.mubr.msk.bf16.gmra.mxu0 %vm3261_vm2, %v2990_v48  ;;  %9313 = vmatmul.mubr.msk.bf16.gmra.mxu1 %vm3261_vm2, %v2990_v48  ;;  %v9404_v48 = vcombine.low %v9358_v60, %v9358_v60  ;;  %vm8895_vm2 = vcmask 122880  }
 0x28e   : > { %3662 = vmatpush1.bf16.msra.mxu0 %v10876_v20  ;;  %3689 = vmatprep.mubr.bf16.mxu0 %v13649_v4  ;;  %v10885_v4 = vld [vmem:[%s15892_s7 + $0x20] ss:$8 sps:$4 sm:$0xff]   ;;  %v9407_v20 = vcombine.high %v9359_v46, %v9359_v46  ;;  %s15931_s7 = sld [smem:[#allocation36_spill]] }
 0x28f   : > { %3663 = vmatprep.subr.bf16.mxu0 %v10881_v50  ;;  %v9406_v50 = vcombine.low %v9359_v46, %v9359_v46 }
 0x292   : > { %3664 = vmatpush1.bf16.msra.mxu0 %v10879_v7  ;;  %v4168_v7 = vsel %vm4166_vm3, %v9404_v48, 0 }
 0x293   : > { %3665 = vmatprep.subr.bf16.mxu0 %v10884_v63  ;;  %v4174_v63 = vsel %vm4166_vm3, %v9406_v50, 0 }
 0x294   : > { %s8919_s30 = scalar_lea.hbm %s15931_s7, %s10206_s0 }
 0x296   : > { %3666 = vmatpush1.bf16.msra.mxu0 %v10882_v14  ;;  %v10972_v14 = vld [vmem:[%s15893_s25 + $0x2b4] ss:$16 sps:$4 sm:$0xff]  }
 0x297   : > { %3667 = vmatprep.subr.bf16.mxu0 %v10887_v9  ;;  %v10975_v9 = vld [vmem:[%s15893_s25 + $0x2bc] ss:$16 sps:$4 sm:$0xff]  }
 0x29a   : > { %3668 = vmatpush1.bf16.msra.mxu0 %v10885_v4  ;;  %v10970_v4 = vld [vmem:[%s15893_s25 + $0x2b0] ss:$16 sps:$4 sm:$0xff]  }
 0x29b   : > { %3669 = vmatprep.subr.bf16.mxu0 %v10890_v54  ;;  %v10973_v54 = vld [vmem:[%s15893_s25 + $0x2b8] ss:$16 sps:$4 sm:$0xff]  }
 0x29e   : > { %3670 = vmatpush1.bf16.msra.mxu0 %v10888_v26  ;;  %v10978_v26 = vld [vmem:[%s15893_s25 + $0x294] ss:$16 sps:$4 sm:$0xff]  }
 0x29f   : > { %3671 = vmatprep.subr.bf16.mxu0 %v10893_v57  ;;  %v10981_v57 = vld [vmem:[%s15893_s25 + $0x29c] ss:$16 sps:$4 sm:$0xff]  }
 0x2a2   : > { %3672 = vmatpush1.bf16.msra.mxu0 %v10891_v13  ;;  %v10976_v13 = vld [vmem:[%s15893_s25 + $0x290] ss:$16 sps:$4 sm:$0xff]  }
 0x2a3   : > { %3673 = vmatprep.subr.bf16.mxu0 %v10896_v33  ;;  %v10979_v33 = vld [vmem:[%s15893_s25 + $0x298] ss:$16 sps:$4 sm:$0xff]  }
 0x2a6   : > { %3674 = vmatpush2.bf16.msra.mxu0 %v10894_v22  ;;  %v10984_v22 = vld [vmem:[%s15893_s25 + $0x274] ss:$16 sps:$4 sm:$0xff]  }
 0x2a7   : > { %3675 = vmatprep.subr.bf16.mxu0 %v10899_v23  ;;  %v10982_v23 = vld [vmem:[%s15893_s25 + $0x270] ss:$16 sps:$4 sm:$0xff]  }
 0x2aa   : > { %3676 = vmatpush2.bf16.msra.mxu0 %v10897_v61  ;;  %v10985_v61 = vld [vmem:[%s15893_s25 + $0x278] ss:$16 sps:$4 sm:$0xff]  }
 0x2ab   : > { %3677 = vmatprep.subr.bf16.mxu0 %v10902_v62  ;;  %v10987_v62 = vld [vmem:[%s15893_s25 + $0x27c] ss:$16 sps:$4 sm:$0xff]  }
 0x2ae   : > { %3678 = vmatpush2.bf16.msra.mxu0 %v10900_v55  ;;  %v10990_v55 = vld [vmem:[%s15893_s25 + $0xe4] ss:$16 sps:$4 sm:$0xff]  }
 0x2af   : > { %3679 = vmatprep.subr.bf16.mxu0 %v10905_v0  ;;  %v10993_v0 = vld [vmem:[%s15893_s25 + $0xec] ss:$16 sps:$4 sm:$0xff]  }
 0x2b2   : > { %3680 = vmatpush2.bf16.msra.mxu0 %v10903_v44 }
 0x2b3   : > { %3681 = vmatprep.subr.bf16.mxu0 %v10908_v25 }
 0x2b6   : > { %3682 = vmatpush2.bf16.msra.mxu0 %v10906_v8 }
 0x2b7   : > { %3683 = vmatprep.subr.bf16.mxu0 %v10911_v3 }
 0x2ba   : > { %3684 = vmatpush2.bf16.msra.mxu0 %v10909_v56 }
 0x2bb   : > { %3685 = vmatprep.subr.bf16.mxu0 %v10914_v52 }
 0x2be   : > { %3686 = vmatpush2.bf16.msra.mxu0 %v10912_v59 }
 0x2bf   : > { %3687 = vmatprep.subr.bf16.mxu0 %v10917_v15 }
 0x2c2   : > { %3688 = vmatpush2.bf16.msra.mxu0 %v10915_v58 }
 0x2c5   : > { %3690 = vmatmul.mubr.bf16.vlgmr.msra.gmra.mxu0 %v13646_v24  ;;  %v10923_v24 = vld [vmem:[%s15893_s25 + $0x25c] ss:$16 sps:$4 sm:$0xff]  }
 0x2c6   : > { %3699 = vmatprep.mubr.bf16.mxu0 %v13669_v43  ;;  %v10929_v43 = vld [vmem:[%s15893_s25 + $0x23c] ss:$16 sps:$4 sm:$0xff]   ;;  %4232 = vmatprep.subr.bf16.mxu0 %v10923_v24 }
 0x2c7   : > { %4233 = vmatpush1.bf16.msra.mxu0 %v10921_v5 }
 0x2c8   : > { %4234 = vmatprep.subr.bf16.mxu0 %v10929_v43 }
 0x2cb   : > { %4235 = vmatpush1.bf16.msra.mxu0 %v10927_v1  ;;  %v3773_v1 = vlaneseq }
 0x2cc   : > { %4236 = vmatprep.subr.bf16.mxu0 %v10935_v10 }
 0x2cd   : > { %3700 = vmatmul.mubr.bf16.gmra.mxu0 %v13667_v17  ;;  %v10926_v17 = vld [vmem:[%s15893_s25 + $0x234] ss:$16 sps:$4 sm:$0xff]  }
 0x2ce   : > { %4181 = vmatprep.subr.bf16.mxu1 %v10926_v17 }
 0x2cf   : > { %4182 = vmatpush1.bf16.msra.mxu1 %v10924_v34  ;;  %4237 = vmatpush1.bf16.msra.mxu0 %v10933_v32 }
 0x2d0   : > { %4183 = vmatprep.subr.bf16.mxu1 %v10932_v51  ;;  %4238 = vmatprep.subr.bf16.mxu0 %v10941_v6 }
 0x2d3   : > { %4184 = vmatpush1.bf16.msra.mxu1 %v10930_v12  ;;  %4239 = vmatpush1.bf16.msra.mxu0 %v10939_v42  ;;  %v13956_v12 = vshrl.u32 %v3773_v1, 7  ;;  %v3771_v42 = vld [vmem:[%s15895_s29] sm:$0x3]  ;;  %s15925_s29 = sld [smem:[#allocation33_spill]] }
 0x2d4   : > { %4185 = vmatprep.subr.bf16.mxu1 %v10938_v16  ;;  %4240 = vmatprep.subr.bf16.mxu0 %v10947_v49 }
 0x2d5   : > { %15894 = vst [vmem:[#allocation11_spill] sm:$0xff] %v13956_v12  ;;  %v15861_v6 = vsub.s32 0, %v13956_v12 }
 0x2d7   : > { %4186 = vmatpush1.bf16.msra.mxu1 %v10936_v31  ;;  %4241 = vmatpush1.bf16.msra.mxu0 %v10945_v18 }
 0x2d8   : > { %4187 = vmatprep.subr.bf16.mxu1 %v10944_v38  ;;  %4242 = vmatprep.subr.bf16.mxu0 %v10953_v21 }
 0x2db   : > { %4188 = vmatpush1.bf16.msra.mxu1 %v10942_v45  ;;  %4243 = vmatpush1.bf16.msra.mxu0 %v10951_v29  ;;  %v15860_v45 = vsub.s32 1, %v13956_v12  ;;  %v3776_v29 = vrot.slane %v3771_v42, %v15861_v6 }
 0x2dc   : > { %4189 = vmatprep.subr.bf16.mxu1 %v10950_v19  ;;  %4244 = vmatprep.subr.bf16.mxu0 %v10959_v36 }
 0x2df   : > { %4190 = vmatpush1.bf16.msra.mxu1 %v10948_v27  ;;  %4245 = vmatpush1.bf16.msra.mxu0 %v10957_v2 }
 0x2e0   : > { %4191 = vmatprep.subr.bf16.mxu1 %v10956_v35  ;;  %4246 = vmatprep.subr.bf16.mxu0 %v10965_v37 }
 0x2e3   : > { %4192 = vmatpush1.bf16.msra.mxu1 %v10954_v30  ;;  %4247 = vmatpush1.bf16.msra.mxu0 %v10963_v53 }
 0x2e4   : > { %4193 = vmatprep.subr.bf16.mxu1 %v10962_v28  ;;  %9411 = vmatprep.subr.msk.bf16.mxu0 %vm4166_vm3, %v9407_v20  ;;  %v3780_v28 = vrot.slane %v3771_v42, %v15860_v45 }
 0x2e7   : > { %4194 = vmatpush1.bf16.msra.mxu1 %v10960_v40  ;;  %4257 = vmatpush2.bf16.msra.mxu0 %v4174_v63 }
 0x2e8   : > { %9408 = vmatprep.subr.msk.bf16.mxu1 %vm4166_vm3, %v9405_v47  ;;  %4258 = vmatprep.subr.bf16.mxu0 %v10975_v9 }
 0x2eb   : > { %4204 = vmatpush2.bf16.msra.mxu1 %v4168_v7  ;;  %4259 = vmatpush2.bf16.msra.mxu0 %v10973_v54 }
 0x2ec   : > { %4205 = vmatprep.subr.bf16.mxu1 %v10972_v14  ;;  %4260 = vmatprep.subr.bf16.mxu0 %v10981_v57 }
 0x2ef   : > { %4206 = vmatpush2.bf16.msra.mxu1 %v10970_v4  ;;  %4261 = vmatpush2.bf16.msra.mxu0 %v10979_v33 }
 0x2f0   : > { %4207 = vmatprep.subr.bf16.mxu1 %v10978_v26  ;;  %4262 = vmatprep.subr.bf16.mxu0 %v10987_v62 }
 0x2f3   : > { %4208 = vmatpush2.bf16.msra.mxu1 %v10976_v13  ;;  %4263 = vmatpush2.bf16.msra.mxu0 %v10985_v61 }
 0x2f4   : > { %4209 = vmatprep.subr.bf16.mxu1 %v10984_v22  ;;  %4584 = vmatprep.subr.bf16.mxu0 %v10993_v0 }
 0x2f7   : > { %4210 = vmatpush2.bf16.msra.mxu1 %v10982_v23 }
 0x2f8   : > { %4531 = vmatprep.subr.bf16.mxu1 %v10990_v55  ;;  %v3309_v44 = vpop.f32.mrf.mxu1 }
 0x2fa   : > { %v3311_v25 = vpop.f32.mrf.mxu1 }
 0x2fc   : > { %v3313_v8 = vpop.f32.mrf.mxu1 }
 0x2fe   : > { %v3315_v3 = vpop.f32.mrf.mxu1 }
 0x300   : > { %v3319_v52 = vpop.f32.mrf.mxu1 }
 0x302   : > { %v3321_v15 = vpop.f32.mrf.mxu1 }
 0x304   : > { %v3323_v39 = vpop.f32.mrf.mxu1 }
 0x306   : > { %v3325_v5 = vpop.f32.mrf.mxu1 }
 0x345   : > { %v3362_v56 = vpop.f32.mrf.mxu0  ;;  %v3744_v24 = vpop.f32.mrf.mxu1 }
 0x346   : > { %v3363_v38 = vadd.f32 %v3362_v56, %v3309_v44 }
 0x347   : > { %v3364_v59 = vpop.f32.mrf.mxu0  ;;  %v3746_v43 = vpop.f32.mrf.mxu1 }
 0x348   : > { %v3365_v21 = vadd.f32 %v3364_v59, %v3311_v25 }
 0x349   : > { %v3366_v58 = vpop.f32.mrf.mxu0  ;;  %v3748_v51 = vpop.f32.mrf.mxu1 }
 0x34a   : > { %v3367_v30 = vadd.f32 %v3366_v58, %v3313_v8 }
 0x34b   : > { %v3368_v11 = vpop.f32.mrf.mxu0  ;;  %v3750_v32 = vpop.f32.mrf.mxu1 }
 0x34c   : > { %v3369_v60 = vadd.f32 %v3368_v11, %v3315_v3 }
 0x34d   : > { %v3372_v17 = vpop.f32.mrf.mxu0  ;;  %v3754_v18 = vpop.f32.mrf.mxu1 }
 0x34e   : > { %v3373_v9 = vadd.f32 %v3372_v17, %v3319_v52 }
 0x34f   : > { %v3374_v34 = vpop.f32.mrf.mxu0  ;;  %v3756_v40 = vpop.f32.mrf.mxu1 }
 0x350   : > { %v3375_v4 = vadd.f32 %v3374_v34, %v3321_v15 }
 0x351   : > { %v3376_v10 = vpop.f32.mrf.mxu0  ;;  %v3758_v54 = vpop.f32.mrf.mxu1 }
 0x352   : > { %v3377_v25 = vadd.f32 %v3376_v10, %v3323_v39 }
 0x353   : > { %v3378_v16 = vpop.f32.mrf.mxu0  ;;  %v3760_v8 = vpop.f32.mrf.mxu1 }
 0x354   : > { %v3379_v59 = vadd.f32 %v3378_v16, %v3325_v5 }
 0x385   : > { %v3691_v31 = vpop.f32.mrf.mxu0 }
 0x386   : > { %v3745_v49 = vadd.f32 %v3744_v24, %v3691_v31 }
 0x387   : > { %v3693_v19 = vpop.f32.mrf.mxu0 }
 0x388   : > { %v3763_v27 = vmax.f32 %v3363_v38, %v3745_v49  ;;  %v3747_v35 = vadd.f32 %v3746_v43, %v3693_v19 }
 0x389   : > { %v3695_v36 = vpop.f32.mrf.mxu0 }
 0x38a   : > { %v3764_v2 = vmax.f32 %v3365_v21, %v3747_v35  ;;  %v3749_v37 = vadd.f32 %v3748_v51, %v3695_v36  ;;  %v3783_v46 = vadd.f32 %v3776_v29, %v3763_v27 }
 0x38b   : > { %v3697_v53 = vpop.f32.mrf.mxu0 }
 0x38c   : > { %v3765_v47 = vmax.f32 %v3367_v30, %v3749_v37  ;;  %v3751_v20 = vadd.f32 %v3750_v32, %v3697_v53  ;;  %v3784_v50 = vadd.f32 %v3780_v28, %v3764_v2  ;;  %v3791_v57 = vmax.f32 %v3783_v46, 0.0 }
 0x38d   : > { %v3701_v48 = vpop.f32.mrf.mxu0 }
 0x38e   : > { %v3785_v7 = vadd.f32 %v3776_v29, %v3765_v47  ;;  %v3766_v63 = vmax.f32 %v3369_v60, %v3751_v20  ;;  %v3755_v14 = vadd.f32 %v3754_v18, %v3701_v48  ;;  %v3792_v62 = vmax.f32 %v3784_v50, 0.0 }
 0x38f   : > { %v3703_v26 = vpop.f32.mrf.mxu0 }
 0x390   : > { %v3793_v13 = vmax.f32 %v3785_v7, 0.0  ;;  %v3786_v33 = vadd.f32 %v3780_v28, %v3766_v63  ;;  %v3757_v22 = vadd.f32 %v3756_v40, %v3703_v26  ;;  %v3767_v23 = vmax.f32 %v3373_v9, %v3755_v14  ;;  %v10988_v26 = vld [vmem:[%s15893_s25 + $0xe0] ss:$16 sps:$4 sm:$0xff]  }
 0x391   : > { %v3705_v61 = vpop.f32.mrf.mxu0 }
 0x392   : > { %v13967_v55 = vpack.c.bf16 %v3793_v13, %v3791_v57  ;;  %v3794_v0 = vmax.f32 %v3786_v33, 0.0  ;;  %v3768_v44 = vmax.f32 %v3375_v4, %v3757_v22  ;;  %v3759_v3 = vadd.f32 %v3758_v54, %v3705_v61  ;;  %v10991_v57 = vld [vmem:[%s15893_s25 + $0xe8] ss:$16 sps:$4 sm:$0xff]  }
 0x393   : > { %v3707_v56 = vpop.f32.mrf.mxu0  ;;  %v3787_v58 = vadd.f32 %v3776_v29, %v3767_v23 }
 0x394   : > { %v13969_v52 = vpack.c.bf16 %v3794_v0, %v3792_v62  ;;  %v3761_v15 = vadd.f32 %v3760_v8, %v3707_v56  ;;  %v3769_v11 = vmax.f32 %v3377_v25, %v3759_v3  ;;  %v3898_v24 = vshrl.u32 %v13967_v55, 16  ;;  %v10996_v25 = vld [vmem:[%s15893_s25 + $0xc4] ss:$16 sps:$4 sm:$0xff]   ;;  %v10999_v8 = vld [vmem:[%s15893_s25 + $0xcc] ss:$16 sps:$4 sm:$0xff]  }
 0x395   : > { %v3900_v17 = vshll.u32 %v13967_v55, 16  ;;  %v3788_v43 = vadd.f32 %v3780_v28, %v3768_v44  ;;  %v3795_v31 = vmax.f32 %v3787_v58, 0.0  ;;  %v4689_v2 = vrot.slane %v13967_v55, 1  ;;  %v11002_v58 = vld [vmem:[%s15893_s25 + $0xa4] ss:$16 sps:$4 sm:$0xff]  }
 0x396   : > { %v3770_v34 = vmax.f32 %v3379_v59, %v3761_v15  ;;  %v3910_v1 = vshrl.u32 %v13969_v52, 16  ;;  %v3912_v51 = vshll.u32 %v13969_v52, 16  ;;  %v3789_v39 = vadd.f32 %v3776_v29, %v3769_v11  ;;  %v10994_v59 = vld [vmem:[%s15893_s25 + $0xc0] ss:$16 sps:$4 sm:$0xff]   ;;  %v10997_v15 = vld [vmem:[%s15893_s25 + $0xc8] ss:$16 sps:$4 sm:$0xff]  }
 0x397   : > { %v5115_v38 = vrot.slane %v3898_v24, 1  ;;  %v5116_v49 = vrot.slane %v3900_v17, 2  ;;  %v3796_v18 = vmax.f32 %v3788_v43, 0.0  ;;  %v3902_v30 = vrot.slane %v3900_v17, 1  ;;  %v11005_v11 = vld [vmem:[%s15893_s25 + $0xac] ss:$16 sps:$4 sm:$0xff]  }
 0x398   : > { %v3790_v10 = vadd.f32 %v3780_v28, %v3770_v34  ;;  %v3914_v5 = vrot.slane %v3912_v51, 1  ;;  %v5122_v32 = vrot.slane %v3910_v1, 1  ;;  %v5123_v16 = vrot.slane %v3912_v51, 2  ;;  %v11003_v17 = vld [vmem:[%s15893_s25 + $0xa8] ss:$16 sps:$4 sm:$0xff]  }
 0x399   : > { %v3797_v42 = vmax.f32 %v3789_v39, 0.0  ;;  %v5117_v35 = vor.u32 %v5116_v49, %v5115_v38  ;;  %v5549_v47 = vrot.slane %v13967_v55, 2  ;;  %v5552_v54 = vrot.slane %v13969_v52, 2  ;;  %v11008_v34 = vld [vmem:[%s15893_s25 + $0x84] ss:$16 sps:$4 sm:$0xff]  }
 0x39a   : > { %v3798_v19 = vmax.f32 %v3790_v10, 0.0  ;;  %v5124_v21 = vor.u32 %v5123_v16, %v5122_v32  ;;  %v3915_v36 = vor.u32 %v3914_v5, %v3910_v1  ;;  %v3903_v13 = vor.u32 %v3902_v30, %v3898_v24  ;;  %v11000_v24 = vld [vmem:[%s15893_s25 + $0xa0] ss:$16 sps:$4 sm:$0xff]   ;;  %v11011_v1 = vld [vmem:[%s15893_s25 + $0x8c] ss:$16 sps:$4 sm:$0xff]  }
 0x39b   : > { %v13975_v27 = vpack.c.bf16 %v3797_v42, %v3795_v31  ;;  %v11006_v51 = vld [vmem:[%s15893_s25 + $0x80] ss:$16 sps:$4 sm:$0xff]   ;;  %v11009_v39 = vld [vmem:[%s15893_s25 + $0x88] ss:$16 sps:$4 sm:$0xff]   ;;  %v11014_v10 = vld [vmem:[%s15893_s25 + $0x64] ss:$16 sps:$4 sm:$0xff]  }
 0x39c   : > { %v13977_v29 = vpack.c.bf16 %v3798_v19, %v3796_v18  ;;  %v11017_v5 = vld [vmem:[%s15893_s25 + $0x6c] ss:$16 sps:$4 sm:$0xff]   ;;  %v11012_v32 = vld [vmem:[%s15893_s25 + $0x60] ss:$16 sps:$4 sm:$0xff]   ;;  %v11015_v16 = vld [vmem:[%s15893_s25 + $0x68] ss:$16 sps:$4 sm:$0xff]  }
 0x39d   : > { %v3905_v28 = vshll.u32 %v13975_v27, 16  ;;  %v3921_v37 = vshrl.u32 %v13975_v27, 16  ;;  %v13983_v40 = vrot.slane %v13975_v27, 1  ;;  %v13986_v53 = vrot.slane %v13975_v27, 2  ;;  %v11020_v31 = vld [vmem:[%s15893_s25 + $0x44] ss:$16 sps:$4 sm:$0xff]  }
 0x39e   : > { %v3917_v60 = vshll.u32 %v13977_v29, 16  ;;  %v3924_v46 = vshrl.u32 %v13977_v29, 16  ;;  %v13992_v20 = vrot.slane %v13977_v29, 2  ;;  %v11023_v42 = vld [vmem:[%s15893_s25 + $0x4c] ss:$16 sps:$4 sm:$0xff]  }
 0x39f   : > { %v3907_v48 = vrot.slane %v3905_v28, 1  ;;  %v5118_v50 = vrot.slane %v3921_v37, 1  ;;  %v5119_v7 = vrot.slane %v3905_v28, 2  ;;  %v13996_v63 = vsel %vm4688_vm4, %v4689_v2, %v13983_v40  ;;  %v11018_v38 = vld [vmem:[%s15893_s25 + $0x40] ss:$16 sps:$4 sm:$0xff]  }
 0x3a0   : > { %v3919_v14 = vrot.slane %v3917_v60, 1  ;;  %v5125_v9 = vrot.slane %v3924_v46, 1  ;;  %v5126_v4 = vrot.slane %v3917_v60, 2  ;;  %v14009_v22 = vsel %vm5548_vm6, %v5549_v47, %v13986_v53  ;;  %v11021_v49 = vld [vmem:[%s15893_s25 + $0x48] ss:$16 sps:$4 sm:$0xff]  }
 0x3a1   : > { %v14005_v33 = vor.u32 %v5119_v7, %v5118_v50  ;;  %v14016_v0 = vsel %vm5548_vm6, %v5552_v54, %v13992_v20  ;;  %v3908_v44 = vsel %vm3896_vm5, %v3903_v13, %v3907_v48  ;;  %v3923_v43 = vor.u32 %v3921_v37, %v3907_v48  ;;  %v11026_v18 = vld [vmem:[%s15893_s25 + $0x24] ss:$16 sps:$4 sm:$0xff]   ;;  %v11029_v19 = vld [vmem:[%s15893_s25 + $0x2c] ss:$16 sps:$4 sm:$0xff]   ;;  %v11030_v37 = vld [vmem:[%s15893_s25] ss:$16 sps:$4 sm:$0xff]  }
 0x3a2   : > { %v3920_v23 = vsel %vm3896_vm5, %v3915_v36, %v3919_v14  ;;  %v3926_v61 = vor.u32 %v3924_v46, %v3919_v14  ;;  %v14012_v62 = vor.u32 %v5126_v4, %v5125_v9  ;;  %v11032_v36 = vld [vmem:[%s15893_s25 + $0x4] ss:$16 sps:$4 sm:$0xff]   ;;  %v11035_v30 = vld [vmem:[%s15893_s25 + $0xc] ss:$16 sps:$4 sm:$0xff]   ;;  %v11033_v60 = vld [vmem:[%s15893_s25 + $0x8] ss:$16 sps:$4 sm:$0xff]  }
 0x3a3   : > { %9409 = vmatprep.mubr.msk.bf16.mxu1 %vm4159_vm7, %v3920_v23  ;;  %9412 = vmatprep.mubr.msk.bf16.mxu0 %vm4159_vm7, %v3920_v23  ;;  %v14029_v3 = vsel %vm5114_vm8, %v5117_v35, %v14005_v33  ;;  %v11027_v35 = vld [vmem:[%s15893_s25 + $0x28] ss:$16 sps:$4 sm:$0xff]   ;;  %v3847_v2 = vld [vmem:[%s15893_s25 + $0x160] sm:$0x33]  ;;  %v11045_v4 = vld [vmem:[%s15893_s25 + $0x14c] ss:$16 sps:$4 sm:$0xff]  }
 0x3a4   : > { %4212 = vmatmul.mubr.bf16.vlgmr.msra.gmra.mxu1 %v3908_v44  ;;  %4265 = vmatmul.mubr.bf16.vlgmr.msra.gmra.mxu0 %v3908_v44  ;;  %v14033_v56 = vsel %vm5114_vm8, %v5124_v21, %v14012_v62  ;;  %v11024_v21 = vld [vmem:[%s15893_s25 + $0x20] ss:$16 sps:$4 sm:$0xff]   ;;  %v3848_v28 = vld [vmem:[%s15893_s25 + $0x168] sm:$0x33]  ;;  %v9459_v46 = vcombine.high %v3847_v2, %v3847_v2  ;;  %v9458_v48 = vcombine.low %v3847_v2, %v3847_v2  ;;  %v11042_v9 = vld [vmem:[%s15893_s25 + $0x144] ss:$16 sps:$4 sm:$0xff]  }
 0x3a5   : > { %4532 = vmatpush1.bf16.msra.mxu1 %v10988_v26  ;;  %4585 = vmatpush1.bf16.msra.mxu0 %v10991_v57  ;;  %v9461_v47 = vcombine.high %v3848_v28, %v3848_v28  ;;  %v9460_v50 = vcombine.low %v3848_v28, %v3848_v28  ;;  %v11040_v54 = vld [vmem:[%s15893_s25 + $0x140] ss:$16 sps:$4 sm:$0xff]   ;;  %v11043_v26 = vld [vmem:[%s15893_s25 + $0x148] ss:$16 sps:$4 sm:$0xff]   ;;  %v11048_v57 = vld [vmem:[%s15893_s25 + $0x124] ss:$16 sps:$4 sm:$0xff]  }
 0x3a6   : > { %9410 = vmatprep.mubr.msk.bf16.mxu1 %vm4159_vm7, %v3926_v61  ;;  %9413 = vmatprep.mubr.msk.bf16.mxu0 %vm4159_vm7, %v3926_v61  ;;  %v4520_v7 = vsel %vm4166_vm3, %v9458_v48, 0  ;;  %v11051_v13 = vld [vmem:[%s15893_s25 + $0x12c] ss:$16 sps:$4 sm:$0xff]   ;;  %v11046_v23 = vld [vmem:[%s15893_s25 + $0x120] ss:$16 sps:$4 sm:$0xff]  }
 0x3a7   : > { %4533 = vmatprep.subr.bf16.mxu1 %v10996_v25  ;;  %4586 = vmatprep.subr.bf16.mxu0 %v10999_v8  ;;  %v4526_v14 = vsel %vm4166_vm3, %v9460_v50, 0  ;;  %v11049_v61 = vld [vmem:[%s15893_s25 + $0x128] ss:$16 sps:$4 sm:$0xff]   ;;  %v11054_v44 = vld [vmem:[%s15893_s25 + $0x104] ss:$16 sps:$4 sm:$0xff]  }
 0x3a8   : > { %v11057_v25 = vld [vmem:[%s15893_s25 + $0x10c] ss:$16 sps:$4 sm:$0xff]   ;;  %v11052_v8 = vld [vmem:[%s15893_s25 + $0x100] ss:$16 sps:$4 sm:$0xff]  }
 0x3a9   : > { %4534 = vmatpush1.bf16.msra.mxu1 %v10994_v59  ;;  %4587 = vmatpush1.bf16.msra.mxu0 %v10997_v15  ;;  %v11055_v59 = vld [vmem:[%s15893_s25 + $0x108] ss:$16 sps:$4 sm:$0xff]   ;;  %v11060_v15 = vld [vmem:[%s15893_s25 + $0x3c4] ss:$16 sps:$4 sm:$0xff]   ;;  %v11099_v2 = vld [vmem:[%s15893_s25 + $0x30c] ss:$16 sps:$4 sm:$0xff]  }
 0x3aa   : > { %4535 = vmatprep.subr.bf16.mxu1 %v11002_v58  ;;  %4588 = vmatprep.subr.bf16.mxu0 %v11005_v11  ;;  %v11063_v58 = vld [vmem:[%s15893_s25 + $0x3cc] ss:$16 sps:$4 sm:$0xff]   ;;  %v11058_v11 = vld [vmem:[%s15893_s25 + $0x3c0] ss:$16 sps:$4 sm:$0xff]  }
 0x3ab   : > { %v11094_v28 = vld [vmem:[%s15893_s25 + $0x300] ss:$16 sps:$4 sm:$0xff]   ;;  %v9513_v48 = vld [vmem:[%s15893_s25 + $0x448] sm:$0x33] }
 0x3ac   : > { %4222 = vmatmul.mubr.bf16.gmra.mxu1 %v3923_v43  ;;  %4275 = vmatmul.mubr.bf16.gmra.mxu0 %v3923_v43  ;;  %v11069_v43 = vld [vmem:[%s15893_s25 + $0x3ac] ss:$16 sps:$4 sm:$0xff]   ;;  %v11100_v50 = vld [vmem:[%s15893_s25 + $0x2e0] ss:$16 sps:$4 sm:$0xff]  }
 0x3ad   : > { %4536 = vmatpush1.bf16.msra.mxu1 %v11000_v24  ;;  %4589 = vmatpush1.bf16.msra.mxu0 %v11003_v17  ;;  %v11061_v24 = vld [vmem:[%s15893_s25 + $0x3c8] ss:$16 sps:$4 sm:$0xff]   ;;  %v11066_v17 = vld [vmem:[%s15893_s25 + $0x3a4] ss:$16 sps:$4 sm:$0xff]  }
 0x3ae   : > { %9463 = vmatprep.mubr.msk.bf16.mxu1 %vm4159_vm7, %v13969_v52  ;;  %9466 = vmatprep.mubr.msk.bf16.mxu0 %vm4159_vm7, %v13969_v52 }
 0x3af   : > { %4537 = vmatprep.subr.bf16.mxu1 %v11008_v34  ;;  %4590 = vmatprep.subr.bf16.mxu0 %v11011_v1  ;;  %v11064_v34 = vld [vmem:[%s15893_s25 + $0x3a0] ss:$16 sps:$4 sm:$0xff]   ;;  %v11067_v1 = vld [vmem:[%s15893_s25 + $0x3a8] ss:$16 sps:$4 sm:$0xff]  }
 0x3b1   : > { %4538 = vmatpush1.bf16.msra.mxu1 %v11006_v51  ;;  %4591 = vmatpush1.bf16.msra.mxu0 %v11009_v39  ;;  %v11075_v51 = vld [vmem:[%s15893_s25 + $0x38c] ss:$16 sps:$4 sm:$0xff]   ;;  %v14202_v39 = vrot.slane %v13977_v29, 1 }
 0x3b2   : > { %4539 = vmatprep.subr.bf16.mxu1 %v11014_v10  ;;  %4592 = vmatprep.subr.bf16.mxu0 %v11017_v5  ;;  %v11070_v10 = vld [vmem:[%s15893_s25 + $0x380] ss:$16 sps:$4 sm:$0xff]   ;;  %v11073_v5 = vld [vmem:[%s15893_s25 + $0x388] ss:$16 sps:$4 sm:$0xff]  }
 0x3b5   : > { %4540 = vmatpush1.bf16.msra.mxu1 %v11012_v32  ;;  %4593 = vmatpush1.bf16.msra.mxu0 %v11015_v16  ;;  %v4692_v32 = vrot.slane %v13969_v52, 1  ;;  %v11078_v16 = vld [vmem:[%s15893_s25 + $0x364] ss:$16 sps:$4 sm:$0xff]   ;;  %v11076_v52 = vld [vmem:[%s15893_s25 + $0x360] ss:$16 sps:$4 sm:$0xff]  }
 0x3b6   : > { %4541 = vmatprep.subr.bf16.mxu1 %v11020_v31  ;;  %4594 = vmatprep.subr.bf16.mxu0 %v11023_v42  ;;  %v11079_v42 = vld [vmem:[%s15893_s25 + $0x368] ss:$16 sps:$4 sm:$0xff]  }
 0x3b7   : > { %v4694_v31 = vsel %vm4688_vm4, %v4692_v32, %v14202_v39  ;;  %v11137_v32 = vld [vmem:[%s15893_s25 + $0x518] ss:$16 sps:$4 sm:$0xff]  }
 0x3b9   : > { %4542 = vmatpush1.bf16.msra.mxu1 %v11018_v38  ;;  %4595 = vmatpush1.bf16.msra.mxu0 %v11021_v49  ;;  %v11087_v38 = vld [vmem:[%s15893_s25 + $0x34c] ss:$16 sps:$4 sm:$0xff]   ;;  %v11082_v49 = vld [vmem:[%s15893_s25 + $0x340] ss:$16 sps:$4 sm:$0xff]  }
 0x3ba   : > { %4543 = vmatprep.subr.bf16.mxu1 %v11026_v18  ;;  %4596 = vmatprep.subr.bf16.mxu0 %v11029_v19  ;;  %v11085_v18 = vld [vmem:[%s15893_s25 + $0x348] ss:$16 sps:$4 sm:$0xff]   ;;  %v11090_v19 = vld [vmem:[%s15893_s25 + $0x324] ss:$16 sps:$4 sm:$0xff]  }
 0x3bd   : > { %4544 = vmatpush1.bf16.msra.mxu1 %v11024_v21  ;;  %4597 = vmatpush1.bf16.msra.mxu0 %v11027_v35  ;;  %v11093_v21 = vld [vmem:[%s15893_s25 + $0x32c] ss:$16 sps:$4 sm:$0xff]   ;;  %v11088_v35 = vld [vmem:[%s15893_s25 + $0x320] ss:$16 sps:$4 sm:$0xff]  }
 0x3be   : > { %4545 = vmatprep.subr.bf16.mxu1 %v11032_v36  ;;  %4598 = vmatprep.subr.bf16.mxu0 %v11035_v30  ;;  %v11091_v36 = vld [vmem:[%s15893_s25 + $0x328] ss:$16 sps:$4 sm:$0xff]   ;;  %v11096_v30 = vld [vmem:[%s15893_s25 + $0x304] ss:$16 sps:$4 sm:$0xff]  }
 0x3c1   : > { %4546 = vmatpush1.bf16.msra.mxu1 %v11030_v37  ;;  %4599 = vmatpush1.bf16.msra.mxu0 %v11033_v60  ;;  %v11097_v37 = vld [vmem:[%s15893_s25 + $0x308] ss:$16 sps:$4 sm:$0xff]   ;;  %v11102_v60 = vld [vmem:[%s15893_s25 + $0x2e4] ss:$16 sps:$4 sm:$0xff]  }
 0x3c2   : > { %9462 = vmatprep.subr.msk.bf16.mxu1 %vm4166_vm3, %v9459_v46  ;;  %9465 = vmatprep.subr.msk.bf16.mxu0 %vm4166_vm3, %v9461_v47  ;;  %v11105_v46 = vld [vmem:[%s15893_s25 + $0x2ec] ss:$16 sps:$4 sm:$0xff]   ;;  %v9512_v47 = vld [vmem:[%s15893_s25 + $0x440] sm:$0x33] }
 0x3c5   : > { %4556 = vmatpush2.bf16.msra.mxu1 %v4520_v7  ;;  %4609 = vmatpush2.bf16.msra.mxu0 %v4526_v14  ;;  %v11103_v7 = vld [vmem:[%s15893_s25 + $0x2e8] ss:$16 sps:$4 sm:$0xff]   ;;  %v9559_v14 = vcombine.high %v9512_v47, %v9512_v47 }
 0x3c6   : > { %4557 = vmatprep.subr.bf16.mxu1 %v11042_v9  ;;  %4610 = vmatprep.subr.bf16.mxu0 %v11045_v4  ;;  %v9561_v9 = vcombine.high %v9513_v48, %v9513_v48  ;;  %v9558_v4 = vcombine.low %v9512_v47, %v9512_v47  ;;  %v9613_v47 = vld [vmem:[%s15893_s25 + $0x5b8] sm:$0x33] }
 0x3c9   : > { %4558 = vmatpush2.bf16.msra.mxu1 %v11040_v54  ;;  %4611 = vmatpush2.bf16.msra.mxu0 %v11043_v26  ;;  %v9560_v54 = vcombine.low %v9513_v48, %v9513_v48  ;;  %v4934_v26 = vsel %vm4166_vm3, %v9558_v4, 0  ;;  %v11170_v48 = vld [vmem:[%s15893_s25 + $0x450] ss:$16 sps:$4 sm:$0xff]   ;;  %v9660_v4 = vcombine.low %v9613_v47, %v9613_v47 }
 0x3ca   : > { %4559 = vmatprep.subr.bf16.mxu1 %v11048_v57  ;;  %4612 = vmatprep.subr.bf16.mxu0 %v11051_v13  ;;  %v11112_v13 = vld [vmem:[%s15893_s25 + $0x424] ss:$16 sps:$4 sm:$0xff]  }
 0x3cb   : > { %v4940_v57 = vsel %vm4166_vm3, %v9560_v54, 0 }
 0x3cd   : > { %4560 = vmatpush2.bf16.msra.mxu1 %v11046_v23  ;;  %4613 = vmatpush2.bf16.msra.mxu0 %v11049_v61  ;;  %v11115_v23 = vld [vmem:[%s15893_s25 + $0x42c] ss:$16 sps:$4 sm:$0xff]   ;;  %v11110_v61 = vld [vmem:[%s15893_s25 + $0x420] ss:$16 sps:$4 sm:$0xff]  }
 0x3ce   : > { %4561 = vmatprep.subr.bf16.mxu1 %v11054_v44  ;;  %4614 = vmatprep.subr.bf16.mxu0 %v11057_v25  ;;  %v11113_v44 = vld [vmem:[%s15893_s25 + $0x428] ss:$16 sps:$4 sm:$0xff]   ;;  %v11118_v25 = vld [vmem:[%s15893_s25 + $0x404] ss:$16 sps:$4 sm:$0xff]  }
 0x3d1   : > { %4562 = vmatpush2.bf16.msra.mxu1 %v11052_v8  ;;  %4615 = vmatpush2.bf16.msra.mxu0 %v11055_v59  ;;  %v11121_v8 = vld [vmem:[%s15893_s25 + $0x40c] ss:$16 sps:$4 sm:$0xff]   ;;  %v11116_v59 = vld [vmem:[%s15893_s25 + $0x400] ss:$16 sps:$4 sm:$0xff]  }
 0x3d2   : > { %4945 = vmatprep.subr.bf16.mxu1 %v11060_v15  ;;  %4998 = vmatprep.subr.bf16.mxu0 %v11063_v58  ;;  %v11119_v15 = vld [vmem:[%s15893_s25 + $0x408] ss:$16 sps:$4 sm:$0xff]   ;;  %v11124_v58 = vld [vmem:[%s15893_s25 + $0x3e4] ss:$16 sps:$4 sm:$0xff]  }
 0x3d4   : > { %4564 = vmatmul.mubr.bf16.vlgmr.msra.gmra.mxu1 %v13967_v55  ;;  %4617 = vmatmul.mubr.bf16.vlgmr.msra.gmra.mxu0 %v13967_v55  ;;  %v11072_v55 = vld [vmem:[%s15893_s25 + $0x384] ss:$16 sps:$4 sm:$0xff]  }
 0x3d5   : > { %9464 = vmatprep.mubr.msk.bf16.mxu1 %vm4159_vm7, %v13977_v29  ;;  %9467 = vmatprep.mubr.msk.bf16.mxu0 %vm4159_vm7, %v13977_v29  ;;  %v11081_v29 = vld [vmem:[%s15893_s25 + $0x36c] ss:$16 sps:$4 sm:$0xff]  }
 0x3d6   : > { %4946 = vmatpush1.bf16.msra.mxu1 %v11058_v11  ;;  %4999 = vmatpush1.bf16.msra.mxu0 %v11061_v24  ;;  %v11127_v11 = vld [vmem:[%s15893_s25 + $0x3ec] ss:$16 sps:$4 sm:$0xff]   ;;  %v11122_v24 = vld [vmem:[%s15893_s25 + $0x3e0] ss:$16 sps:$4 sm:$0xff]  }
 0x3d7   : > { %4947 = vmatprep.subr.bf16.mxu1 %v11066_v17  ;;  %5000 = vmatprep.subr.bf16.mxu0 %v11069_v43  ;;  %v11125_v17 = vld [vmem:[%s15893_s25 + $0x3e8] ss:$16 sps:$4 sm:$0xff]   ;;  %v11130_v43 = vld [vmem:[%s15893_s25 + $0x534] ss:$16 sps:$4 sm:$0xff]  }
 0x3da   : > { %4948 = vmatpush1.bf16.msra.mxu1 %v11064_v34  ;;  %5001 = vmatpush1.bf16.msra.mxu0 %v11067_v1  ;;  %v11133_v34 = vld [vmem:[%s15893_s25 + $0x53c] ss:$16 sps:$4 sm:$0xff]   ;;  %v11128_v1 = vld [vmem:[%s15893_s25 + $0x530] ss:$16 sps:$4 sm:$0xff]  }
 0x3db   : > { %4949 = vmatprep.subr.bf16.mxu1 %v11072_v55  ;;  %5002 = vmatprep.subr.bf16.mxu0 %v11075_v51  ;;  %v11131_v55 = vld [vmem:[%s15893_s25 + $0x538] ss:$16 sps:$4 sm:$0xff]   ;;  %v11136_v51 = vld [vmem:[%s15893_s25 + $0x514] ss:$16 sps:$4 sm:$0xff]  }
 0x3dc   : > { %4574 = vmatmul.mubr.bf16.gmra.mxu1 %v13975_v27  ;;  %4627 = vmatmul.mubr.bf16.gmra.mxu0 %v13975_v27  ;;  %v11084_v27 = vld [vmem:[%s15893_s25 + $0x344] ss:$16 sps:$4 sm:$0xff]  }
 0x3dd   : > { %9563 = vmatprep.mubr.msk.bf16.mxu1 %vm4159_vm7, %v4694_v31  ;;  %9566 = vmatprep.mubr.msk.bf16.mxu0 %vm4159_vm7, %v4694_v31  ;;  %v11148_v31 = vld [vmem:[%s15893_s25 + $0x4d4] ss:$16 sps:$4 sm:$0xff]  }
 0x3de   : > { %4950 = vmatpush1.bf16.msra.mxu1 %v11070_v10  ;;  %5003 = vmatpush1.bf16.msra.mxu0 %v11073_v5  ;;  %v11139_v10 = vld [vmem:[%s15893_s25 + $0x51c] ss:$16 sps:$4 sm:$0xff]   ;;  %v11134_v5 = vld [vmem:[%s15893_s25 + $0x510] ss:$16 sps:$4 sm:$0xff]  }
 0x3df   : > { %4951 = vmatprep.subr.bf16.mxu1 %v11078_v16  ;;  %5004 = vmatprep.subr.bf16.mxu0 %v11081_v29  ;;  %v11140_v16 = vld [vmem:[%s15893_s25 + $0x4f0] ss:$16 sps:$4 sm:$0xff]   ;;  %v11143_v29 = vld [vmem:[%s15893_s25 + $0x4f8] ss:$16 sps:$4 sm:$0xff]  }
 0x3e2   : > { %4952 = vmatpush1.bf16.msra.mxu1 %v11076_v52  ;;  %5005 = vmatpush1.bf16.msra.mxu0 %v11079_v42  ;;  %v11151_v52 = vld [vmem:[%s15893_s25 + $0x4dc] ss:$16 sps:$4 sm:$0xff]   ;;  %v11146_v42 = vld [vmem:[%s15893_s25 + $0x4d0] ss:$16 sps:$4 sm:$0xff]  }
 0x3e3   : > { %4953 = vmatprep.subr.bf16.mxu1 %v11084_v27  ;;  %5006 = vmatprep.subr.bf16.mxu0 %v11087_v38  ;;  %v11149_v27 = vld [vmem:[%s15893_s25 + $0x4d8] ss:$16 sps:$4 sm:$0xff]   ;;  %v11152_v38 = vld [vmem:[%s15893_s25 + $0x4b0] ss:$16 sps:$4 sm:$0xff]  }
 0x3e6   : > { %4954 = vmatpush1.bf16.msra.mxu1 %v11082_v49  ;;  %5007 = vmatpush1.bf16.msra.mxu0 %v11085_v18  ;;  %v11155_v49 = vld [vmem:[%s15893_s25 + $0x4b8] ss:$16 sps:$4 sm:$0xff]   ;;  %v11160_v18 = vld [vmem:[%s15893_s25 + $0x494] ss:$16 sps:$4 sm:$0xff]  }
 0x3e7   : > { %4955 = vmatprep.subr.bf16.mxu1 %v11090_v19  ;;  %5008 = vmatprep.subr.bf16.mxu0 %v11093_v21  ;;  %v11163_v19 = vld [vmem:[%s15893_s25 + $0x49c] ss:$16 sps:$4 sm:$0xff]   ;;  %v11158_v21 = vld [vmem:[%s15893_s25 + $0x490] ss:$16 sps:$4 sm:$0xff]  }
 0x3ea   : > { %4956 = vmatpush1.bf16.msra.mxu1 %v11088_v35  ;;  %5009 = vmatpush1.bf16.msra.mxu0 %v11091_v36  ;;  %v11161_v35 = vld [vmem:[%s15893_s25 + $0x498] ss:$16 sps:$4 sm:$0xff]   ;;  %v11166_v36 = vld [vmem:[%s15893_s25 + $0x474] ss:$16 sps:$4 sm:$0xff]  }
 0x3eb   : > { %4957 = vmatprep.subr.bf16.mxu1 %v11096_v30  ;;  %5010 = vmatprep.subr.bf16.mxu0 %v11099_v2  ;;  %v11169_v30 = vld [vmem:[%s15893_s25 + $0x47c] ss:$16 sps:$4 sm:$0xff]   ;;  %v11164_v2 = vld [vmem:[%s15893_s25 + $0x470] ss:$16 sps:$4 sm:$0xff]  }
 0x3ee   : > { %4958 = vmatpush1.bf16.msra.mxu1 %v11094_v28  ;;  %5011 = vmatpush1.bf16.msra.mxu0 %v11097_v37  ;;  %v11167_v28 = vld [vmem:[%s15893_s25 + $0x478] ss:$16 sps:$4 sm:$0xff]   ;;  %v11172_v37 = vld [vmem:[%s15893_s25 + $0x454] ss:$16 sps:$4 sm:$0xff]  }
 0x3ef   : > { %4959 = vmatprep.subr.bf16.mxu1 %v11102_v60  ;;  %5012 = vmatprep.subr.bf16.mxu0 %v11105_v46  ;;  %v11175_v60 = vld [vmem:[%s15893_s25 + $0x45c] ss:$16 sps:$4 sm:$0xff]   ;;  %v9612_v46 = vld [vmem:[%s15893_s25 + $0x5b0] sm:$0x33] }
 0x3f2   : > { %4960 = vmatpush1.bf16.msra.mxu1 %v11100_v50  ;;  %5013 = vmatpush1.bf16.msra.mxu0 %v11103_v7  ;;  %v11173_v50 = vld [vmem:[%s15893_s25 + $0x458] ss:$16 sps:$4 sm:$0xff]   ;;  %v9659_v7 = vcombine.high %v9612_v46, %v9612_v46 }
 0x3f3   : > { %9562 = vmatprep.subr.msk.bf16.mxu1 %vm4166_vm3, %v9559_v14  ;;  %9565 = vmatprep.subr.msk.bf16.mxu0 %vm4166_vm3, %v9561_v9  ;;  %v9661_v14 = vcombine.high %v9613_v47, %v9613_v47  ;;  %v9658_v9 = vcombine.low %v9612_v46, %v9612_v46 }
 0x3f5   : > { %v5368_v54 = vsel %vm4166_vm3, %v9658_v9, 0  ;;  %v11255_v9 = vld [vmem:[%s15893_s25 + $0x70c] ss:$16 sps:$4 sm:$0xff]  }
 0x3f6   : > { %4970 = vmatpush2.bf16.msra.mxu1 %v4934_v26  ;;  %5023 = vmatpush2.bf16.msra.mxu0 %v4940_v57  ;;  %v5374_v26 = vsel %vm4166_vm3, %v9660_v4, 0  ;;  %v11182_v57 = vld [vmem:[%s15893_s25 + $0x594] ss:$16 sps:$4 sm:$0xff]   ;;  %v11250_v4 = vld [vmem:[%s15893_s25 + $0x700] ss:$16 sps:$4 sm:$0xff]  }
 0x3f7   : > { %4971 = vmatprep.subr.bf16.mxu1 %v11112_v13  ;;  %5024 = vmatprep.subr.bf16.mxu0 %v11115_v23  ;;  %v11185_v13 = vld [vmem:[%s15893_s25 + $0x59c] ss:$16 sps:$4 sm:$0xff]   ;;  %v11180_v23 = vld [vmem:[%s15893_s25 + $0x590] ss:$16 sps:$4 sm:$0xff]  }
 0x3fa   : > { %4972 = vmatpush2.bf16.msra.mxu1 %v11110_v61  ;;  %5025 = vmatpush2.bf16.msra.mxu0 %v11113_v44  ;;  %v11183_v61 = vld [vmem:[%s15893_s25 + $0x598] ss:$16 sps:$4 sm:$0xff]   ;;  %v11188_v44 = vld [vmem:[%s15893_s25 + $0x574] ss:$16 sps:$4 sm:$0xff]  }
 0x3fb   : > { %4973 = vmatprep.subr.bf16.mxu1 %v11118_v25  ;;  %5026 = vmatprep.subr.bf16.mxu0 %v11121_v8  ;;  %v11191_v25 = vld [vmem:[%s15893_s25 + $0x57c] ss:$16 sps:$4 sm:$0xff]   ;;  %v11186_v8 = vld [vmem:[%s15893_s25 + $0x570] ss:$16 sps:$4 sm:$0xff]  }
 0x3fe   : > { %4974 = vmatpush2.bf16.msra.mxu1 %v11116_v59  ;;  %5027 = vmatpush2.bf16.msra.mxu0 %v11119_v15  ;;  %v11189_v59 = vld [vmem:[%s15893_s25 + $0x578] ss:$16 sps:$4 sm:$0xff]   ;;  %v11194_v15 = vld [vmem:[%s15893_s25 + $0x554] ss:$16 sps:$4 sm:$0xff]  }
 0x3ff   : > { %4975 = vmatprep.subr.bf16.mxu1 %v11124_v58  ;;  %5028 = vmatprep.subr.bf16.mxu0 %v11127_v11  ;;  %v11197_v58 = vld [vmem:[%s15893_s25 + $0x55c] ss:$16 sps:$4 sm:$0xff]   ;;  %v11192_v11 = vld [vmem:[%s15893_s25 + $0x550] ss:$16 sps:$4 sm:$0xff]  }
 0x402   : > { %4976 = vmatpush2.bf16.msra.mxu1 %v11122_v24  ;;  %5029 = vmatpush2.bf16.msra.mxu0 %v11125_v17  ;;  %v11195_v24 = vld [vmem:[%s15893_s25 + $0x558] ss:$16 sps:$4 sm:$0xff]   ;;  %v11200_v17 = vld [vmem:[%s15893_s25 + $0x6a4] ss:$16 sps:$4 sm:$0xff]  }
 0x403   : > { %5379 = vmatprep.subr.bf16.mxu1 %v11130_v43  ;;  %5432 = vmatprep.subr.bf16.mxu0 %v11133_v34  ;;  %v11203_v43 = vld [vmem:[%s15893_s25 + $0x6ac] ss:$16 sps:$4 sm:$0xff]   ;;  %v11198_v34 = vld [vmem:[%s15893_s25 + $0x6a0] ss:$16 sps:$4 sm:$0xff]  }
 0x405   : > { %4978 = vmatmul.mubr.bf16.vlgmr.msra.gmra.mxu1 %v13996_v63  ;;  %5031 = vmatmul.mubr.bf16.vlgmr.msra.gmra.mxu0 %v13996_v63  ;;  %v11142_v63 = vld [vmem:[%s15893_s25 + $0x4f4] ss:$16 sps:$4 sm:$0xff]  }
 0x406   : > { %9564 = vmatprep.mubr.msk.bf16.mxu1 %vm4159_vm7, %v14202_v39  ;;  %9567 = vmatprep.mubr.msk.bf16.mxu0 %vm4159_vm7, %v14202_v39  ;;  %v11145_v39 = vld [vmem:[%s15893_s25 + $0x4fc] ss:$16 sps:$4 sm:$0xff]  }
 0x407   : > { %5380 = vmatpush1.bf16.msra.mxu1 %v11128_v1  ;;  %5433 = vmatpush1.bf16.msra.mxu0 %v11131_v55  ;;  %v11201_v1 = vld [vmem:[%s15893_s25 + $0x6a8] ss:$16 sps:$4 sm:$0xff]   ;;  %v11206_v55 = vld [vmem:[%s15893_s25 + $0x684] ss:$16 sps:$4 sm:$0xff]  }
 0x408   : > { %5381 = vmatprep.subr.bf16.mxu1 %v11136_v51  ;;  %5434 = vmatprep.subr.bf16.mxu0 %v11139_v10  ;;  %v11209_v51 = vld [vmem:[%s15893_s25 + $0x68c] ss:$16 sps:$4 sm:$0xff]   ;;  %v11204_v10 = vld [vmem:[%s15893_s25 + $0x680] ss:$16 sps:$4 sm:$0xff]  }
 0x40b   : > { %5382 = vmatpush1.bf16.msra.mxu1 %v11134_v5  ;;  %5435 = vmatpush1.bf16.msra.mxu0 %v11137_v32  ;;  %v11207_v5 = vld [vmem:[%s15893_s25 + $0x688] ss:$16 sps:$4 sm:$0xff]   ;;  %v11210_v32 = vld [vmem:[%s15893_s25 + $0x660] ss:$16 sps:$4 sm:$0xff]  }
 0x40c   : > { %5383 = vmatprep.subr.bf16.mxu1 %v11142_v63  ;;  %5436 = vmatprep.subr.bf16.mxu0 %v11145_v39  ;;  %v11213_v63 = vld [vmem:[%s15893_s25 + $0x668] ss:$16 sps:$4 sm:$0xff]   ;;  %v11218_v39 = vld [vmem:[%s15893_s25 + $0x644] ss:$16 sps:$4 sm:$0xff]  }
 0x40d   : > { %4988 = vmatmul.mubr.bf16.gmra.mxu1 %v13983_v40  ;;  %5041 = vmatmul.mubr.bf16.gmra.mxu0 %v13983_v40  ;;  %v11154_v40 = vld [vmem:[%s15893_s25 + $0x4b4] ss:$16 sps:$4 sm:$0xff]  }
 0x40e   : > { %9663 = vmatprep.mubr.msk.bf16.mxu1 %vm4159_vm7, %v14033_v56  ;;  %9666 = vmatprep.mubr.msk.bf16.mxu0 %vm4159_vm7, %v14033_v56  ;;  %v11157_v56 = vld [vmem:[%s15893_s25 + $0x4bc] ss:$16 sps:$4 sm:$0xff]  }
 0x40f   : > { %5384 = vmatpush1.bf16.msra.mxu1 %v11140_v16  ;;  %5437 = vmatpush1.bf16.msra.mxu0 %v11143_v29  ;;  %v11221_v16 = vld [vmem:[%s15893_s25 + $0x64c] ss:$16 sps:$4 sm:$0xff]   ;;  %v11216_v29 = vld [vmem:[%s15893_s25 + $0x640] ss:$16 sps:$4 sm:$0xff]  }
 0x410   : > { %5385 = vmatprep.subr.bf16.mxu1 %v11148_v31  ;;  %5438 = vmatprep.subr.bf16.mxu0 %v11151_v52  ;;  %v11219_v31 = vld [vmem:[%s15893_s25 + $0x648] ss:$16 sps:$4 sm:$0xff]   ;;  %v11222_v52 = vld [vmem:[%s15893_s25 + $0x620] ss:$16 sps:$4 sm:$0xff]  }
 0x413   : > { %5386 = vmatpush1.bf16.msra.mxu1 %v11146_v42  ;;  %5439 = vmatpush1.bf16.msra.mxu0 %v11149_v27  ;;  %v11225_v42 = vld [vmem:[%s15893_s25 + $0x628] ss:$16 sps:$4 sm:$0xff]   ;;  %v11230_v27 = vld [vmem:[%s15893_s25 + $0x604] ss:$16 sps:$4 sm:$0xff]  }
 0x414   : > { %5387 = vmatprep.subr.bf16.mxu1 %v11154_v40  ;;  %5440 = vmatprep.subr.bf16.mxu0 %v11157_v56  ;;  %v11233_v40 = vld [vmem:[%s15893_s25 + $0x60c] ss:$16 sps:$4 sm:$0xff]   ;;  %v11228_v56 = vld [vmem:[%s15893_s25 + $0x600] ss:$16 sps:$4 sm:$0xff]  }
 0x417   : > { %5388 = vmatpush1.bf16.msra.mxu1 %v11152_v38  ;;  %5441 = vmatpush1.bf16.msra.mxu0 %v11155_v49  ;;  %v11231_v38 = vld [vmem:[%s15893_s25 + $0x608] ss:$16 sps:$4 sm:$0xff]   ;;  %v11236_v49 = vld [vmem:[%s15893_s25 + $0x5e4] ss:$16 sps:$4 sm:$0xff]  }
 0x418   : > { %5389 = vmatprep.subr.bf16.mxu1 %v11160_v18  ;;  %5442 = vmatprep.subr.bf16.mxu0 %v11163_v19  ;;  %v11239_v18 = vld [vmem:[%s15893_s25 + $0x5ec] ss:$16 sps:$4 sm:$0xff]   ;;  %v11234_v19 = vld [vmem:[%s15893_s25 + $0x5e0] ss:$16 sps:$4 sm:$0xff]  }
 0x41b   : > { %5390 = vmatpush1.bf16.msra.mxu1 %v11158_v21  ;;  %5443 = vmatpush1.bf16.msra.mxu0 %v11161_v35  ;;  %v11237_v21 = vld [vmem:[%s15893_s25 + $0x5e8] ss:$16 sps:$4 sm:$0xff]   ;;  %v11242_v35 = vld [vmem:[%s15893_s25 + $0x5c4] ss:$16 sps:$4 sm:$0xff]  }
 0x41c   : > { %5391 = vmatprep.subr.bf16.mxu1 %v11166_v36  ;;  %5444 = vmatprep.subr.bf16.mxu0 %v11169_v30  ;;  %v11245_v36 = vld [vmem:[%s15893_s25 + $0x5cc] ss:$16 sps:$4 sm:$0xff]   ;;  %v9712_v30 = vld [vmem:[%s15893_s25 + $0x720] sm:$0x33] }
 0x41d   : > { %v9758_v47 = vcombine.low %v9712_v30, %v9712_v30 }
 0x41f   : > { %5392 = vmatpush1.bf16.msra.mxu1 %v11164_v2  ;;  %5445 = vmatpush1.bf16.msra.mxu0 %v11167_v28  ;;  %v9713_v2 = vld [vmem:[%s15893_s25 + $0x728] sm:$0x33]  ;;  %v11240_v28 = vld [vmem:[%s15893_s25 + $0x5c0] ss:$16 sps:$4 sm:$0xff]  }
 0x420   : > { %5393 = vmatprep.subr.bf16.mxu1 %v11172_v37  ;;  %5446 = vmatprep.subr.bf16.mxu0 %v11175_v60  ;;  %v11243_v37 = vld [vmem:[%s15893_s25 + $0x5c8] ss:$16 sps:$4 sm:$0xff]   ;;  %v9759_v60 = vcombine.high %v9712_v30, %v9712_v30  ;;  %v9761_v46 = vcombine.high %v9713_v2, %v9713_v2  ;;  %v11284_v30 = vld [vmem:[%s15898_s9 + $0x34] ss:$8 sps:$4 sm:$0xff]  }
 0x423   : > { %5394 = vmatpush1.bf16.msra.mxu1 %v11170_v48  ;;  %5447 = vmatpush1.bf16.msra.mxu0 %v11173_v50  ;;  %v9760_v48 = vcombine.low %v9713_v2, %v9713_v2  ;;  %v5794_v50 = vsel %vm4166_vm3, %v9758_v47, 0 }
 0x424   : > { %9662 = vmatprep.subr.msk.bf16.mxu1 %vm4166_vm3, %v9659_v7  ;;  %9665 = vmatprep.subr.msk.bf16.mxu0 %vm4166_vm3, %v9661_v14  ;;  %v11252_v14 = vld [vmem:[%s15893_s25 + $0x704] ss:$16 sps:$4 sm:$0xff]  }
 0x425   : > { %v5800_v7 = vsel %vm4166_vm3, %v9760_v48, 0  ;;  %v11285_v48 = vld [vmem:[%s15898_s9 + $0x20] ss:$8 sps:$4 sm:$0xff]  }
 0x427   : > { %5404 = vmatpush2.bf16.msra.mxu1 %v5368_v54  ;;  %5457 = vmatpush2.bf16.msra.mxu0 %v5374_v26  ;;  %v11253_v54 = vld [vmem:[%s15893_s25 + $0x708] ss:$16 sps:$4 sm:$0xff]   ;;  %v11258_v26 = vld [vmem:[%s15893_s25 + $0x6e4] ss:$16 sps:$4 sm:$0xff]  }
 0x428   : > { %5405 = vmatprep.subr.bf16.mxu1 %v11182_v57  ;;  %5458 = vmatprep.subr.bf16.mxu0 %v11185_v13  ;;  %v11261_v57 = vld [vmem:[%s15893_s25 + $0x6ec] ss:$16 sps:$4 sm:$0xff]   ;;  %v11256_v13 = vld [vmem:[%s15893_s25 + $0x6e0] ss:$16 sps:$4 sm:$0xff]  }
 0x42b   : > { %5406 = vmatpush2.bf16.msra.mxu1 %v11180_v23  ;;  %5459 = vmatpush2.bf16.msra.mxu0 %v11183_v61  ;;  %v11259_v23 = vld [vmem:[%s15893_s25 + $0x6e8] ss:$16 sps:$4 sm:$0xff]   ;;  %v11264_v61 = vld [vmem:[%s15893_s25 + $0x6c4] ss:$16 sps:$4 sm:$0xff]  }
 0x42c   : > { %5407 = vmatprep.subr.bf16.mxu1 %v11188_v44  ;;  %5460 = vmatprep.subr.bf16.mxu0 %v11191_v25  ;;  %v11267_v44 = vld [vmem:[%s15893_s25 + $0x6cc] ss:$16 sps:$4 sm:$0xff]   ;;  %v11262_v25 = vld [vmem:[%s15893_s25 + $0x6c0] ss:$16 sps:$4 sm:$0xff]  }
 0x42f   : > { %5408 = vmatpush2.bf16.msra.mxu1 %v11186_v8  ;;  %5461 = vmatpush2.bf16.msra.mxu0 %v11189_v59  ;;  %v11265_v8 = vld [vmem:[%s15893_s25 + $0x6c8] ss:$16 sps:$4 sm:$0xff]  }
 0x430   : > { %5409 = vmatprep.subr.bf16.mxu1 %v11194_v15  ;;  %5462 = vmatprep.subr.bf16.mxu0 %v11197_v58 }
 0x433   : > { %5410 = vmatpush2.bf16.msra.mxu1 %v11192_v11  ;;  %5463 = vmatpush2.bf16.msra.mxu0 %v11195_v24 }
 0x434   : > { %5805 = vmatprep.subr.bf16.mxu1 %v11200_v17  ;;  %5858 = vmatprep.subr.bf16.mxu0 %v11203_v43 }
 0x436   : > { %5412 = vmatmul.mubr.bf16.vlgmr.msra.gmra.mxu1 %v14029_v3  ;;  %5465 = vmatmul.mubr.bf16.vlgmr.msra.gmra.mxu0 %v14029_v3  ;;  %v11212_v3 = vld [vmem:[%s15893_s25 + $0x664] ss:$16 sps:$4 sm:$0xff]  }
 0x437   : > { %9664 = vmatprep.mubr.msk.bf16.mxu1 %vm4159_vm7, %v14012_v62  ;;  %9667 = vmatprep.mubr.msk.bf16.mxu0 %vm4159_vm7, %v14012_v62  ;;  %v11215_v62 = vld [vmem:[%s15893_s25 + $0x66c] ss:$16 sps:$4 sm:$0xff]  }
 0x438   : > { %5806 = vmatpush1.bf16.msra.mxu1 %v11198_v34  ;;  %5859 = vmatpush1.bf16.msra.mxu0 %v11201_v1 }
 0x439   : > { %5807 = vmatprep.subr.bf16.mxu1 %v11206_v55  ;;  %5860 = vmatprep.subr.bf16.mxu0 %v11209_v51 }
 0x43c   : > { %5808 = vmatpush1.bf16.msra.mxu1 %v11204_v10  ;;  %5861 = vmatpush1.bf16.msra.mxu0 %v11207_v5 }
 0x43d   : > { %5809 = vmatprep.subr.bf16.mxu1 %v11212_v3  ;;  %5862 = vmatprep.subr.bf16.mxu0 %v11215_v62 }
 0x43e   : > { %5422 = vmatmul.mubr.bf16.gmra.mxu1 %v14005_v33  ;;  %5475 = vmatmul.mubr.bf16.gmra.mxu0 %v14005_v33  ;;  %v11224_v33 = vld [vmem:[%s15893_s25 + $0x624] ss:$16 sps:$4 sm:$0xff]  }
 0x43f   : > { %9763 = vmatprep.mubr.msk.bf16.mxu1 %vm4159_vm7, %v14016_v0  ;;  %9766 = vmatprep.mubr.msk.bf16.mxu0 %vm4159_vm7, %v14016_v0  ;;  %v11227_v0 = vld [vmem:[%s15893_s25 + $0x62c] ss:$16 sps:$4 sm:$0xff]  }
 0x440   : > { %5810 = vmatpush1.bf16.msra.mxu1 %v11210_v32  ;;  %5863 = vmatpush1.bf16.msra.mxu0 %v11213_v63 }
 0x441   : > { %5811 = vmatprep.subr.bf16.mxu1 %v11218_v39  ;;  %5864 = vmatprep.subr.bf16.mxu0 %v11221_v16 }
 0x444   : > { %5812 = vmatpush1.bf16.msra.mxu1 %v11216_v29  ;;  %5865 = vmatpush1.bf16.msra.mxu0 %v11219_v31 }
 0x445   : > { %5813 = vmatprep.subr.bf16.mxu1 %v11224_v33  ;;  %5866 = vmatprep.subr.bf16.mxu0 %v11227_v0  ;;  %v11270_v33 = vld [vmem:[%s15898_s9 + $0x70] ss:$8 sps:$4 sm:$0xff]   ;;  %v11272_v0 = vld [vmem:[%s15898_s9 + $0x74] ss:$8 sps:$4 sm:$0xff]  }
 0x448   : > { %5814 = vmatpush1.bf16.msra.mxu1 %v11222_v52  ;;  %5867 = vmatpush1.bf16.msra.mxu0 %v11225_v42  ;;  %v11275_v52 = vld [vmem:[%s15898_s9 + $0x64] ss:$8 sps:$4 sm:$0xff]  }
 0x449   : > { %5815 = vmatprep.subr.bf16.mxu1 %v11230_v27  ;;  %5868 = vmatprep.subr.bf16.mxu0 %v11233_v40  ;;  %v11273_v40 = vld [vmem:[%s15898_s9 + $0x60] ss:$8 sps:$4 sm:$0xff]  }
 0x44c   : > { %5816 = vmatpush1.bf16.msra.mxu1 %v11228_v56  ;;  %5869 = vmatpush1.bf16.msra.mxu0 %v11231_v38  ;;  %v11278_v56 = vld [vmem:[%s15898_s9 + $0x54] ss:$8 sps:$4 sm:$0xff]  }
 0x44d   : > { %5817 = vmatprep.subr.bf16.mxu1 %v11236_v49  ;;  %5870 = vmatprep.subr.bf16.mxu0 %v11239_v18  ;;  %v11276_v18 = vld [vmem:[%s15898_s9 + $0x50] ss:$8 sps:$4 sm:$0xff]  }
 0x450   : > { %5818 = vmatpush1.bf16.msra.mxu1 %v11234_v19  ;;  %5871 = vmatpush1.bf16.msra.mxu0 %v11237_v21  ;;  %v11281_v19 = vld [vmem:[%s15898_s9 + $0x44] ss:$8 sps:$4 sm:$0xff]  }
 0x451   : > { %5819 = vmatprep.subr.bf16.mxu1 %v11242_v35  ;;  %5872 = vmatprep.subr.bf16.mxu0 %v11245_v36  ;;  %v11279_v36 = vld [vmem:[%s15898_s9 + $0x40] ss:$8 sps:$4 sm:$0xff]  }
 0x454   : > { %5820 = vmatpush1.bf16.msra.mxu1 %v11240_v28  ;;  %5873 = vmatpush1.bf16.msra.mxu0 %v11243_v37  ;;  %v11282_v37 = vld [vmem:[%s15898_s9 + $0x30] ss:$8 sps:$4 sm:$0xff]  }
 0x455   : > { %9762 = vmatprep.subr.msk.bf16.mxu1 %vm4166_vm3, %v9759_v60  ;;  %9765 = vmatprep.subr.msk.bf16.mxu0 %vm4166_vm3, %v9761_v46  ;;  %v11287_v60 = vld [vmem:[%s15898_s9 + $0x24] ss:$8 sps:$4 sm:$0xff]  }
 0x458   : > { %5830 = vmatpush2.bf16.msra.mxu1 %v5794_v50  ;;  %5883 = vmatpush2.bf16.msra.mxu0 %v5800_v7  ;;  %v11290_v50 = vld [vmem:[%s15898_s9 + $0x14] ss:$8 sps:$4 sm:$0xff]  }
 0x459   : > { %5831 = vmatprep.subr.bf16.mxu1 %v11252_v14  ;;  %5884 = vmatprep.subr.bf16.mxu0 %v11255_v9  ;;  %v11288_v9 = vld [vmem:[%s15898_s9 + $0x10] ss:$8 sps:$4 sm:$0xff]  }
 0x45c   : > { %5832 = vmatpush2.bf16.msra.mxu1 %v11250_v4  ;;  %5885 = vmatpush2.bf16.msra.mxu0 %v11253_v54  ;;  %v11293_v4 = vld [vmem:[%s15898_s9 + $0x4] ss:$8 sps:$4 sm:$0xff]  }
 0x45d   : > { %5833 = vmatprep.subr.bf16.mxu1 %v11258_v26  ;;  %5886 = vmatprep.subr.bf16.mxu0 %v11261_v57  ;;  %v11291_v57 = vld [vmem:[%s15898_s9] ss:$8 sps:$4 sm:$0xff]  }
 0x460   : > { %5834 = vmatpush2.bf16.msra.mxu1 %v11256_v13  ;;  %5887 = vmatpush2.bf16.msra.mxu0 %v11259_v23  ;;  %v11296_v13 = vld [vmem:[%s15898_s9 + $0xf4] ss:$8 sps:$4 sm:$0xff]  }
 0x461   : > { %5835 = vmatprep.subr.bf16.mxu1 %v11264_v61  ;;  %5888 = vmatprep.subr.bf16.mxu0 %v11267_v44  ;;  %v11294_v44 = vld [vmem:[%s15898_s9 + $0xf0] ss:$8 sps:$4 sm:$0xff]  }
 0x464   : > { %5836 = vmatpush2.bf16.msra.mxu1 %v11262_v25  ;;  %5889 = vmatpush2.bf16.msra.mxu0 %v11265_v8  ;;  %v14640_v59 = vpop.f32.mrf.mxu1  ;;  %v14642_v15 = vpop.f32.mrf.mxu0  ;;  %v11302_v25 = vld [vmem:[%s15898_s9 + $0xe4] ss:$8 sps:$4 sm:$0xff]  }
 0x465   : > { %6469 = vmatprep.subr.bf16.mxu0 %v11272_v0  ;;  %v11300_v0 = vld [vmem:[%s15898_s9 + $0xe0] ss:$8 sps:$4 sm:$0xff]  }
 0x466   : > { %v14644_v58 = vpop.f32.mrf.mxu1  ;;  %v14646_v11 = vpop.f32.mrf.mxu0 }
 0x467   : > { %5838 = vmatmul.mubr.bf16.vlgmr.msra.gmra.mxu1 %v14009_v22  ;;  %5891 = vmatmul.mubr.bf16.vlgmr.msra.gmra.mxu0 %v14009_v22 }
 0x468   : > { %9764 = vmatprep.mubr.msk.bf16.mxu1 %vm4159_vm7, %v13992_v20  ;;  %9767 = vmatprep.mubr.msk.bf16.mxu0 %vm4159_vm7, %v13992_v20  ;;  %v14648_v22 = vpop.f32.mrf.mxu1  ;;  %v14650_v24 = vpop.f32.mrf.mxu0 }
 0x469   : > { %6470 = vmatpush1.bf16.msra.mxu0 %v11270_v33 }
 0x46a   : > { %v14652_v17 = vpop.f32.mrf.mxu1  ;;  %v14654_v20 = vpop.f32.mrf.mxu0  ;;  %6471 = vmatprep.subr.bf16.mxu0 %v11275_v52 }
 0x46c   : > { %v14656_v43 = vpop.f32.mrf.mxu1 }
 0x46d   : > { %6472 = vmatpush1.bf16.msra.mxu0 %v11273_v40 }
 0x46e   : > { %v14660_v34 = vpop.f32.mrf.mxu1  ;;  %6473 = vmatprep.subr.bf16.mxu0 %v11278_v56 }
 0x46f   : > { %5848 = vmatmul.mubr.bf16.gmra.mxu1 %v13986_v53  ;;  %5901 = vmatmul.mubr.bf16.gmra.mxu0 %v13986_v53  ;;  %v14658_v53 = vpop.f32.mrf.mxu0 }
 0x470   : > { %5991 = vmatprep.mubr.bf16.mxu1 %v15862_v41  ;;  %15896 = vst [vmem:[#allocation12_spill] sm:$0xff] %v14658_v53  ;;  %v14664_v55 = vpop.f32.mrf.mxu1 }
 0x471   : > { %v14662_v1 = vpop.f32.mrf.mxu0  ;;  %6474 = vmatpush1.bf16.msra.mxu0 %v11276_v18 }
 0x472   : > { %15897 = vst [vmem:[#allocation13_spill] sm:$0xff] %v14662_v1  ;;  %v14668_v10 = vpop.f32.mrf.mxu1  ;;  %6475 = vmatprep.subr.bf16.mxu0 %v11281_v19 }
 0x473   : > { %v14666_v51 = vpop.f32.mrf.mxu0 }
 0x475   : > { %v14670_v5 = vpop.f32.mrf.mxu0  ;;  %6476 = vmatpush1.bf16.msra.mxu0 %v11279_v36 }
 0x476   : > { %6477 = vmatprep.subr.bf16.mxu0 %v11284_v30 }
 0x479   : > { %6478 = vmatpush1.bf16.msra.mxu0 %v11282_v37 }
 0x47a   : > { %6479 = vmatprep.subr.bf16.mxu0 %v11287_v60 }
 0x47d   : > { %6480 = vmatpush1.bf16.msra.mxu0 %v11285_v48 }
 0x47e   : > { %6481 = vmatprep.subr.bf16.mxu0 %v11290_v50 }
 0x481   : > { %6482 = vmatpush1.bf16.msra.mxu0 %v11288_v9 }
 0x482   : > { %6483 = vmatprep.subr.bf16.mxu0 %v11293_v4 }
 0x485   : > { %6484 = vmatpush1.bf16.msra.mxu0 %v11291_v57 }
 0x486   : > { %6485 = vmatprep.subr.bf16.mxu0 %v11296_v13 }
 0x489   : > { %6486 = vmatpush2.bf16.msra.mxu0 %v11294_v44 }
 0x48a   : > { %6487 = vmatprep.subr.bf16.mxu0 %v11302_v25 }
 0x48d   : > { %6488 = vmatpush2.bf16.msra.mxu0 %v11300_v0 }
 0x494   : > { %v14672_v3 = vpop.f32.mrf.mxu1  ;;  %v14674_v62 = vpop.f32.mrf.mxu0 }
 0x496   : > { %v14676_v32 = vpop.f32.mrf.mxu1  ;;  %v14678_v63 = vpop.f32.mrf.mxu0 }
 0x498   : > { %v14680_v39 = vpop.f32.mrf.mxu1  ;;  %v14682_v16 = vpop.f32.mrf.mxu0 }
 0x49a   : > { %v14684_v29 = vpop.f32.mrf.mxu1  ;;  %v14686_v31 = vpop.f32.mrf.mxu0 }
 0x49c   : > { %v14697_v42 = vpop.f32.mrf.mxu1  ;;  %v14699_v27 = vpop.f32.mrf.mxu0 }
 0x49d   : > { %15899 = vst [vmem:[#allocation14_spill] sm:$0xff] %v14699_v27 }
 0x49e   : > { %v14707_v38 = vpop.f32.mrf.mxu1  ;;  %v14709_v49 = vpop.f32.mrf.mxu0 }
 0x49f   : > { %15900 = vst [vmem:[#allocation15_spill] sm:$0xff] %v14709_v49 }
 0x4a0   : > { %v14717_v21 = vpop.f32.mrf.mxu1  ;;  %v14719_v35 = vpop.f32.mrf.mxu0 }
 0x4a2   : > { %v14727_v2 = vpop.f32.mrf.mxu1  ;;  %v14729_v28 = vpop.f32.mrf.mxu0 }
 0x4c5   : > { %v4979_v46 = vpop.f32.mrf.mxu1  ;;  %v5032_v47 = vpop.f32.mrf.mxu0 }
 0x4c7   : > { %v4981_v7 = vpop.f32.mrf.mxu1  ;;  %v5034_v14 = vpop.f32.mrf.mxu0 }
 0x4c9   : > { %v4983_v54 = vpop.f32.mrf.mxu1  ;;  %v5036_v26 = vpop.f32.mrf.mxu0 }
 0x4cb   : > { %v4985_v23 = vpop.f32.mrf.mxu1  ;;  %v5038_v61 = vpop.f32.mrf.mxu0 }
 0x4cd   : > { %v14761_v8 = vpop.f32.mrf.mxu1  ;;  %v14763_v33 = vpop.f32.mrf.mxu0 }
 0x4ce   : > { %15901 = vst [vmem:[#allocation16_spill] sm:$0xff] %v14763_v33  ;;  %v4619_v33 = vadd.f32 %v14674_v62, %v14642_v15 }
 0x4cf   : > { %v14768_v52 = vpop.f32.mrf.mxu1  ;;  %v14770_v40 = vpop.f32.mrf.mxu0 }
 0x4d0   : > { %15902 = vst [vmem:[#allocation17_spill] sm:$0xff] %v14770_v40  ;;  %v4566_v40 = vadd.f32 %v14672_v3, %v14640_v59  ;;  %v4625_v59 = vadd.f32 %v14686_v31, %v14654_v20 }
 0x4d1   : > { %v14772_v56 = vpop.f32.mrf.mxu1  ;;  %v14774_v18 = vpop.f32.mrf.mxu0 }
 0x4d2   : > { %15903 = vst [vmem:[#allocation18_spill] sm:$0xff] %v14774_v18  ;;  %v5051_v62 = vadd.f32 %v4979_v46, %v4566_v40  ;;  %v5053_v18 = vadd.f32 %v5032_v47, %v4619_v33  ;;  %v5058_v1 = vadd.f32 %v5038_v61, %v4625_v59 }
 0x4d3   : > { %v14776_v19 = vpop.f32.mrf.mxu1  ;;  %v14778_v36 = vpop.f32.mrf.mxu0 }
 0x4d4   : > { %15904 = vst [vmem:[#allocation19_spill] sm:$0xff] %v14778_v36  ;;  %v4623_v36 = vadd.f32 %v14682_v16, %v14650_v24 }
 0x4d9   : > { %v15917_v59 = vld [vmem:[#allocation18_spill] sm:$0xff] }
 0x4f6   : > { %v5413_v30 = vpop.f32.mrf.mxu1  ;;  %v5466_v37 = vpop.f32.mrf.mxu0 }
 0x4f7   : > { %v5485_v27 = vadd.f32 %v5413_v30, %v5051_v62 }
 0x4f8   : > { %v5415_v60 = vpop.f32.mrf.mxu1  ;;  %v5468_v48 = vpop.f32.mrf.mxu0 }
 0x4fa   : > { %v5417_v50 = vpop.f32.mrf.mxu1  ;;  %v5470_v9 = vpop.f32.mrf.mxu0 }
 0x4fc   : > { %v5419_v4 = vpop.f32.mrf.mxu1  ;;  %v5472_v57 = vpop.f32.mrf.mxu0 }
 0x4fd   : > { %v5492_v20 = vadd.f32 %v5472_v57, %v5058_v1 }
 0x4fe   : > { %v14780_v13 = vpop.f32.mrf.mxu1  ;;  %v14782_v44 = vpop.f32.mrf.mxu0 }
 0x4ff   : > { %15905 = vst [vmem:[#allocation20_spill] sm:$0xff] %v14782_v44  ;;  %v4570_v44 = vadd.f32 %v14680_v39, %v14648_v22  ;;  %v5057_v39 = vadd.f32 %v5036_v26, %v4623_v36 }
 0x500   : > { %v14784_v25 = vpop.f32.mrf.mxu1  ;;  %v14786_v0 = vpop.f32.mrf.mxu0 }
 0x501   : > { %15906 = vst [vmem:[#allocation21_spill] sm:$0xff] %v14784_v25  ;;  %15907 = vst [vmem:[#allocation22_spill] sm:$0xff] %v14786_v0  ;;  %v4568_v0 = vadd.f32 %v14676_v32, %v14644_v58  ;;  %v5055_v22 = vadd.f32 %v4983_v54, %v4570_v44  ;;  %v5491_v53 = vadd.f32 %v5470_v9, %v5057_v39 }
 0x502   : > { %v5427_v45 = vpop.f32.mrf.mxu1  ;;  %v14788_v6 = vpop.f32.mrf.mxu0 }
 0x503   : > { %15908 = vst [vmem:[#allocation23_spill] sm:$0xff] %v14788_v6  ;;  %v4621_v6 = vadd.f32 %v14678_v63, %v14646_v11  ;;  %v5052_v49 = vadd.f32 %v4981_v7, %v4568_v0  ;;  %v5487_v11 = vadd.f32 %v5466_v37, %v5053_v18  ;;  %v5489_v63 = vadd.f32 %v5417_v50, %v5055_v22  ;;  %v15915_v0 = vld [vmem:[#allocation13_spill] sm:$0xff]  ;;  %v15919_v22 = vld [vmem:[#allocation16_spill] sm:$0xff] }
 0x504   : > { %v14790_v41 = vpop.f32.mrf.mxu1  ;;  %v14792_v12 = vpop.f32.mrf.mxu0 }
 0x505   : > { %15909 = vst [vmem:[#allocation24_spill] sm:$0xff] %v14790_v41  ;;  %15910 = vst [vmem:[#allocation25_spill] sm:$0xff] %v14792_v12  ;;  %v4572_v12 = vadd.f32 %v14684_v29, %v14652_v17  ;;  %v5054_v24 = vadd.f32 %v5034_v14, %v4621_v6  ;;  %v5486_v17 = vadd.f32 %v5415_v60, %v5052_v49 }
 0x506   : > { %v4580_v6 = vadd.f32 %v14717_v21, %v14664_v55 }
 0x507   : > { %v5056_v16 = vadd.f32 %v4985_v23, %v4572_v12  ;;  %v5488_v29 = vadd.f32 %v5468_v48, %v5054_v24  ;;  %v4576_v12 = vadd.f32 %v14697_v42, %v14656_v43 }
 0x508   : > { %v5063_v21 = vadd.f32 %v14772_v56, %v4580_v6  ;;  %v15911_v56 = vld [vmem:[#allocation21_spill] sm:$0xff] }
 0x509   : > { %v5490_v41 = vadd.f32 %v5419_v4, %v5056_v16  ;;  %v5059_v55 = vadd.f32 %v14761_v8, %v4576_v12  ;;  %v15920_v16 = vld [vmem:[#allocation17_spill] sm:$0xff] }
 0x50b   : > { %v5493_v48 = vadd.f32 %v14780_v13, %v5059_v55  ;;  %v15916_v13 = vld [vmem:[#allocation15_spill] sm:$0xff]  ;;  %v11308_v55 = vld [vmem:[%s15898_s9 + $0xd4] ss:$8 sps:$4 sm:$0xff]  }
 0x50c   : > { %v15912_v9 = vld [vmem:[#allocation24_spill] sm:$0xff]  ;;  %6489 = vmatprep.subr.bf16.mxu0 %v11308_v55 }
 0x50d   : > { %v11362_v55 = vld [vmem:[%s15831_s10 + $0x64] ss:$8 sps:$4 sm:$0xff]  }
 0x527   : > { %v5839_v3 = vpop.f32.mrf.mxu1  ;;  %v5892_v15 = vpop.f32.mrf.mxu0 }
 0x528   : > { %v5911_v46 = vadd.f32 %v5839_v3, %v5485_v27  ;;  %v5913_v47 = vadd.f32 %v5892_v15, %v5487_v11  ;;  %v4578_v27 = vadd.f32 %v14707_v38, %v14660_v34  ;;  %v5497_v34 = vadd.f32 %v5427_v45, %v5063_v21  ;;  %v11309_v21 = vld [vmem:[%s15898_s9 + $0x150] ss:$8 sps:$4 sm:$0xff]  }
 0x529   : > { %v5841_v58 = vpop.f32.mrf.mxu1  ;;  %v5894_v32 = vpop.f32.mrf.mxu0  ;;  %v4635_v38 = vadd.f32 %v14729_v28, %v14670_v5  ;;  %v4631_v45 = vadd.f32 %v15916_v13, %v15915_v0  ;;  %v11342_v0 = vld [vmem:[%s15898_s9 + $0x190] ss:$8 sps:$4 sm:$0xff]   ;;  %v11344_v13 = vld [vmem:[%s15898_s9 + $0x194] ss:$8 sps:$4 sm:$0xff]  }
 0x52a   : > { %v5912_v7 = vadd.f32 %v5841_v58, %v5486_v17  ;;  %v5914_v14 = vadd.f32 %v5894_v32, %v5488_v29  ;;  %v5060_v60 = vadd.f32 %v14768_v52, %v4578_v27  ;;  %v15913_v52 = vld [vmem:[#allocation12_spill] sm:$0xff]  ;;  %v15921_v32 = vld [vmem:[#allocation23_spill] sm:$0xff] }
 0x52b   : > { %v5843_v31 = vpop.f32.mrf.mxu1  ;;  %v5896_v25 = vpop.f32.mrf.mxu0  ;;  %v5062_v58 = vadd.f32 %v15920_v16, %v4631_v45  ;;  %v11269_v27 = vld [vmem:[%s15927_s4] sm:$0x7f]   ;;  %v11347_v45 = vld [vmem:[%s15831_s10 + $0x174] ss:$8 sps:$4 sm:$0xff]   ;;  %s743_s4 = sand.u32 1, %s11905_s26  }
 0x52c   : > { %v5915_v54 = vadd.f32 %v5843_v31, %v5489_v63  ;;  %v5917_v26 = vadd.f32 %v5896_v25, %v5491_v53  ;;  %v4582_v53 = vadd.f32 %v14727_v2, %v14668_v10  ;;  %v4633_v10 = vadd.f32 %v14719_v35, %v14666_v51  ;;  %v15914_v25 = vld [vmem:[#allocation14_spill] sm:$0xff]  ;;  %v15918_v35 = vld [vmem:[#allocation19_spill] sm:$0xff]  ;;  %v15922_v63 = vld [vmem:[#allocation25_spill] sm:$0xff]  ;;  %s744_s24 = scalar_lea.vmem [#allocation2], %s743_s4 }
 0x52d   : > { %v5845_v23 = vpop.f32.mrf.mxu1  ;;  %v5898_v61 = vpop.f32.mrf.mxu0  ;;  %v5494_v50 = vadd.f32 %v15911_v56, %v5060_v60  ;;  %v5066_v15 = vadd.f32 %v15918_v35, %v4635_v38  ;;  %v11317_v60 = vld [vmem:[%s15898_s9 + $0x144] ss:$8 sps:$4 sm:$0xff]   ;;  %v11324_v38 = vld [vmem:[%s15898_s9 + $0xa0] ss:$8 sps:$4 sm:$0xff]   ;;  %s8921_s27 = sshll.u32 %s744_s24, 4  ;;  %s8922_s27 = int_to_ptr.vmem [resolvable:$true] %s8921_s27 }
 0x52e   : > { %v14814_v49 = vpack.c.bf16 %v5915_v54, %v5911_v46  ;;  %v14816_v33 = vpack.c.bf16 %v5917_v26, %v5913_v47  ;;  %v5916_v1 = vadd.f32 %v5845_v23, %v5490_v41  ;;  %v5918_v40 = vadd.f32 %v5898_v61, %v5492_v20  ;;  %v15923_v20 = vld [vmem:[#allocation20_spill] sm:$0xff]  ;;  %v15924_v46 = vld [vmem:[#allocation22_spill] sm:$0xff]  ;;  %s11853_s5 = scalar_lea.vmem %s8922_s27, 16  ;;  %p11860_p0 = scmp.lt.s32.totalorder %s8922_s27, %s11858_s8 }
 0x52f   : > { %v5849_v43 = vpop.f32.mrf.mxu1  ;;  %v5902_v42 = vpop.f32.mrf.mxu0  ;;  %v5064_v41 = vadd.f32 %v14776_v19, %v4582_v53  ;;  %v4629_v19 = vadd.f32 %v15914_v25, %v15913_v52  ;;  %v5065_v3 = vadd.f32 %v15917_v59, %v4633_v10  ;;  %v5500_v17 = vadd.f32 %v15922_v63, %v5066_v15  ;;  %v11268_v61 = vld [vmem:[%s15925_s29] sm:$0x7f]   ;;  %v11299_v53 = vld [vmem:[%s15898_s9 + $0x174] ss:$8 sps:$4 sm:$0xff]   ;;  %s8909_s29 = scalar_lea.sflag [#allocation3], %s743_s4  ;;  %p11854_p11 = scmp.ne.s32.totalorder %s8922_s27, %s11853_s5 }
 0x530   : > { %v5928_v18 = vpack.c.bf16 %v5916_v1, %v5912_v7  ;;  %v5930_v36 = vpack.c.bf16 %v5918_v40, %v5914_v14  ;;  %v5919_v57 = vadd.f32 %v5849_v43, %v5493_v48  ;;  %v5496_v47 = vadd.f32 %v15924_v46, %v5062_v58  ;;  %v11297_v43 = vld [vmem:[%s15898_s9 + $0x170] ss:$8 sps:$4 sm:$0xff]   ;;  %v11320_v48 = vld [vmem:[%s15898_s9 + $0xb4] ss:$8 sps:$4 sm:$0xff]   ;;  %v11329_v56 = vld [vmem:[%s15898_s9 + $0x124] ss:$8 sps:$4 sm:$0xff]   ;;  %p11861_p1 = scmp.lt.s32.totalorder %s11859_s6, %s11853_s5 }
 0x531   : > { %v5851_v30 = vpop.f32.mrf.mxu1  ;;  %v5904_v37 = vpop.f32.mrf.mxu0  ;;  %v5498_v4 = vadd.f32 %v15912_v9, %v5064_v41  ;;  %v5061_v39 = vadd.f32 %v15919_v22, %v4629_v19  ;;  %v5499_v11 = vadd.f32 %v15921_v32, %v5065_v3  ;;  %v15926_v40 = vmov 0   ;;  %v11318_v41 = vld [vmem:[%s15898_s9 + $0xb0] ss:$8 sps:$4 sm:$0xff]   ;;  %v11323_v10 = vld [vmem:[%s15898_s9 + $0x134] ss:$8 sps:$4 sm:$0xff]   ;;  %p11855_p12 = pnand %p11854_p11, %p12083_p5 }
 0x532   : > { %v5920_v5 = vadd.f32 %v5851_v30, %v5494_v50  ;;  %v5922_v7 = vadd.f32 %v5904_v37, %v5496_v47  ;;  %v11314_v30 = vld [vmem:[%s15898_s9 + $0xc4] ss:$8 sps:$4 sm:$0xff]   ;;  %v11315_v37 = vld [vmem:[%s15898_s9 + $0x140] ss:$8 sps:$4 sm:$0xff]   ;;  %v11330_v50 = vld [vmem:[%s15898_s9 + $0x90] ss:$8 sps:$4 sm:$0xff]   ;;  %p11862_p2 = por %p11861_p1, %p11860_p0 }
 0x533   : > { %v5853_v2 = vpop.f32.mrf.mxu1  ;;  %v5906_v8 = vpop.f32.mrf.mxu0  ;;  %v5495_v31 = vadd.f32 %v15923_v20, %v5061_v39  ;;  %v11332_v9 = vld [vmem:[%s15898_s9 + $0x94] ss:$8 sps:$4 sm:$0xff]   ;;  %v11341_v52 = vld [vmem:[%s15898_s9 + $0x104] ss:$8 sps:$4 sm:$0xff]   ;;  %v11336_v25 = vld [vmem:[%s15898_s9 + $0x80] ss:$8 sps:$4 sm:$0xff]   ;;  %p11856_p13 = pneg %p11855_p12 }
 0x534   : > { %v5923_v44 = vadd.f32 %v5853_v2, %v5497_v34  ;;  %v5925_v54 = vadd.f32 %v5906_v8, %v5499_v11  ;;  %v11321_v34 = vld [vmem:[%s15898_s9 + $0x130] ss:$8 sps:$4 sm:$0xff]   ;;  %v11326_v2 = vld [vmem:[%s15898_s9 + $0xa4] ss:$8 sps:$4 sm:$0xff]   ;;  %v11327_v8 = vld [vmem:[%s15898_s9 + $0x120] ss:$8 sps:$4 sm:$0xff]  }
 0x535   : > { %v5855_v51 = vpop.f32.mrf.mxu1  ;;  %v5908_v24 = vpop.f32.mrf.mxu0  ;;  %v5921_v6 = vadd.f32 %v5902_v42, %v5495_v31  ;;  %v11303_v42 = vld [vmem:[%s15898_s9 + $0x160] ss:$8 sps:$4 sm:$0xff]   ;;  %v11350_v59 = vld [vmem:[%s15898_s9 + $0x184] ss:$8 sps:$4 sm:$0xff]   ;;  %v11345_v47 = vld [vmem:[%s15831_s10 + $0x170] ss:$8 sps:$4 sm:$0xff]   ;;  %p11863_p3 = pnand %p11862_p2, %p11856_p13 }
 0x536   : > { %v5931_v28 = vpack.c.bf16 %v5923_v44, %v5919_v57  ;;  %v5924_v62 = vadd.f32 %v5855_v51, %v5498_v4  ;;  %v5926_v26 = vadd.f32 %v5908_v24, %v5500_v17  ;;  %v11333_v4 = vld [vmem:[%s15898_s9 + $0x110] ss:$8 sps:$4 sm:$0xff]   ;;  %v11335_v57 = vld [vmem:[%s15898_s9 + $0x114] ss:$8 sps:$4 sm:$0xff]   ;;  %v11338_v44 = vld [vmem:[%s15898_s9 + $0x84] ss:$8 sps:$4 sm:$0xff]  }
 0x537   : > { %v5933_v14 = vpack.c.bf16 %v5925_v54, %v5921_v6  ;;  %v11339_v19 = vld [vmem:[%s15898_s9 + $0x100] ss:$8 sps:$4 sm:$0xff]   ;;  %v11356_v51 = vld [vmem:[%s15831_s10 + $0x74] ss:$8 sps:$4 sm:$0xff]  }
 0x538   : > { %v5932_v29 = vpack.c.bf16 %v5924_v62, %v5920_v5  ;;  %v5948_v12 = vsel %vm5946_vm9, %v5931_v28, 0  ;;  %v5934_v23 = vpack.c.bf16 %v5926_v26, %v5922_v7  ;;  %v11348_v3 = vld [vmem:[%s15898_s9 + $0x180] ss:$8 sps:$4 sm:$0xff]  }
 0x539   : > { %v5954_v1 = vsel %vm5946_vm9, %v5933_v14, 0  ;;  %v11351_v7 = vld [vmem:[%s15831_s10 + $0x160] ss:$8 sps:$4 sm:$0xff]  }
 0x53a   : > { %9769 = vmatprep.subr.msk.bf16.mxu1 %vm5946_vm9, %v5932_v29 }
 0x53b   : > { %5972 = vmatpush1.bf16.msra.mxu1 %v5948_v12 }
 0x53c   : > { %5973 = vmatprep.subr.bf16.mxu1 %v5928_v18 }
 0x53f   : > { %5974 = vmatpush1.bf16.msra.mxu1 %v14814_v49 }
 0x540   : > { %9771 = vmatprep.subr.msk.bf16.mxu1 %vm5946_vm9, %v5934_v23 }
 0x542   : > { %9770 = vmatmul.mubr.msk.bf16.vlgmr.msra.gmra.mxu1 %vm5942_vm10, %v11268_v61 }
 0x543   : > { %6015 = vmatpush1.bf16.msra.mxu1 %v5954_v1  ;;  %6034 = vmatprep.mubr.bf16.mxu1 %v15926_v40 }
 0x544   : > { %6016 = vmatprep.subr.bf16.mxu1 %v5930_v36 }
 0x547   : > { %6017 = vmatpush1.bf16.msra.mxu1 %v14816_v33 }
 0x548   : > { %9774 = vmatprep.subr.msk.bf16.mxu1 %vm5946_vm9, %v5932_v29 }
 0x54a   : > { %9772 = vmatmul.mubr.msk.bf16.vlgmr.msra.gmra.mxu1 %vm5942_vm10, %v11268_v61  ;;  %v11359_v61 = vld [vmem:[%s15831_s10 + $0x154] ss:$8 sps:$4 sm:$0xff]  }
 0x54b   : > { %6068 = vmatpush1.bf16.msra.mxu1 %v5948_v12  ;;  %6087 = vmatprep.mubr.bf16.mxu1 %v15926_v40  ;;  %v11353_v12 = vld [vmem:[%s15831_s10 + $0x164] ss:$8 sps:$4 sm:$0xff]  }
 0x54c   : > { %6069 = vmatprep.subr.bf16.mxu1 %v5928_v18  ;;  %v11311_v18 = vld [vmem:[%s15898_s9 + $0x154] ss:$8 sps:$4 sm:$0xff]  }
 0x54f   : > { %6070 = vmatpush1.bf16.msra.mxu1 %v14814_v49  ;;  %v11305_v49 = vld [vmem:[%s15898_s9 + $0x164] ss:$8 sps:$4 sm:$0xff]  }
 0x550   : > { %9776 = vmatprep.subr.msk.bf16.mxu1 %vm5946_vm9, %v5934_v23 }
 0x552   : > { %9775 = vmatmul.mubr.msk.bf16.vlgmr.msra.gmra.mxu1 %vm5942_vm10, %v11269_v27 }
 0x553   : > { %6111 = vmatpush1.bf16.msra.mxu1 %v5954_v1  ;;  %6130 = vmatprep.mubr.bf16.mxu1 %v15926_v40 }
 0x554   : > { %6112 = vmatprep.subr.bf16.mxu1 %v5930_v36  ;;  %v11312_v36 = vld [vmem:[%s15898_s9 + $0xc0] ss:$8 sps:$4 sm:$0xff]  }
 0x557   : > { %6113 = vmatpush1.bf16.msra.mxu1 %v14816_v33  ;;  %v11306_v33 = vld [vmem:[%s15898_s9 + $0xd0] ss:$8 sps:$4 sm:$0xff]  }
 0x558   : > { %6512 = vmatprep.subr.bf16.mxu1 %v11299_v53  ;;  %6490 = vmatpush2.bf16.msra.mxu0 %v11306_v33 }
 0x559   : > { %6491 = vmatprep.subr.bf16.mxu0 %v11314_v30  ;;  %v11368_v30 = vld [vmem:[%s15831_s10 + $0x54] ss:$8 sps:$4 sm:$0xff]  }
 0x55a   : > { %9777 = vmatmul.mubr.msk.bf16.vlgmr.msra.gmra.mxu1 %vm5942_vm10, %v11269_v27 }
 0x55b   : > { %6513 = vmatpush1.bf16.msra.mxu1 %v11297_v43 }
 0x55c   : > { %6514 = vmatprep.subr.bf16.mxu1 %v11305_v49  ;;  %6492 = vmatpush2.bf16.msra.mxu0 %v11312_v36  ;;  %v11354_v49 = vld [vmem:[%s15831_s10 + $0x70] ss:$8 sps:$4 sm:$0xff]   ;;  %v11363_v36 = vld [vmem:[%s15831_s10 + $0x140] ss:$8 sps:$4 sm:$0xff]  }
 0x55d   : > { %6493 = vmatprep.subr.bf16.mxu0 %v11320_v48  ;;  %v11374_v48 = vld [vmem:[%s15831_s10 + $0x44] ss:$8 sps:$4 sm:$0xff]  }
 0x55f   : > { %6515 = vmatpush1.bf16.msra.mxu1 %v11303_v42  ;;  %v11357_v42 = vld [vmem:[%s15831_s10 + $0x150] ss:$8 sps:$4 sm:$0xff]  }
 0x560   : > { %6516 = vmatprep.subr.bf16.mxu1 %v11311_v18  ;;  %6494 = vmatpush2.bf16.msra.mxu0 %v11318_v41  ;;  %v11360_v18 = vld [vmem:[%s15831_s10 + $0x60] ss:$8 sps:$4 sm:$0xff]   ;;  %v11369_v41 = vld [vmem:[%s15831_s10 + $0x130] ss:$8 sps:$4 sm:$0xff]  }
 0x561   : > { %6495 = vmatprep.subr.bf16.mxu0 %v11326_v2  ;;  %v11380_v2 = vld [vmem:[%s15831_s10 + $0x34] ss:$8 sps:$4 sm:$0xff]  }
 0x563   : > { %6517 = vmatpush1.bf16.msra.mxu1 %v11309_v21  ;;  %v11365_v21 = vld [vmem:[%s15831_s10 + $0x144] ss:$8 sps:$4 sm:$0xff]  }
 0x564   : > { %6518 = vmatprep.subr.bf16.mxu1 %v11317_v60  ;;  %6496 = vmatpush2.bf16.msra.mxu0 %v11324_v38  ;;  %v11366_v60 = vld [vmem:[%s15831_s10 + $0x50] ss:$8 sps:$4 sm:$0xff]   ;;  %v11375_v38 = vld [vmem:[%s15831_s10 + $0x120] ss:$8 sps:$4 sm:$0xff]  }
 0x565   : > { %6497 = vmatprep.subr.bf16.mxu0 %v11332_v9  ;;  %v11386_v9 = vld [vmem:[%s15831_s10 + $0x24] ss:$8 sps:$4 sm:$0xff]  }
 0x567   : > { %6519 = vmatpush1.bf16.msra.mxu1 %v11315_v37  ;;  %v11371_v37 = vld [vmem:[%s15831_s10 + $0x134] ss:$8 sps:$4 sm:$0xff]  }
 0x568   : > { %6520 = vmatprep.subr.bf16.mxu1 %v11323_v10  ;;  %6498 = vmatpush2.bf16.msra.mxu0 %v11330_v50  ;;  %v11372_v10 = vld [vmem:[%s15831_s10 + $0x40] ss:$8 sps:$4 sm:$0xff]   ;;  %v11381_v50 = vld [vmem:[%s15831_s10 + $0x110] ss:$8 sps:$4 sm:$0xff]  }
 0x569   : > { %6499 = vmatprep.subr.bf16.mxu0 %v11338_v44  ;;  %v11387_v44 = vld [vmem:[%s15831_s10 + $0x100] ss:$8 sps:$4 sm:$0xff]  }
 0x56b   : > { %6521 = vmatpush1.bf16.msra.mxu1 %v11321_v34  ;;  %v11377_v34 = vld [vmem:[%s15831_s10 + $0x124] ss:$8 sps:$4 sm:$0xff]  }
 0x56c   : > { %6522 = vmatprep.subr.bf16.mxu1 %v11329_v56  ;;  %6500 = vmatpush2.bf16.msra.mxu0 %v11336_v25  ;;  %v11378_v56 = vld [vmem:[%s15831_s10 + $0x30] ss:$8 sps:$4 sm:$0xff]   ;;  %v11395_v25 = vld [vmem:[%s15831_s10 + $0x194] ss:$8 sps:$4 sm:$0xff]  }
 0x56d   : > { %6910 = vmatprep.subr.bf16.mxu0 %v11347_v45  ;;  %v11401_v45 = vld [vmem:[%s15831_s10 + $0x184] ss:$8 sps:$4 sm:$0xff]  }
 0x56f   : > { %6523 = vmatpush1.bf16.msra.mxu1 %v11327_v8  ;;  %v11383_v8 = vld [vmem:[%s15831_s10 + $0x114] ss:$8 sps:$4 sm:$0xff]  }
 0x570   : > { %6524 = vmatprep.subr.bf16.mxu1 %v11335_v57  ;;  %v11384_v57 = vld [vmem:[%s15831_s10 + $0x20] ss:$8 sps:$4 sm:$0xff]  }
 0x573   : > { %6525 = vmatpush1.bf16.msra.mxu1 %v11333_v4  ;;  %v11389_v4 = vld [vmem:[%s15831_s10 + $0x104] ss:$8 sps:$4 sm:$0xff]  }
 0x574   : > { %6526 = vmatprep.subr.bf16.mxu1 %v11341_v52  ;;  %v11392_v52 = vld [vmem:[%s15831_s10 + $0x14] ss:$8 sps:$4 sm:$0xff]  }
 0x577   : > { %6527 = vmatpush1.bf16.msra.mxu1 %v11339_v19  ;;  %v11390_v19 = vld [vmem:[%s15831_s10 + $0x10] ss:$8 sps:$4 sm:$0xff]  }
 0x578   : > { %6540 = vmatprep.subr.bf16.mxu1 %v11344_v13  ;;  %v11398_v13 = vld [vmem:[%s15831_s10 + $0x4] ss:$8 sps:$4 sm:$0xff]  }
 0x57b   : > { %6541 = vmatpush2.bf16.msra.mxu1 %v11342_v0  ;;  %v11393_v0 = vld [vmem:[%s15831_s10 + $0x190] ss:$8 sps:$4 sm:$0xff]  }
 0x57c   : > { %6542 = vmatprep.subr.bf16.mxu1 %v11350_v59  ;;  %v11396_v59 = vld [vmem:[%s15831_s10] ss:$8 sps:$4 sm:$0xff]  }
 0x57f   : > { %6543 = vmatpush2.bf16.msra.mxu1 %v11348_v3  ;;  %v11399_v3 = vld [vmem:[%s15831_s10 + $0x180] ss:$8 sps:$4 sm:$0xff]  }
 0x580   : > { %6867 = vmatprep.subr.bf16.mxu1 %v11356_v51  ;;  %v11404_v51 = vld [vmem:[%s15831_s10 + $0xf4] ss:$8 sps:$4 sm:$0xff]  }
 0x602   : > { %v5993_v35 = vpop.f32.mrf.mxu1 }
 0x604   : > { %v5995_v15 = vpop.f32.mrf.mxu1 }
 0x606   : > { %v5997_v5 = vpop.f32.mrf.mxu1 }
 0x608   : > { %v5999_v28 = vpop.f32.mrf.mxu1 }
 0x60a   : > { %v6036_v62 = vpop.f32.mrf.mxu1 }
 0x60c   : > { %v6038_v22 = vpop.f32.mrf.mxu1 }
 0x60e   : > { %v6040_v39 = vpop.f32.mrf.mxu1 }
 0x610   : > { %v6042_v24 = vpop.f32.mrf.mxu1 }
 0x612   : > { %v6089_v16 = vpop.f32.mrf.mxu1 }
 0x613   : > { %v6141_v20 = vmax.f32 %v5993_v35, %v6089_v16  ;;  %v11402_v35 = vld [vmem:[%s15831_s10 + $0xf0] ss:$8 sps:$4 sm:$0xff]  }
 0x614   : > { %v6091_v58 = vpop.f32.mrf.mxu1  ;;  %v11414_v16 = vld [vmem:[%s15831_s10 + $0xb0] ss:$8 sps:$4 sm:$0xff]  }
 0x615   : > { %v6142_v17 = vmax.f32 %v5995_v15, %v6091_v58  ;;  %v11407_v15 = vld [vmem:[%s15831_s10 + $0xe4] ss:$8 sps:$4 sm:$0xff]  }
 0x616   : > { %v6093_v32 = vpop.f32.mrf.mxu1  ;;  %v11419_v58 = vld [vmem:[%s15831_s10 + $0xa4] ss:$8 sps:$4 sm:$0xff]  }
 0x617   : > { %v6145_v11 = vmax.f32 %v5997_v5, %v6093_v32  ;;  %v11405_v5 = vld [vmem:[%s15831_s10 + $0xe0] ss:$8 sps:$4 sm:$0xff]  }
 0x618   : > { %v6095_v63 = vpop.f32.mrf.mxu1  ;;  %v11417_v32 = vld [vmem:[%s15831_s10 + $0xa0] ss:$8 sps:$4 sm:$0xff]  }
 0x619   : > { %v6146_v29 = vmax.f32 %v5999_v28, %v6095_v63  ;;  %v14973_v54 = vpack.c.bf16 %v6145_v11, %v6141_v20  ;;  %v11410_v28 = vld [vmem:[%s15831_s10 + $0xd4] ss:$8 sps:$4 sm:$0xff]   ;;  %v11420_v63 = vld [vmem:[%s15831_s10 + $0x90] ss:$8 sps:$4 sm:$0xff]  }
 0x61a   : > { %v6132_v31 = vpop.f32.mrf.mxu1  ;;  %v11422_v11 = vld [vmem:[%s15831_s10 + $0x94] ss:$8 sps:$4 sm:$0xff]   ;;  %v11426_v20 = vld [vmem:[%s15833_s12 + $0x70] ss:$8 sps:$4 sm:$0xff]  }
 0x61b   : > { %v6150_v46 = vpack.c.bf16 %v6146_v29, %v6142_v17  ;;  %v6143_v53 = vmax.f32 %v6036_v62, %v6132_v31  ;;  %v11408_v62 = vld [vmem:[%s15831_s10 + $0xd0] ss:$8 sps:$4 sm:$0xff]   ;;  %v11425_v17 = vld [vmem:[%s15831_s10 + $0x84] ss:$8 sps:$4 sm:$0xff]   ;;  %v11423_v29 = vld [vmem:[%s15831_s10 + $0x80] ss:$8 sps:$4 sm:$0xff]  }
 0x61c   : > { %v6134_v26 = vpop.f32.mrf.mxu1  ;;  %v11428_v31 = vld [vmem:[%s15833_s12 + $0x74] ss:$8 sps:$4 sm:$0xff]  }
 0x61d   : > { %6501 = vmatprep.mubr.bf16.mxu0 %v6150_v46  ;;  %v6144_v1 = vmax.f32 %v6038_v22, %v6134_v26  ;;  %v11413_v22 = vld [vmem:[%s15831_s10 + $0xc4] ss:$8 sps:$4 sm:$0xff]  }
 0x61e   : > { %v6136_v6 = vpop.f32.mrf.mxu1  ;;  %6502 = vmatmul.mubr.bf16.vlgmr.msra.gmra.mxu0 %v14973_v54  ;;  %v11434_v26 = vld [vmem:[%s15833_s12 + $0x144] ss:$8 sps:$4 sm:$0xff]  }
 0x61f   : > { %6911 = vmatpush1.bf16.msra.mxu0 %v11345_v47  ;;  %v6147_v14 = vmax.f32 %v6040_v39, %v6136_v6  ;;  %v11411_v39 = vld [vmem:[%s15831_s10 + $0xc0] ss:$8 sps:$4 sm:$0xff]   ;;  %v11431_v47 = vld [vmem:[%s15833_s12 + $0x64] ss:$8 sps:$4 sm:$0xff]   ;;  %v11437_v6 = vld [vmem:[%s15833_s12 + $0x54] ss:$8 sps:$4 sm:$0xff]  }
 0x620   : > { %v6138_v23 = vpop.f32.mrf.mxu1  ;;  %6912 = vmatprep.subr.bf16.mxu0 %v11353_v12  ;;  %v11435_v12 = vld [vmem:[%s15833_s12 + $0x50] ss:$8 sps:$4 sm:$0xff]  }
 0x621   : > { %v6148_v27 = vmax.f32 %v6042_v24, %v6138_v23  ;;  %v14991_v33 = vpack.c.bf16 %v6147_v14, %v6143_v53  ;;  %v11416_v24 = vld [vmem:[%s15831_s10 + $0xb4] ss:$8 sps:$4 sm:$0xff]   ;;  %v11441_v23 = vld [vmem:[%s15833_s12 + $0x40] ss:$8 sps:$4 sm:$0xff]  }
 0x622   : > { %v11440_v14 = vld [vmem:[%s15833_s12 + $0x134] ss:$8 sps:$4 sm:$0xff]   ;;  %v11444_v53 = vld [vmem:[%s15833_s12 + $0x120] ss:$8 sps:$4 sm:$0xff]  }
 0x623   : > { %v6152_v43 = vpack.c.bf16 %v6148_v27, %v6144_v1  ;;  %6913 = vmatpush1.bf16.msra.mxu0 %v11351_v7  ;;  %v11438_v7 = vld [vmem:[%s15833_s12 + $0x130] ss:$8 sps:$4 sm:$0xff]   ;;  %v11446_v1 = vld [vmem:[%s15833_s12 + $0x124] ss:$8 sps:$4 sm:$0xff]   ;;  %v11449_v27 = vld [vmem:[%s15833_s12 + $0x34] ss:$8 sps:$4 sm:$0xff]  }
 0x624   : > { %6914 = vmatprep.subr.bf16.mxu0 %v11359_v61  ;;  %v11443_v61 = vld [vmem:[%s15833_s12 + $0x44] ss:$8 sps:$4 sm:$0xff]  }
 0x625   : > { %9830 = vmatprep.mubr.msk.bf16.mxu1 %vm6465_vm11, %v6152_v43  ;;  %9883 = vmatprep.mubr.msk.bf16.mxu0 %vm6465_vm11, %v6152_v43  ;;  %v11452_v43 = vld [vmem:[%s15833_s12 + $0x114] ss:$8 sps:$4 sm:$0xff]  }
 0x626   : > { %6545 = vmatmul.mubr.bf16.vlgmr.msra.gmra.mxu1 %v14991_v33 }
 0x627   : > { %6868 = vmatpush1.bf16.msra.mxu1 %v11354_v49  ;;  %6915 = vmatpush1.bf16.msra.mxu0 %v11357_v42  ;;  %v11447_v49 = vld [vmem:[%s15833_s12 + $0x30] ss:$8 sps:$4 sm:$0xff]   ;;  %v11455_v42 = vld [vmem:[%s15833_s12 + $0x24] ss:$8 sps:$4 sm:$0xff]  }
 0x628   : > { %6899 = vmatprep.mubr.bf16.mxu1 %v6150_v46  ;;  %6869 = vmatprep.subr.bf16.mxu1 %v11362_v55  ;;  %v11429_v46 = vld [vmem:[%s15833_s12 + $0x60] ss:$8 sps:$4 sm:$0xff]   ;;  %v11458_v55 = vld [vmem:[%s15833_s12 + $0x104] ss:$8 sps:$4 sm:$0xff]  }
 0x629   : > { %6916 = vmatprep.subr.bf16.mxu0 %v11365_v21  ;;  %v11453_v21 = vld [vmem:[%s15833_s12 + $0x20] ss:$8 sps:$4 sm:$0xff]  }
 0x62b   : > { %6870 = vmatpush1.bf16.msra.mxu1 %v11360_v18  ;;  %6917 = vmatpush1.bf16.msra.mxu0 %v11363_v36  ;;  %v11461_v18 = vld [vmem:[%s15833_s12 + $0x14] ss:$8 sps:$4 sm:$0xff]   ;;  %v11456_v36 = vld [vmem:[%s15833_s12 + $0x100] ss:$8 sps:$4 sm:$0xff]  }
 0x62c   : > { %6871 = vmatprep.subr.bf16.mxu1 %v11368_v30  ;;  %6918 = vmatprep.subr.bf16.mxu0 %v11371_v37  ;;  %v11464_v30 = vld [vmem:[%s15833_s12 + $0xf4] ss:$8 sps:$4 sm:$0xff]   ;;  %v11459_v37 = vld [vmem:[%s15833_s12 + $0x10] ss:$8 sps:$4 sm:$0xff]  }
 0x62f   : > { %6872 = vmatpush1.bf16.msra.mxu1 %v11366_v60  ;;  %6919 = vmatpush1.bf16.msra.mxu0 %v11369_v41  ;;  %v11467_v60 = vld [vmem:[%s15833_s12 + $0x4] ss:$8 sps:$4 sm:$0xff]   ;;  %v11462_v41 = vld [vmem:[%s15833_s12 + $0xf0] ss:$8 sps:$4 sm:$0xff]  }
 0x630   : > { %6873 = vmatprep.subr.bf16.mxu1 %v11374_v48  ;;  %6920 = vmatprep.subr.bf16.mxu0 %v11377_v34  ;;  %v11470_v48 = vld [vmem:[%s15833_s12 + $0xe4] ss:$8 sps:$4 sm:$0xff]   ;;  %v11465_v34 = vld [vmem:[%s15833_s12] ss:$8 sps:$4 sm:$0xff]  }
 0x633   : > { %6874 = vmatpush1.bf16.msra.mxu1 %v11372_v10  ;;  %6921 = vmatpush1.bf16.msra.mxu0 %v11375_v38  ;;  %v11473_v10 = vld [vmem:[%s15833_s12 + $0xc4] ss:$8 sps:$4 sm:$0xff]   ;;  %v11468_v38 = vld [vmem:[%s15833_s12 + $0xe0] ss:$8 sps:$4 sm:$0xff]  }
 0x634   : > { %6875 = vmatprep.subr.bf16.mxu1 %v11380_v2  ;;  %6922 = vmatprep.subr.bf16.mxu0 %v11383_v8  ;;  %v11476_v2 = vld [vmem:[%s15833_s12 + $0xd4] ss:$8 sps:$4 sm:$0xff]   ;;  %v11471_v8 = vld [vmem:[%s15833_s12 + $0xc0] ss:$8 sps:$4 sm:$0xff]  }
 0x637   : > { %6876 = vmatpush1.bf16.msra.mxu1 %v11378_v56  ;;  %6923 = vmatpush1.bf16.msra.mxu0 %v11381_v50  ;;  %v11474_v56 = vld [vmem:[%s15833_s12 + $0xd0] ss:$8 sps:$4 sm:$0xff]   ;;  %v11479_v50 = vld [vmem:[%s15833_s12 + $0xb4] ss:$8 sps:$4 sm:$0xff]  }
 0x638   : > { %6877 = vmatprep.subr.bf16.mxu1 %v11386_v9  ;;  %6924 = vmatprep.subr.bf16.mxu0 %v11389_v4  ;;  %v11477_v9 = vld [vmem:[%s15833_s12 + $0xb0] ss:$8 sps:$4 sm:$0xff]   ;;  %v11482_v4 = vld [vmem:[%s15833_s12 + $0x194] ss:$8 sps:$4 sm:$0xff]  }
 0x63b   : > { %6878 = vmatpush1.bf16.msra.mxu1 %v11384_v57  ;;  %6925 = vmatpush1.bf16.msra.mxu0 %v11387_v44  ;;  %v11480_v57 = vld [vmem:[%s15833_s12 + $0x190] ss:$8 sps:$4 sm:$0xff]   ;;  %v11485_v44 = vld [vmem:[%s15833_s12 + $0xa4] ss:$8 sps:$4 sm:$0xff]  }
 0x63c   : > { %6879 = vmatprep.subr.bf16.mxu1 %v11392_v52  ;;  %6938 = vmatprep.subr.bf16.mxu0 %v11395_v25  ;;  %v11483_v52 = vld [vmem:[%s15833_s12 + $0xa0] ss:$8 sps:$4 sm:$0xff]   ;;  %v11488_v25 = vld [vmem:[%s15833_s12 + $0x184] ss:$8 sps:$4 sm:$0xff]  }
 0x63f   : > { %6880 = vmatpush1.bf16.msra.mxu1 %v11390_v19  ;;  %6939 = vmatpush2.bf16.msra.mxu0 %v11393_v0  ;;  %v11486_v19 = vld [vmem:[%s15833_s12 + $0x180] ss:$8 sps:$4 sm:$0xff]   ;;  %v11491_v0 = vld [vmem:[%s15833_s12 + $0x94] ss:$8 sps:$4 sm:$0xff]  }
 0x640   : > { %6881 = vmatprep.subr.bf16.mxu1 %v11398_v13  ;;  %6940 = vmatprep.subr.bf16.mxu0 %v11401_v45  ;;  %v11489_v13 = vld [vmem:[%s15833_s12 + $0x90] ss:$8 sps:$4 sm:$0xff]   ;;  %v11494_v45 = vld [vmem:[%s15833_s12 + $0x174] ss:$8 sps:$4 sm:$0xff]  }
 0x643   : > { %6882 = vmatpush1.bf16.msra.mxu1 %v11396_v59  ;;  %6941 = vmatpush2.bf16.msra.mxu0 %v11399_v3  ;;  %v11492_v59 = vld [vmem:[%s15833_s12 + $0x170] ss:$8 sps:$4 sm:$0xff]   ;;  %v11497_v3 = vld [vmem:[%s15833_s12 + $0x84] ss:$8 sps:$4 sm:$0xff]  }
 0x644   : > { %6883 = vmatprep.subr.bf16.mxu1 %v11404_v51  ;;  %7181 = vmatprep.subr.bf16.mxu0 %v11434_v26  ;;  %v11495_v51 = vld [vmem:[%s15833_s12 + $0x80] ss:$8 sps:$4 sm:$0xff]  }
 0x646   : > { %6943 = vmatmul.mubr.bf16.vlgmr.msra.gmra.mxu0 %v14991_v33  ;;  %v11450_v33 = vld [vmem:[%s15833_s12 + $0x110] ss:$8 sps:$4 sm:$0xff]  }
 0x647   : > { %6884 = vmatpush2.bf16.msra.mxu1 %v11402_v35  ;;  %v11500_v35 = vld [vmem:[%s15833_s12 + $0x164] ss:$8 sps:$4 sm:$0xff]  }
 0x648   : > { %6885 = vmatprep.subr.bf16.mxu1 %v11407_v15  ;;  %v11498_v15 = vld [vmem:[%s15833_s12 + $0x160] ss:$8 sps:$4 sm:$0xff]  }
 0x64b   : > { %6886 = vmatpush2.bf16.msra.mxu1 %v11405_v5  ;;  %v11503_v5 = vld [vmem:[%s15833_s12 + $0x2e4] ss:$8 sps:$4 sm:$0xff]  }
 0x64c   : > { %6887 = vmatprep.subr.bf16.mxu1 %v11410_v28  ;;  %v11506_v28 = vld [vmem:[%s15833_s12 + $0x154] ss:$8 sps:$4 sm:$0xff]  }
 0x64f   : > { %6888 = vmatpush2.bf16.msra.mxu1 %v11408_v62  ;;  %v11504_v62 = vld [vmem:[%s15833_s12 + $0x150] ss:$8 sps:$4 sm:$0xff]  }
 0x650   : > { %6889 = vmatprep.subr.bf16.mxu1 %v11413_v22  ;;  %v11512_v22 = vld [vmem:[%s15833_s12 + $0x214] ss:$8 sps:$4 sm:$0xff]  }
 0x653   : > { %6890 = vmatpush2.bf16.msra.mxu1 %v11411_v39 }
 0x654   : > { %6891 = vmatprep.subr.bf16.mxu1 %v11416_v24 }
 0x657   : > { %6892 = vmatpush2.bf16.msra.mxu1 %v11414_v16 }
 0x658   : > { %6893 = vmatprep.subr.bf16.mxu1 %v11419_v58 }
 0x65b   : > { %6894 = vmatpush2.bf16.msra.mxu1 %v11417_v32 }
 0x65c   : > { %6895 = vmatprep.subr.bf16.mxu1 %v11422_v11 }
 0x65f   : > { %6896 = vmatpush2.bf16.msra.mxu1 %v11420_v63 }
 0x660   : > { %6897 = vmatprep.subr.bf16.mxu1 %v11425_v17 }
 0x663   : > { %6898 = vmatpush2.bf16.msra.mxu1 %v11423_v29 }
 0x664   : > { %7356 = vmatprep.subr.bf16.mxu1 %v11428_v31 }
 0x666   : > { %6900 = vmatmul.mubr.bf16.vlgmr.msra.gmra.mxu1 %v14973_v54  ;;  %v11432_v54 = vld [vmem:[%s15833_s12 + $0x140] ss:$8 sps:$4 sm:$0xff]  }
 0x667   : > { %7357 = vmatpush1.bf16.msra.mxu1 %v11426_v20  ;;  %7182 = vmatpush1.bf16.msra.mxu0 %v11432_v54 }
 0x668   : > { %7358 = vmatprep.subr.bf16.mxu1 %v11431_v47  ;;  %7183 = vmatprep.subr.bf16.mxu0 %v11440_v14  ;;  %v15928_v14 = vld [vmem:[#allocation11_spill] sm:$0xff] }
 0x66b   : > { %7359 = vmatpush1.bf16.msra.mxu1 %v11429_v46  ;;  %7184 = vmatpush1.bf16.msra.mxu0 %v11438_v7  ;;  %v6957_v46 = vld [vmem:[%s15832_s11] sm:$0x3] }
 0x66c   : > { %7360 = vmatprep.subr.bf16.mxu1 %v11437_v6  ;;  %7185 = vmatprep.subr.bf16.mxu0 %v11446_v1 }
 0x66f   : > { %7361 = vmatpush1.bf16.msra.mxu1 %v11435_v12  ;;  %7186 = vmatpush1.bf16.msra.mxu0 %v11444_v53 }
 0x670   : > { %7362 = vmatprep.subr.bf16.mxu1 %v11443_v61  ;;  %7187 = vmatprep.subr.bf16.mxu0 %v11452_v43 }
 0x673   : > { %7363 = vmatpush1.bf16.msra.mxu1 %v11441_v23  ;;  %7188 = vmatpush1.bf16.msra.mxu0 %v11450_v33  ;;  %v15929_v23 = vsub.s32 0, %v15928_v14 }
 0x674   : > { %7364 = vmatprep.subr.bf16.mxu1 %v11449_v27  ;;  %7189 = vmatprep.subr.bf16.mxu0 %v11458_v55 }
 0x675   : > { %v6962_v61 = vrot.slane %v6957_v46, %v15929_v23  ;;  %v11543_v23 = vld [vmem:[%s15833_s12 + $0x270] ss:$8 sps:$4 sm:$0xff]  }
 0x677   : > { %7365 = vmatpush1.bf16.msra.mxu1 %v11447_v49  ;;  %7190 = vmatpush1.bf16.msra.mxu0 %v11456_v36  ;;  %v15930_v49 = vsub.s32 1, %v15928_v14  ;;  %v11548_v14 = vld [vmem:[%s15833_s12 + $0x1b4] ss:$8 sps:$4 sm:$0xff]  }
 0x678   : > { %7366 = vmatprep.subr.bf16.mxu1 %v11455_v42  ;;  %7191 = vmatprep.subr.bf16.mxu0 %v11464_v30 }
 0x679   : > { %v6966_v42 = vrot.slane %v6957_v46, %v15930_v49  ;;  %v11531_v46 = vld [vmem:[%s15833_s12 + $0x290] ss:$8 sps:$4 sm:$0xff]   ;;  %v11552_v49 = vld [vmem:[%s15833_s12 + $0x1a0] ss:$8 sps:$4 sm:$0xff]  }
 0x67b   : > { %7367 = vmatpush1.bf16.msra.mxu1 %v11453_v21  ;;  %7192 = vmatpush1.bf16.msra.mxu0 %v11462_v41 }
 0x67c   : > { %7368 = vmatprep.subr.bf16.mxu1 %v11461_v18  ;;  %7193 = vmatprep.subr.bf16.mxu0 %v11470_v48 }
 0x67f   : > { %7369 = vmatpush1.bf16.msra.mxu1 %v11459_v37  ;;  %7194 = vmatpush1.bf16.msra.mxu0 %v11468_v38 }
 0x680   : > { %7370 = vmatprep.subr.bf16.mxu1 %v11467_v60  ;;  %7195 = vmatprep.subr.bf16.mxu0 %v11476_v2 }
 0x683   : > { %7371 = vmatpush1.bf16.msra.mxu1 %v11465_v34  ;;  %7196 = vmatpush1.bf16.msra.mxu0 %v11474_v56 }
 0x684   : > { %7378 = vmatprep.subr.bf16.mxu1 %v11473_v10  ;;  %7203 = vmatprep.subr.bf16.mxu0 %v11482_v4 }
 0x687   : > { %7379 = vmatpush2.bf16.msra.mxu1 %v11471_v8  ;;  %7204 = vmatpush2.bf16.msra.mxu0 %v11480_v57  ;;  %v11509_v57 = vld [vmem:[%s15833_s12 + $0x2d4] ss:$8 sps:$4 sm:$0xff]  }
 0x688   : > { %7380 = vmatprep.subr.bf16.mxu1 %v11479_v50  ;;  %7205 = vmatprep.subr.bf16.mxu0 %v11488_v25 }
 0x68b   : > { %7381 = vmatpush2.bf16.msra.mxu1 %v11477_v9  ;;  %7206 = vmatpush2.bf16.msra.mxu0 %v11486_v19  ;;  %v11501_v9 = vld [vmem:[%s15833_s12 + $0x2e0] ss:$8 sps:$4 sm:$0xff]   ;;  %v11507_v19 = vld [vmem:[%s15833_s12 + $0x2d0] ss:$8 sps:$4 sm:$0xff]  }
 0x68c   : > { %7382 = vmatprep.subr.bf16.mxu1 %v11485_v44  ;;  %7207 = vmatprep.subr.bf16.mxu0 %v11494_v45 }
 0x68f   : > { %7383 = vmatpush2.bf16.msra.mxu1 %v11483_v52  ;;  %7208 = vmatpush2.bf16.msra.mxu0 %v11492_v59 }
 0x690   : > { %7384 = vmatprep.subr.bf16.mxu1 %v11491_v0  ;;  %7209 = vmatprep.subr.bf16.mxu0 %v11500_v35 }
 0x693   : > { %7385 = vmatpush2.bf16.msra.mxu1 %v11489_v13  ;;  %7210 = vmatpush2.bf16.msra.mxu0 %v11498_v15 }
 0x694   : > { %7386 = vmatprep.subr.bf16.mxu1 %v11497_v3  ;;  %7211 = vmatprep.subr.bf16.mxu0 %v11506_v28  ;;  %v11518_v28 = vld [vmem:[%s15833_s12 + $0x204] ss:$8 sps:$4 sm:$0xff]  }
 0x697   : > { %7387 = vmatpush2.bf16.msra.mxu1 %v11495_v51  ;;  %7212 = vmatpush2.bf16.msra.mxu0 %v11504_v62  ;;  %v11510_v51 = vld [vmem:[%s15833_s12 + $0x210] ss:$8 sps:$4 sm:$0xff]  }
 0x698   : > { %7778 = vmatprep.subr.bf16.mxu1 %v11503_v5  ;;  %7564 = vmatprep.subr.bf16.mxu0 %v11512_v22  ;;  %v11515_v5 = vld [vmem:[%s15833_s12 + $0x2c4] ss:$8 sps:$4 sm:$0xff]   ;;  %v11513_v22 = vld [vmem:[%s15833_s12 + $0x2c0] ss:$8 sps:$4 sm:$0xff]  }
 0x6de   : > { %v6503_v39 = vpop.f32.mrf.mxu0 }
 0x6e0   : > { %v6505_v24 = vpop.f32.mrf.mxu0 }
 0x6e2   : > { %v6507_v58 = vpop.f32.mrf.mxu0 }
 0x6e4   : > { %v6509_v11 = vpop.f32.mrf.mxu0 }
 0x6e6   : > { %v6546_v16 = vpop.f32.mrf.mxu1 }
 0x6e7   : > { %v6547_v47 = vadd.f32 %v6546_v16, %v6503_v39  ;;  %v11521_v39 = vld [vmem:[%s15833_s12 + $0x2b4] ss:$8 sps:$4 sm:$0xff]  }
 0x6e8   : > { %v6548_v32 = vpop.f32.mrf.mxu1  ;;  %v11524_v16 = vld [vmem:[%s15833_s12 + $0x1f4] ss:$8 sps:$4 sm:$0xff]  }
 0x6e9   : > { %v6549_v6 = vadd.f32 %v6548_v32, %v6505_v24  ;;  %v11516_v24 = vld [vmem:[%s15833_s12 + $0x200] ss:$8 sps:$4 sm:$0xff]   ;;  %v11527_v32 = vld [vmem:[%s15833_s12 + $0x2a4] ss:$8 sps:$4 sm:$0xff]  }
 0x6ea   : > { %v6550_v63 = vpop.f32.mrf.mxu1 }
 0x6eb   : > { %v6551_v53 = vadd.f32 %v6550_v63, %v6507_v58  ;;  %v11519_v58 = vld [vmem:[%s15833_s12 + $0x2b0] ss:$8 sps:$4 sm:$0xff]   ;;  %v11530_v63 = vld [vmem:[%s15833_s12 + $0x1e4] ss:$8 sps:$4 sm:$0xff]  }
 0x6ec   : > { %v6552_v29 = vpop.f32.mrf.mxu1 }
 0x6ed   : > { %v6553_v18 = vadd.f32 %v6552_v29, %v6509_v11  ;;  %v11522_v11 = vld [vmem:[%s15833_s12 + $0x1f0] ss:$8 sps:$4 sm:$0xff]   ;;  %v11533_v29 = vld [vmem:[%s15833_s12 + $0x294] ss:$8 sps:$4 sm:$0xff]  }
 0x706   : > { %v6944_v17 = vpop.f32.mrf.mxu0 }
 0x708   : > { %v6946_v20 = vpop.f32.mrf.mxu0 }
 0x70a   : > { %v6948_v26 = vpop.f32.mrf.mxu0 }
 0x70c   : > { %v6950_v55 = vpop.f32.mrf.mxu0 }
 0x726   : > { %v6901_v31 = vpop.f32.mrf.mxu1 }
 0x727   : > { %v6945_v54 = vadd.f32 %v6944_v17, %v6901_v31  ;;  %v11525_v17 = vld [vmem:[%s15833_s12 + $0x2a0] ss:$8 sps:$4 sm:$0xff]   ;;  %v11536_v31 = vld [vmem:[%s15833_s12 + $0x1d4] ss:$8 sps:$4 sm:$0xff]  }
 0x728   : > { %v6903_v12 = vpop.f32.mrf.mxu1 }
 0x729   : > { %v6953_v7 = vmax.f32 %v6547_v47, %v6945_v54  ;;  %v6947_v1 = vadd.f32 %v6946_v20, %v6903_v12  ;;  %v11528_v20 = vld [vmem:[%s15833_s12 + $0x1e0] ss:$8 sps:$4 sm:$0xff]   ;;  %v11539_v47 = vld [vmem:[%s15833_s12 + $0x284] ss:$8 sps:$4 sm:$0xff]   ;;  %v11534_v54 = vld [vmem:[%s15833_s12 + $0x1d0] ss:$8 sps:$4 sm:$0xff]  }
 0x72a   : > { %v6905_v27 = vpop.f32.mrf.mxu1  ;;  %v11537_v12 = vld [vmem:[%s15833_s12 + $0x280] ss:$8 sps:$4 sm:$0xff]  }
 0x72b   : > { %v6954_v43 = vmax.f32 %v6549_v6, %v6947_v1  ;;  %v6949_v33 = vadd.f32 %v6948_v26, %v6905_v27  ;;  %v6969_v36 = vadd.f32 %v6962_v61, %v6953_v7  ;;  %v11542_v26 = vld [vmem:[%s15833_s12 + $0x1c4] ss:$8 sps:$4 sm:$0xff]   ;;  %v11545_v6 = vld [vmem:[%s15833_s12 + $0x274] ss:$8 sps:$4 sm:$0xff]   ;;  %v11540_v7 = vld [vmem:[%s15833_s12 + $0x1c0] ss:$8 sps:$4 sm:$0xff]  }
 0x72c   : > { %v6907_v21 = vpop.f32.mrf.mxu1  ;;  %v11546_v1 = vld [vmem:[%s15833_s12 + $0x1b0] ss:$8 sps:$4 sm:$0xff]   ;;  %v11554_v27 = vld [vmem:[%s15833_s12 + $0x1a4] ss:$8 sps:$4 sm:$0xff]  }
 0x72d   : > { %v6955_v30 = vmax.f32 %v6551_v53, %v6949_v33  ;;  %v6951_v37 = vadd.f32 %v6950_v55, %v6907_v21  ;;  %v6970_v60 = vadd.f32 %v6966_v42, %v6954_v43  ;;  %v6973_v34 = vmax.f32 %v6969_v36, 0.0  ;;  %v11549_v53 = vld [vmem:[%s15833_s12 + $0x330] ss:$8 sps:$4 sm:$0xff]   ;;  %v11557_v43 = vld [vmem:[%s15833_s12 + $0x324] ss:$8 sps:$4 sm:$0xff]  }
 0x72e   : > { %v11555_v33 = vld [vmem:[%s15833_s12 + $0x320] ss:$8 sps:$4 sm:$0xff]   ;;  %v11563_v55 = vld [vmem:[%s15833_s12 + $0x314] ss:$8 sps:$4 sm:$0xff]   ;;  %v11561_v36 = vld [vmem:[%s15833_s12 + $0x310] ss:$8 sps:$4 sm:$0xff]  }
 0x72f   : > { %v6971_v41 = vadd.f32 %v6962_v61, %v6955_v30  ;;  %v6956_v48 = vmax.f32 %v6553_v18, %v6951_v37  ;;  %v6974_v2 = vmax.f32 %v6970_v60, 0.0  ;;  %v11551_v61 = vld [vmem:[%s15833_s12 + $0x334] ss:$8 sps:$4 sm:$0xff]   ;;  %v11558_v21 = vld [vmem:[%s15833_s12 + $0x260] ss:$8 sps:$4 sm:$0xff]  }
 0x730   : > { %v11566_v18 = vld [vmem:[%s15833_s12 + $0x254] ss:$8 sps:$4 sm:$0xff]   ;;  %v11569_v30 = vld [vmem:[%s15833_s12 + $0x304] ss:$8 sps:$4 sm:$0xff]   ;;  %v11564_v37 = vld [vmem:[%s15833_s12 + $0x250] ss:$8 sps:$4 sm:$0xff]  }
 0x731   : > { %v6975_v10 = vmax.f32 %v6971_v41, 0.0  ;;  %v6972_v38 = vadd.f32 %v6966_v42, %v6956_v48  ;;  %v11560_v42 = vld [vmem:[%s15833_s12 + $0x264] ss:$8 sps:$4 sm:$0xff]   ;;  %v11567_v41 = vld [vmem:[%s15833_s12 + $0x300] ss:$8 sps:$4 sm:$0xff]  }
 0x732   : > { %v11572_v60 = vld [vmem:[%s15833_s12 + $0x244] ss:$8 sps:$4 sm:$0xff]   ;;  %v11575_v48 = vld [vmem:[%s15833_s12 + $0x2f4] ss:$8 sps:$4 sm:$0xff]  }
 0x733   : > { %v15297_v8 = vpack.c.bf16 %v6975_v10, %v6973_v34  ;;  %v6976_v56 = vmax.f32 %v6972_v38, 0.0  ;;  %v11570_v34 = vld [vmem:[%s15833_s12 + $0x240] ss:$8 sps:$4 sm:$0xff]   ;;  %v11578_v10 = vld [vmem:[%s15833_s12 + $0x234] ss:$8 sps:$4 sm:$0xff]  }
 0x734   : > { %v11573_v38 = vld [vmem:[%s15833_s12 + $0x2f0] ss:$8 sps:$4 sm:$0xff]  }
 0x735   : > { %v15299_v50 = vpack.c.bf16 %v6976_v56, %v6974_v2  ;;  %v7035_v4 = vshll.u32 %v15297_v8, 16  ;;  %v7033_v59 = vshrl.u32 %v15297_v8, 16 }
 0x737   : > { %9963 = vmatprep.mubr.msk.bf16.mxu1 %vm7177_vm12, %v15299_v50  ;;  %v7040_v44 = vshrl.u32 %v15299_v50, 16  ;;  %v7042_v52 = vshll.u32 %v15299_v50, 16  ;;  %v7037_v25 = vrot.slane %v7035_v4, 1  ;;  %v7429_v62 = vrot.slane %v15299_v50, 1 }
 0x738   : > { %7389 = vmatmul.mubr.bf16.vlgmr.msra.gmra.mxu1 %v15297_v8  ;;  %v7638_v2 = vrot.slane %v7033_v59, 1  ;;  %v7639_v56 = vrot.slane %v7035_v4, 2  ;;  %v11584_v4 = vld [vmem:[%s15833_s12 + $0x3b4] ss:$8 sps:$4 sm:$0xff]  }
 0x739   : > { %7779 = vmatpush1.bf16.msra.mxu1 %v11501_v9  ;;  %v7044_v0 = vrot.slane %v7042_v52, 1  ;;  %v7641_v13 = vrot.slane %v7040_v44, 1  ;;  %v7642_v45 = vrot.slane %v7042_v52, 2  ;;  %v7038_v15 = vor.u32 %v7037_v25, %v7033_v59  ;;  %v11576_v9 = vld [vmem:[%s15833_s12 + $0x230] ss:$8 sps:$4 sm:$0xff]  }
 0x73a   : > { %7780 = vmatprep.subr.bf16.mxu1 %v11509_v57  ;;  %v11581_v57 = vld [vmem:[%s15833_s12 + $0x224] ss:$8 sps:$4 sm:$0xff]   ;;  %v11579_v52 = vld [vmem:[%s15833_s12 + $0x220] ss:$8 sps:$4 sm:$0xff]   ;;  %v11582_v25 = vld [vmem:[%s15833_s12 + $0x3b0] ss:$8 sps:$4 sm:$0xff]  }
 0x73b   : > { %v7045_v3 = vor.u32 %v7044_v0, %v7040_v44  ;;  %v7643_v35 = vor.u32 %v7642_v45, %v7641_v13  ;;  %v7640_v44 = vor.u32 %v7639_v56, %v7638_v2  ;;  %v11587_v0 = vld [vmem:[%s15833_s12 + $0x3a4] ss:$8 sps:$4 sm:$0xff]   ;;  %v7853_v13 = vrot.slane %v15299_v50, 2  ;;  %v11585_v45 = vld [vmem:[%s15833_s12 + $0x3a0] ss:$8 sps:$4 sm:$0xff]  }
 0x73c   : > { %v11590_v59 = vld [vmem:[%s15833_s12 + $0x394] ss:$8 sps:$4 sm:$0xff]   ;;  %v11593_v50 = vld [vmem:[%s15833_s12 + $0x384] ss:$8 sps:$4 sm:$0xff]  }
 0x73d   : > { %7781 = vmatpush1.bf16.msra.mxu1 %v11507_v19  ;;  %9936 = vmatprep.mubr.msk.bf16.mxu0 %vm7177_vm12, %v7045_v3  ;;  %v7428_v19 = vrot.slane %v15297_v8, 1  ;;  %v11588_v3 = vld [vmem:[%s15833_s12 + $0x390] ss:$8 sps:$4 sm:$0xff]  }
 0x73e   : > { %10069 = vmatprep.mubr.msk.bf16.mxu1 %vm7177_vm12, %v7643_v35  ;;  %7214 = vmatmul.mubr.bf16.vlgmr.msra.gmra.mxu0 %v7038_v15  ;;  %v11596_v35 = vld [vmem:[%s15833_s12 + $0x374] ss:$8 sps:$4 sm:$0xff]   ;;  %v11594_v15 = vld [vmem:[%s15833_s12 + $0x370] ss:$8 sps:$4 sm:$0xff]  }
 0x73f   : > { %7565 = vmatpush1.bf16.msra.mxu0 %v11510_v51  ;;  %10016 = vmatprep.mubr.msk.bf16.mxu0 %vm7177_vm12, %v7429_v62  ;;  %v11591_v51 = vld [vmem:[%s15833_s12 + $0x380] ss:$8 sps:$4 sm:$0xff]   ;;  %v11602_v62 = vld [vmem:[%s15833_s12 + $0x354] ss:$8 sps:$4 sm:$0xff]  }
 0x740   : > { %7782 = vmatprep.subr.bf16.mxu1 %v11515_v5  ;;  %7566 = vmatprep.subr.bf16.mxu0 %v11518_v28  ;;  %v11599_v5 = vld [vmem:[%s15833_s12 + $0x364] ss:$8 sps:$4 sm:$0xff]   ;;  %v11597_v28 = vld [vmem:[%s15833_s12 + $0x360] ss:$8 sps:$4 sm:$0xff]  }
 0x741   : > { %7783 = vmatpush1.bf16.msra.mxu1 %v11513_v22  ;;  %v11600_v22 = vld [vmem:[%s15833_s12 + $0x350] ss:$8 sps:$4 sm:$0xff]  }
 0x742   : > { %7784 = vmatprep.subr.bf16.mxu1 %v11521_v39  ;;  %v11605_v39 = vld [vmem:[%s15833_s12 + $0x344] ss:$8 sps:$4 sm:$0xff]  }
 0x743   : > { %7567 = vmatpush1.bf16.msra.mxu0 %v11516_v24  ;;  %v11603_v24 = vld [vmem:[%s15833_s12 + $0x340] ss:$8 sps:$4 sm:$0xff]  }
 0x744   : > { %7568 = vmatprep.subr.bf16.mxu0 %v11524_v16  ;;  %v11608_v16 = vld [vmem:[%s15833_s12 + $0x404] ss:$8 sps:$4 sm:$0xff]  }
 0x745   : > { %7785 = vmatpush1.bf16.msra.mxu1 %v11519_v58  ;;  %v11606_v58 = vld [vmem:[%s15833_s12 + $0x400] ss:$8 sps:$4 sm:$0xff]  }
 0x746   : > { %7786 = vmatprep.subr.bf16.mxu1 %v11527_v32  ;;  %v11611_v32 = vld [vmem:[%s15833_s12 + $0x3f4] ss:$8 sps:$4 sm:$0xff]  }
 0x747   : > { %7569 = vmatpush1.bf16.msra.mxu0 %v11522_v11  ;;  %v11609_v11 = vld [vmem:[%s15833_s12 + $0x3f0] ss:$8 sps:$4 sm:$0xff]  }
 0x748   : > { %7570 = vmatprep.subr.bf16.mxu0 %v11530_v63  ;;  %v11614_v63 = vld [vmem:[%s15833_s12 + $0x3e4] ss:$8 sps:$4 sm:$0xff]  }
 0x749   : > { %7787 = vmatpush1.bf16.msra.mxu1 %v11525_v17  ;;  %v11612_v17 = vld [vmem:[%s15833_s12 + $0x3e0] ss:$8 sps:$4 sm:$0xff]  }
 0x74a   : > { %7788 = vmatprep.subr.bf16.mxu1 %v11533_v29  ;;  %v11617_v29 = vld [vmem:[%s15833_s12 + $0x3d4] ss:$8 sps:$4 sm:$0xff]  }
 0x74b   : > { %7571 = vmatpush1.bf16.msra.mxu0 %v11528_v20  ;;  %v11615_v20 = vld [vmem:[%s15833_s12 + $0x3d0] ss:$8 sps:$4 sm:$0xff]  }
 0x74c   : > { %7572 = vmatprep.subr.bf16.mxu0 %v11536_v31  ;;  %v11620_v31 = vld [vmem:[%s15833_s12 + $0x3c4] ss:$8 sps:$4 sm:$0xff]  }
 0x74d   : > { %7789 = vmatpush1.bf16.msra.mxu1 %v11531_v46  ;;  %v11618_v46 = vld [vmem:[%s15833_s12 + $0x3c0] ss:$8 sps:$4 sm:$0xff]  }
 0x74e   : > { %7790 = vmatprep.subr.bf16.mxu1 %v11539_v47  ;;  %v7852_v47 = vrot.slane %v15297_v8, 2  ;;  %v11626_v8 = vld [vmem:[%s15837_s16 + $0x28] sm:$0xff]  }
 0x74f   : > { %7573 = vmatpush1.bf16.msra.mxu0 %v11534_v54  ;;  %v11622_v54 = vld [vmem:[%s15837_s16 + $0x38] sm:$0xff]  }
 0x750   : > { %7574 = vmatprep.subr.bf16.mxu0 %v11542_v26  ;;  %v11624_v26 = vld [vmem:[%s15837_s16 + $0x30] sm:$0xff]  }
 0x751   : > { %7791 = vmatpush1.bf16.msra.mxu1 %v11537_v12  ;;  %v11628_v12 = vld [vmem:[%s15837_s16 + $0x20] sm:$0xff]  }
 0x752   : > { %7792 = vmatprep.subr.bf16.mxu1 %v11545_v6  ;;  %v11630_v6 = vld [vmem:[%s15837_s16 + $0x18] sm:$0xff]  }
 0x753   : > { %7575 = vmatpush1.bf16.msra.mxu0 %v11540_v7 }
 0x754   : > { %7576 = vmatprep.subr.bf16.mxu0 %v11548_v14 }
 0x755   : > { %7793 = vmatpush1.bf16.msra.mxu1 %v11543_v23 }
 0x756   : > { %7800 = vmatprep.subr.bf16.mxu1 %v11551_v61 }
 0x757   : > { %7577 = vmatpush1.bf16.msra.mxu0 %v11546_v1 }
 0x758   : > { %7578 = vmatprep.subr.bf16.mxu0 %v11554_v27 }
 0x759   : > { %7801 = vmatpush2.bf16.msra.mxu1 %v11549_v53 }
 0x75a   : > { %7802 = vmatprep.subr.bf16.mxu1 %v11557_v43 }
 0x75b   : > { %7579 = vmatpush1.bf16.msra.mxu0 %v11552_v49 }
 0x75c   : > { %7586 = vmatprep.subr.bf16.mxu0 %v11560_v42 }
 0x75d   : > { %7803 = vmatpush2.bf16.msra.mxu1 %v11555_v33 }
 0x75e   : > { %7804 = vmatprep.subr.bf16.mxu1 %v11563_v55 }
 0x75f   : > { %7587 = vmatpush2.bf16.msra.mxu0 %v11558_v21 }
 0x760   : > { %7588 = vmatprep.subr.bf16.mxu0 %v11566_v18 }
 0x761   : > { %7805 = vmatpush2.bf16.msra.mxu1 %v11561_v36 }
 0x762   : > { %7806 = vmatprep.subr.bf16.mxu1 %v11569_v30 }
 0x763   : > { %7589 = vmatpush2.bf16.msra.mxu0 %v11564_v37 }
 0x764   : > { %7590 = vmatprep.subr.bf16.mxu0 %v11572_v60 }
 0x765   : > { %7807 = vmatpush2.bf16.msra.mxu1 %v11567_v41 }
 0x766   : > { %7808 = vmatprep.subr.bf16.mxu1 %v11575_v48 }
 0x767   : > { %7591 = vmatpush2.bf16.msra.mxu0 %v11570_v34 }
 0x768   : > { %7592 = vmatprep.subr.bf16.mxu0 %v11578_v10 }
 0x769   : > { %7809 = vmatpush2.bf16.msra.mxu1 %v11573_v38 }
 0x76b   : > { %7593 = vmatpush2.bf16.msra.mxu0 %v11576_v9 }
 0x76c   : > { %7811 = vmatmul.mubr.bf16.vlgmr.msra.gmra.mxu1 %v7640_v44  ;;  %7594 = vmatprep.subr.bf16.mxu0 %v11581_v57 }
 0x76d   : > { %8082 = vmatprep.mubr.bf16.mxu1 %v15926_v40 }
 0x76f   : > { %7595 = vmatpush2.bf16.msra.mxu0 %v11579_v52 }
 0x770   : > { %7988 = vmatprep.subr.bf16.mxu0 %v11584_v4 }
 0x772   : > { %7597 = vmatmul.mubr.bf16.vlgmr.msra.gmra.mxu0 %v7428_v19 }
 0x773   : > { %7989 = vmatpush1.bf16.msra.mxu0 %v11582_v25  ;;  %10122 = vmatprep.mubr.msk.bf16.mxu0 %vm7177_vm12, %v7853_v13  ;;  %v11916_v13 = vmov 65535  }
 0x774   : > { %7990 = vmatprep.subr.bf16.mxu0 %v11587_v0 }
 0x777   : > { %7991 = vmatpush1.bf16.msra.mxu0 %v11585_v45  ;;  %v8042_v45 = vsel %vm3268_vm1, 4294967295, %v11916_v13  ;;  %v11650_v13 = vld [vmem:[%s15839_s18] sm:$0xff]  }
 0x778   : > { %7992 = vmatprep.subr.bf16.mxu0 %v11590_v59 }
 0x77b   : > { %7993 = vmatpush1.bf16.msra.mxu0 %v11588_v3 }
 0x77c   : > { %7994 = vmatprep.subr.bf16.mxu0 %v11593_v50 }
 0x77f   : > { %7995 = vmatpush1.bf16.msra.mxu0 %v11591_v51 }
 0x780   : > { %7996 = vmatprep.subr.bf16.mxu0 %v11596_v35  ;;  %v8043_v35 = vsel %vm5946_vm9, %v8042_v45, 0  ;;  %v11651_v45 = vld [vmem:[%s15839_s18 + $0x78] sm:$0xff]  }
 0x783   : > { %7997 = vmatpush1.bf16.msra.mxu0 %v11594_v15 }
 0x784   : > { %7998 = vmatprep.subr.bf16.mxu0 %v11599_v5 }
 0x787   : > { %7999 = vmatpush1.bf16.msra.mxu0 %v11597_v28 }
 0x788   : > { %8000 = vmatprep.subr.bf16.mxu0 %v11602_v62  ;;  %v8037_v62 = vld [vmem:[%s15834_s13] sm:$0x3] }
 0x78b   : > { %8001 = vmatpush1.bf16.msra.mxu0 %v11600_v22  ;;  %v8091_v22 = vld [vmem:[%s15835_s14] sm:$0x3] }
 0x78c   : > { %8002 = vmatprep.subr.bf16.mxu0 %v11605_v39  ;;  %v11621_v39 = vld [vmem:[%s15836_s15 + $0x38] sm:$0xff]  }
 0x78f   : > { %8003 = vmatpush1.bf16.msra.mxu0 %v11603_v24  ;;  %v11623_v24 = vld [vmem:[%s15836_s15 + $0x30] sm:$0xff]  }
 0x790   : > { %8010 = vmatprep.subr.bf16.mxu0 %v11608_v16  ;;  %v11625_v16 = vld [vmem:[%s15836_s15 + $0x28] sm:$0xff]  }
 0x793   : > { %8011 = vmatpush2.bf16.msra.mxu0 %v11606_v58  ;;  %v11627_v58 = vld [vmem:[%s15836_s15 + $0x20] sm:$0xff]  }
 0x794   : > { %8012 = vmatprep.subr.bf16.mxu0 %v11611_v32  ;;  %v11629_v32 = vld [vmem:[%s15836_s15 + $0x18] sm:$0xff]  }
 0x797   : > { %8013 = vmatpush2.bf16.msra.mxu0 %v11609_v11  ;;  %v11631_v11 = vld [vmem:[%s15836_s15 + $0x10] sm:$0xff]  }
 0x798   : > { %8014 = vmatprep.subr.bf16.mxu0 %v11614_v63  ;;  %v11632_v63 = vld [vmem:[%s15837_s16 + $0x10] sm:$0xff]  }
 0x79b   : > { %8015 = vmatpush2.bf16.msra.mxu0 %v11612_v17  ;;  %v11633_v17 = vld [vmem:[%s15836_s15 + $0x8] sm:$0xff]  }
 0x79c   : > { %8016 = vmatprep.subr.bf16.mxu0 %v11617_v29  ;;  %v11634_v29 = vld [vmem:[%s15837_s16 + $0x8] sm:$0xff]  }
 0x79f   : > { %8017 = vmatpush2.bf16.msra.mxu0 %v11615_v20  ;;  %v11635_v20 = vld [vmem:[%s15836_s15] sm:$0xff]  }
 0x7a0   : > { %8018 = vmatprep.subr.bf16.mxu0 %v11620_v31  ;;  %v11636_v31 = vld [vmem:[%s15837_s16] sm:$0xff]  }
 0x7a3   : > { %8019 = vmatpush2.bf16.msra.mxu0 %v11618_v46  ;;  %v11637_v46 = vld [vmem:[%s15836_s15 + $0x40] sm:$0xff]  }
 0x7a4   : > { %8328 = vmatprep.subr.bf16.mxu0 %v15926_v40 }
 0x7a6   : > { %8021 = vmatmul.mubr.bf16.vlgmr.msra.gmra.mxu0 %v7852_v47  ;;  %v11638_v47 = vld [vmem:[%s15837_s16 + $0x40] sm:$0xff]  }
 0x7a7   : > { %8329 = vmatpush1.bf16.msra.mxu0 %v11622_v54  ;;  %v11917_v54 = vmov 0.0  }
 0x7a8   : > { %8330 = vmatprep.subr.bf16.mxu0 %v15926_v40 }
 0x7ab   : > { %8331 = vmatpush1.bf16.msra.mxu0 %v11624_v26 }
 0x7ac   : > { %8332 = vmatprep.subr.bf16.mxu0 %v15926_v40 }
 0x7af   : > { %8333 = vmatpush1.bf16.msra.mxu0 %v11626_v8 }
 0x7b0   : > { %8334 = vmatprep.subr.bf16.mxu0 %v15926_v40 }
 0x7b3   : > { %8335 = vmatpush1.bf16.msra.mxu0 %v11628_v12 }
 0x7b4   : > { %8336 = vmatprep.subr.bf16.mxu0 %v15926_v40 }
 0x7b7   : > { %8337 = vmatpush1.bf16.msra.mxu0 %v11630_v6 }
 0x7b8   : > { %8338 = vmatprep.subr.bf16.mxu0 %v15926_v40 }
 0x7bb   : > { %8339 = vmatpush1.bf16.msra.mxu0 %v11632_v63  ;;  %v11665_v63 = vld [vmem:[%s15843_s22 + $0x18] sm:$0xff]  }
 0x7bc   : > { %8340 = vmatprep.subr.bf16.mxu0 %v15926_v40 }
 0x7bf   : > { %8341 = vmatpush1.bf16.msra.mxu0 %v11634_v29 }
 0x7c0   : > { %8342 = vmatprep.subr.bf16.mxu0 %v15926_v40 }
 0x7c3   : > { %8343 = vmatpush1.bf16.msra.mxu0 %v11636_v31 }
 0x7c4   : > { %8358 = vmatprep.subr.bf16.mxu0 %v15926_v40 }
 0x7c7   : > { %8359 = vmatpush2.bf16.msra.mxu0 %v11638_v47 }
 0x7c8   : > { %10439 = vmatprep.subr.bf16.mxu0 %v11917_v54 }
 0x7f8   : > { %v7390_v23 = vpop.f32.mrf.mxu1 }
 0x7fa   : > { %v7392_v1 = vpop.f32.mrf.mxu1 }
 0x7fc   : > { %v7394_v53 = vpop.f32.mrf.mxu1 }
 0x7fe   : > { %v7215_v7 = vpop.f32.mrf.mxu0  ;;  %v7396_v49 = vpop.f32.mrf.mxu1 }
 0x7ff   : > { %v7391_v36 = vadd.f32 %v7390_v23, %v7215_v7 }
 0x800   : > { %v7217_v14 = vpop.f32.mrf.mxu0 }
 0x801   : > { %v7393_v37 = vadd.f32 %v7392_v1, %v7217_v14 }
 0x802   : > { %v7219_v61 = vpop.f32.mrf.mxu0 }
 0x803   : > { %v7395_v18 = vadd.f32 %v7394_v53, %v7219_v61  ;;  %v11640_v53 = vld [vmem:[%s15839_s18 + $0x58] sm:$0xff]  }
 0x804   : > { %v7221_v27 = vpop.f32.mrf.mxu0 }
 0x805   : > { %v7397_v60 = vadd.f32 %v7396_v49, %v7221_v27  ;;  %v11639_v27 = vld [vmem:[%s15839_s18 + $0x38] sm:$0xff]  }
 0x82c   : > { %v7812_v33 = vpop.f32.mrf.mxu1 }
 0x82e   : > { %v7814_v21 = vpop.f32.mrf.mxu1 }
 0x830   : > { %v7816_v48 = vpop.f32.mrf.mxu1 }
 0x832   : > { %v7598_v43 = vpop.f32.mrf.mxu0  ;;  %v7818_v57 = vpop.f32.mrf.mxu1 }
 0x833   : > { %v7607_v34 = vadd.f32 %v7598_v43, %v7391_v36  ;;  %v11646_v36 = vld [vmem:[%s15839_s18 + $0x40] sm:$0xff]  }
 0x834   : > { %v7600_v42 = vpop.f32.mrf.mxu0 }
 0x835   : > { %v7608_v38 = vadd.f32 %v7600_v42, %v7393_v37  ;;  %v7821_v44 = vadd.f32 %v7812_v33, %v7607_v34  ;;  %v11641_v42 = vld [vmem:[%s15839_s18 + $0x30] sm:$0xff]  }
 0x836   : > { %v7602_v55 = vpop.f32.mrf.mxu0  ;;  %v11642_v33 = vld [vmem:[%s15839_s18 + $0x50] sm:$0xff]  }
 0x837   : > { %v7609_v41 = vadd.f32 %v7602_v55, %v7395_v18  ;;  %v7822_v4 = vadd.f32 %v7814_v21, %v7608_v38  ;;  %v11643_v55 = vld [vmem:[%s15839_s18 + $0x28] sm:$0xff]   ;;  %v11645_v18 = vld [vmem:[%s15839_s18 + $0x20] sm:$0xff]  }
 0x838   : > { %v7604_v30 = vpop.f32.mrf.mxu0  ;;  %v11644_v21 = vld [vmem:[%s15839_s18 + $0x48] sm:$0xff]  }
 0x839   : > { %v7610_v2 = vadd.f32 %v7604_v30, %v7397_v60  ;;  %v7823_v9 = vadd.f32 %v7816_v48, %v7609_v41  ;;  %v10145_v60 = vld [vmem:[%s15838_s17] ss:$0 sm:$0xff] }
 0x83b   : > { %v7824_v19 = vadd.f32 %v7818_v57, %v7610_v2 }
 0x866   : > { %v8022_v10 = vpop.f32.mrf.mxu0 }
 0x867   : > { %v8031_v0 = vadd.f32 %v8022_v10, %v7821_v44 }
 0x868   : > { %v8024_v56 = vpop.f32.mrf.mxu0 }
 0x869   : > { %v8032_v3 = vadd.f32 %v8024_v56, %v7822_v4 }
 0x86a   : > { %v8026_v52 = vpop.f32.mrf.mxu0 }
 0x86b   : > { %v8033_v25 = vadd.f32 %v8026_v52, %v7823_v9  ;;  %v11647_v52 = vld [vmem:[%s15839_s18 + $0x18] sm:$0xff]  }
 0x86c   : > { %v8028_v59 = vpop.f32.mrf.mxu0 }
 0x86d   : > { %v8034_v50 = vadd.f32 %v8028_v59, %v7824_v19  ;;  %v8035_v51 = vpack.c.bf16 %v8033_v25, %v8031_v0  ;;  %v11648_v19 = vld [vmem:[%s15839_s18 + $0x10] sm:$0xff]   ;;  %v11649_v0 = vld [vmem:[%s15839_s18 + $0x8] sm:$0xff]  }
 0x86e   : > { %v11652_v59 = vld [vmem:[%s15839_s18 + $0x70] sm:$0xff]  }
 0x86f   : > { %v8036_v15 = vpack.c.bf16 %v8034_v50, %v8032_v3  ;;  %v8045_v28 = vand.u32 %v8043_v35, %v8035_v51  ;;  %v11653_v3 = vld [vmem:[%s15839_s18 + $0x68] sm:$0xff]   ;;  %v11654_v50 = vld [vmem:[%s15839_s18 + $0x60] sm:$0xff]  }
 0x871   : > { %v8048_v5 = vand.u32 %v8043_v35, %v8036_v15  ;;  %v11655_v35 = vld [vmem:[%s15841_s20 + $0x38] ss:$0 sps:$4 sm:$0xff]  }
 0x872   : > { %v8759_v15 = vsel %vm3268_vm1, %v11655_v35, 0  ;;  %vm8848_vm1 = vcmask 687104  }
 0x873   : > { %8064 = vmatprep.subr.bf16.mxu1 %v8048_v5 }
 0x874   : > { %8065 = vmatpush1.bf16.msra.mxu1 %v8045_v28 }
 0x875   : > { %8109 = vmatprep.subr.bf16.mxu1 %v8048_v5  ;;  %v11656_v5 = vld [vmem:[%s15841_s20 + $0x30] sm:$0xff]  }
 0x877   : > { %10123 = vmatmul.mubr.msk.bf16.vlgmr.msra.gmra.mxu1 %vm8038_vm13, %v8037_v62  ;;  %v11658_v62 = vld [vmem:[%s15841_s20 + $0x20] sm:$0xff]  }
 0x878   : > { %8110 = vmatpush1.bf16.msra.mxu1 %v8045_v28  ;;  %8127 = vmatprep.mubr.bf16.mxu1 %v15926_v40  ;;  %v11657_v28 = vld [vmem:[%s15841_s20 + $0x28] sm:$0xff]  }
 0x879   : > { %8216 = vmatprep.subr.bf16.mxu1 %v15926_v40 }
 0x87f   : > { %10124 = vmatmul.mubr.msk.bf16.vlgmr.msra.gmra.mxu1 %vm8038_vm13, %v8091_v22  ;;  %v11659_v22 = vld [vmem:[%s15841_s20 + $0x18] sm:$0xff]  }
 0x880   : > { %8217 = vmatpush1.bf16.msra.mxu1 %v11621_v39  ;;  %v11660_v39 = vld [vmem:[%s15841_s20 + $0x10] sm:$0xff]  }
 0x881   : > { %8218 = vmatprep.subr.bf16.mxu1 %v15926_v40 }
 0x884   : > { %8219 = vmatpush1.bf16.msra.mxu1 %v11623_v24  ;;  %v11661_v24 = vld [vmem:[%s15841_s20 + $0x8] sm:$0xff]  }
 0x885   : > { %8220 = vmatprep.subr.bf16.mxu1 %v15926_v40 }
 0x888   : > { %8221 = vmatpush1.bf16.msra.mxu1 %v11625_v16  ;;  %v11662_v16 = vld [vmem:[%s15841_s20] sm:$0xff]  }
 0x889   : > { %8222 = vmatprep.subr.bf16.mxu1 %v15926_v40 }
 0x88c   : > { %8223 = vmatpush1.bf16.msra.mxu1 %v11627_v58  ;;  %v11663_v58 = vld [vmem:[%s15843_s22 + $0x28] ss:$0 sps:$4 sm:$0x33]  }
 0x88d   : > { %8224 = vmatprep.subr.bf16.mxu1 %v15926_v40 }
 0x890   : > { %8225 = vmatpush1.bf16.msra.mxu1 %v11629_v32  ;;  %v8853_v32 = vsel %vm4166_vm3, %v11663_v58, 0 }
 0x891   : > { %8226 = vmatprep.subr.bf16.mxu1 %v15926_v40 }
 0x894   : > { %8227 = vmatpush1.bf16.msra.mxu1 %v11631_v11  ;;  %v11664_v11 = vld [vmem:[%s15843_s22 + $0x20] sm:$0xff]  }
 0x895   : > { %8228 = vmatprep.subr.bf16.mxu1 %v15926_v40 }
 0x898   : > { %8229 = vmatpush1.bf16.msra.mxu1 %v11633_v17  ;;  %v11666_v17 = vld [vmem:[%s15843_s22 + $0x10] sm:$0xff]  }
 0x899   : > { %8230 = vmatprep.subr.bf16.mxu1 %v15926_v40 }
 0x89c   : > { %8231 = vmatpush1.bf16.msra.mxu1 %v11635_v20 }
 0x89d   : > { %8246 = vmatprep.subr.bf16.mxu1 %v15926_v40 }
 0x8a0   : > { %8247 = vmatpush2.bf16.msra.mxu1 %v11637_v46 }
 0x8a1   : > { %10415 = vmatprep.subr.bf16.mxu1 %v11917_v54 }
 0x937   : > { %v8084_v26 = vpop.f32.mrf.mxu1 }
 0x939   : > { %v8086_v8 = vpop.f32.mrf.mxu1 }
 0x93b   : > { %v8088_v12 = vpop.f32.mrf.mxu1 }
 0x93d   : > { %v8089_v6 = vpop.f32.mrf.mxu1 }
 0x93f   : > { %v8129_v40 = vpop.f32.mrf.mxu1 }
 0x940   : > { %v8136_v7 = vmax.f32 %v8084_v26, %v8129_v40 }
 0x941   : > { %v8131_v14 = vpop.f32.mrf.mxu1 }
 0x942   : > { %v8137_v23 = vmax.f32 %v8086_v8, %v8131_v14  ;;  %v8138_v43 = vpack.c.bf16 %v8136_v7, %v8136_v7 }
 0x943   : > { %v8133_v61 = vpop.f32.mrf.mxu1 }
 0x944   : > { %v8139_v1 = vpack.c.bf16 %v8137_v23, %v8137_v23 }
 0x945   : > { %v8134_v49 = vpop.f32.mrf.mxu1 }
 0x946   : > { %10134 = vmatprep.mubr.msk.bf16.mxu1 %vm8212_vm14, %v8139_v1  ;;  %10144 = vmatprep.mubr.msk.bf16.mxu0 %vm8212_vm14, %v8139_v1 }
 0x947   : > { %8249 = vmatmul.mubr.bf16.vlgmr.msra.gmra.mxu1 %v8138_v43  ;;  %8361 = vmatmul.mubr.bf16.vlgmr.msra.gmra.mxu0 %v8138_v43 }
 0x948   : > { %10416 = vmatpush3.bf16.msra.mxu1 %v11639_v27  ;;  %10440 = vmatpush3.bf16.msra.mxu0 %v11640_v53  ;;  %v8689_v27 = vld [vmem:[%s15840_s19] sm:$0x1] }
 0x949   : > { %10417 = vmatprep.subr.bf16.mxu1 %v11917_v54  ;;  %10441 = vmatprep.subr.bf16.mxu0 %v11917_v54 }
 0x94a   : > { %10423 = vmatprep.mubr.msk.bf16.mxu1 %vm11918_vm15, %v11917_v54  ;;  %10447 = vmatprep.mubr.msk.bf16.mxu0 %vm11918_vm15, %v11917_v54 }
 0x94c   : > { %10418 = vmatpush3.bf16.msra.mxu1 %v11641_v42  ;;  %10442 = vmatpush3.bf16.msra.mxu0 %v11642_v33 }
 0x94d   : > { %10419 = vmatprep.subr.bf16.mxu1 %v11917_v54  ;;  %10443 = vmatprep.subr.bf16.mxu0 %v11917_v54 }
 0x950   : > { %10420 = vmatpush3.bf16.msra.mxu1 %v11643_v55  ;;  %10444 = vmatpush3.bf16.msra.mxu0 %v11644_v21 }
 0x951   : > { %10421 = vmatprep.subr.bf16.mxu1 %v11917_v54  ;;  %10445 = vmatprep.subr.bf16.mxu0 %v11917_v54 }
 0x954   : > { %10422 = vmatpush3.bf16.msra.mxu1 %v11645_v18  ;;  %10446 = vmatpush3.bf16.msra.mxu0 %v11646_v36  ;;  %v11667_v18 = vld [vmem:[%s15843_s22 + $0x8] sm:$0xff]   ;;  %v11668_v36 = vld [vmem:[%s15843_s22] sm:$0xff]  }
 0x955   : > { %10427 = vmatprep.subr.bf16.mxu1 %v11917_v54  ;;  %10463 = vmatprep.subr.bf16.mxu0 %v11917_v54 }
 0xa07   : > { %v8250_v30 = vpop.f32.mrf.mxu1  ;;  %v8362_v37 = vpop.f32.mrf.mxu0 }
 0xa08   : > { %v8368_v41 = vmax.f32 %v8250_v30, %v8362_v37  ;;  %v8708_v30 = vld [vmem:[%s15842_s21] sm:$0x1] }
 0xa09   : > { %v8252_v48 = vpop.f32.mrf.mxu1  ;;  %v8364_v34 = vpop.f32.mrf.mxu0 }
 0xa0a   : > { %v8376_v10 = vadd.f32 %v10145_v60, %v8368_v41 }
 0xa0b   : > { %v8253_v38 = vpop.f32.mrf.mxu1  ;;  %v8365_v2 = vpop.f32.mrf.mxu0 }
 0xa0c   : > { %v8377_v56 = vmax.f32 %v8376_v10, 0.0 }
 0xa0d   : > { %v8254_v9 = vpop.f32.mrf.mxu1  ;;  %v8366_v57 = vpop.f32.mrf.mxu0 }
 0xa0e   : > { %v8378_v44 = vpack.c.bf16 %v8377_v56, %v8377_v56 }
 0xa10   : > { %v8397_v4 = vshrl.u32 %v8378_v44, 16  ;;  %v8542_v25 = vrot.slane %v8378_v44, 1 }
 0xa12   : > { %10424 = vmatmul.mubr.msk.bf16.vlgmr.msra.gmra.mxu1 %vm2050_vm0, %v8397_v4  ;;  %10448 = vmatmul.mubr.msk.bf16.vlgmr.msra.gmra.mxu0 %vm2050_vm0, %v8542_v25  ;;  %v8620_v51 = vrot.slane %v8397_v4, 1 }
 0xa13   : > { %10428 = vmatpush3.bf16.msra.mxu1 %v11647_v52  ;;  %10435 = vmatprep.mubr.msk.bf16.mxu1 %vm11918_vm15, %v11917_v54 }
 0xa14   : > { %10429 = vmatprep.subr.bf16.mxu1 %v11917_v54  ;;  %10479 = vmatprep.mubr.msk.bf16.mxu0 %vm11918_vm15, %v11917_v54 }
 0xa15   : > { %10464 = vmatpush3.bf16.msra.mxu0 %v8759_v15 }
 0xa16   : > { %10465 = vmatprep.subr.bf16.mxu0 %v11917_v54 }
 0xa17   : > { %10430 = vmatpush3.bf16.msra.mxu1 %v11648_v19 }
 0xa18   : > { %10431 = vmatprep.subr.bf16.mxu1 %v11917_v54 }
 0xa19   : > { %10466 = vmatpush3.bf16.msra.mxu0 %v11656_v5 }
 0xa1a   : > { %10467 = vmatprep.subr.bf16.mxu0 %v11917_v54 }
 0xa1b   : > { %10432 = vmatpush3.bf16.msra.mxu1 %v11649_v0 }
 0xa1c   : > { %10433 = vmatprep.subr.bf16.mxu1 %v11917_v54 }
 0xa1d   : > { %10468 = vmatpush3.bf16.msra.mxu0 %v11657_v28 }
 0xa1e   : > { %10469 = vmatprep.subr.bf16.mxu0 %v11917_v54 }
 0xa1f   : > { %10434 = vmatpush3.bf16.msra.mxu1 %v11650_v13 }
 0xa20   : > { %10451 = vmatprep.subr.bf16.mxu1 %v11917_v54 }
 0xa21   : > { %10470 = vmatpush3.bf16.msra.mxu0 %v11658_v62 }
 0xa22   : > { %10436 = vmatmul.mubr.msk.bf16.vlgmr.msra.gmra.mxu1 %vm2050_vm0, %v8378_v44  ;;  %10471 = vmatprep.subr.bf16.mxu0 %v11917_v54 }
 0xa23   : > { %10452 = vmatpush3.bf16.msra.mxu1 %v11651_v45  ;;  %10459 = vmatprep.mubr.msk.bf16.mxu1 %vm11918_vm15, %v11917_v54 }
 0xa24   : > { %10453 = vmatprep.subr.bf16.mxu1 %v11917_v54 }
 0xa25   : > { %10472 = vmatpush3.bf16.msra.mxu0 %v11659_v22 }
 0xa26   : > { %10473 = vmatprep.subr.bf16.mxu0 %v11917_v54 }
 0xa27   : > { %10454 = vmatpush3.bf16.msra.mxu1 %v11652_v59 }
 0xa28   : > { %10455 = vmatprep.subr.bf16.mxu1 %v11917_v54 }
 0xa29   : > { %10474 = vmatpush3.bf16.msra.mxu0 %v11660_v39 }
 0xa2a   : > { %10475 = vmatprep.subr.bf16.mxu0 %v11917_v54 }
 0xa2b   : > { %10456 = vmatpush3.bf16.msra.mxu1 %v11653_v3 }
 0xa2c   : > { %10457 = vmatprep.subr.bf16.mxu1 %v11917_v54 }
 0xa2d   : > { %10476 = vmatpush3.bf16.msra.mxu0 %v11661_v24 }
 0xa2e   : > { %10477 = vmatprep.subr.bf16.mxu0 %v11917_v54 }
 0xa2f   : > { %10458 = vmatpush3.bf16.msra.mxu1 %v11654_v50 }
 0xa30   : > { %10483 = vmatprep.subr.bf16.mxu1 %v11917_v54 }
 0xa31   : > { %10478 = vmatpush3.bf16.msra.mxu0 %v11662_v16 }
 0xa32   : > { %10460 = vmatmul.mubr.msk.bf16.vlgmr.msra.gmra.mxu1 %vm2050_vm0, %v8620_v51  ;;  %vm8754_vm0 = vcmask 982016  }
 0xa33   : > { %10495 = vmatprep.mubr.msk.bf16.mxu1 %vm11918_vm15, %v11917_v54  ;;  %10484 = vmatpush3.bf16.msra.mxu1 %v8853_v32 }
 0xa34   : > { %10485 = vmatprep.subr.bf16.mxu1 %v11917_v54 }
 0xa37   : > { %10486 = vmatpush3.bf16.msra.mxu1 %v11664_v11 }
 0xa38   : > { %10487 = vmatprep.subr.bf16.mxu1 %v11917_v54 }
 0xa3b   : > { %10488 = vmatpush3.bf16.msra.mxu1 %v11665_v63 }
 0xa3c   : > { %10489 = vmatprep.subr.bf16.mxu1 %v11917_v54 }
 0xa3f   : > { %10490 = vmatpush3.bf16.msra.mxu1 %v11666_v17 }
 0xa40   : > { %10491 = vmatprep.subr.bf16.mxu1 %v11917_v54 }
 0xa43   : > { %10492 = vmatpush3.bf16.msra.mxu1 %v11667_v18 }
 0xa44   : > { %10493 = vmatprep.subr.bf16.mxu1 %v11917_v54  ;;  %v8814_v54 = vld [vmem:[%s15844_s23] sm:$0x1] }
 0xa47   : > { %10494 = vmatpush3.bf16.msra.mxu1 %v11668_v36 }
 0xad2   : > { %v8460_v29 = vpop.f32.mrf.mxu1  ;;  %v8604_v20 = vpop.f32.mrf.mxu0 }
 0xad4   : > { %v10425_v31 = vpop.f32.mrf.mxu1  ;;  %v10449_v46 = vpop.f32.mrf.mxu0 }
 0xad6   : > { %v8463_v47 = vpop.f32.mrf.mxu1  ;;  %v8607_v26 = vpop.f32.mrf.mxu0 }
 0xad8   : > { %v10426_v8 = vpop.f32.mrf.mxu1  ;;  %v10450_v12 = vpop.f32.mrf.mxu0 }
 0xae2   : > { %v8526_v6 = vpop.f32.mrf.mxu1 }
 0xae3   : > { %v8527_v23 = vadd.f32 %v8526_v6, %v8460_v29 }
 0xae4   : > { %v10437_v40 = vpop.f32.mrf.mxu1 }
 0xae5   : > { %v8610_v61 = vadd.f32 %v8604_v20, %v8527_v23 }
 0xae6   : > { %v8529_v7 = vpop.f32.mrf.mxu1 }
 0xae8   : > { %v10438_v14 = vpop.f32.mrf.mxu1 }
 0xaf2   : > { %v8682_v1 = vpop.f32.mrf.mxu1 }
 0xaf3   : > { %v8688_v53 = vadd.f32 %v8682_v1, %v8610_v61 }
 0xaf4   : > { %v10461_v43 = vpop.f32.mrf.mxu1 }
 0xaf5   : > { %v8690_v49 = vadd.f32 %v8689_v27, %v8688_v53 }
 0xaf6   : > { %v8685_v42 = vpop.f32.mrf.mxu1 }
 0xaf7   : > { %v8691_v33 = vmax.f32 %v8690_v49, 0.0 }
 0xaf8   : > { %v10462_v55 = vpop.f32.mrf.mxu1 }
 0xaf9   : > { %v8692_v21 = vpack.c.bf16 %v8691_v33, %v8691_v33 }
 0xafb   : > { %10480 = vmatmul.mubr.msk.bf16.vlgmr.msra.gmra.mxu0 %vm8754_vm0, %v8692_v21 }
 0xbbb   : > { %v8795_v37 = vpop.f32.mrf.mxu0 }
 0xbbc   : > { %v8796_v60 = vadd.f32 %v8795_v37, %v8708_v30 }
 0xbbd   : > { %v10481_v41 = vpop.f32.mrf.mxu0 }
 0xbbe   : > { %v8801_v48 = vmax.f32 %v8796_v60, 0.0 }
 0xbbf   : > { %v8798_v34 = vpop.f32.mrf.mxu0 }
 0xbc0   : > { %v8802_v10 = vpack.c.bf16 %v8801_v48, %v8801_v48 }
 0xbc1   : > { %v10482_v38 = vpop.f32.mrf.mxu0 }
 0xbc2   : > { %10496 = vmatmul.mubr.msk.bf16.vlgmr.msra.gmra.mxu1 %vm8848_vm1, %v8802_v10 }
 0xc82   : > { %v8889_v2 = vpop.f32.mrf.mxu1 }
 0xc83   : > { %v8890_v56 = vadd.f32 %v8889_v2, %v8814_v54 }
 0xc84   : > { %v10497_v9 = vpop.f32.mrf.mxu1 }
 0xc85   : > { %v8896_v57 = vsel %vm8895_vm2, %v8890_v56, -inf }
 0xc86   : > { %8897 = vmax.xlane.f32.xlu0 %v8896_v57  ;;  %v8892_v44 = vpop.f32.mrf.mxu1 }
 0xc88   : > { %v10498_v52 = vpop.f32.mrf.mxu1 }
 0xd0f   : > { %v8898_v4 = vpop.xlane.xlu0 %8897 }
 0xd10   : > { %v8899_v25 = vsub.f32 %v8890_v56, %v8898_v4 }
 0xd12   : > { %v8900_v19 = vmul.f32 1.442695, %v8899_v25 }
 0xd14   : > { %11669 = vpow2.f32 %v8900_v19 }
 0xd21   : > { %v11670_v0 = vpop.eup %11669 }
 0xd22   : > { %v8902_v13 = vsel %vm8895_vm2, %v11670_v0, 0.0 }
 0xd23   : > { %8903 = vadd.xlane.f32.xlu0 %v8902_v13 }
 0xdac   : > { %v8904_v45 = vpop.xlane.xlu0 %8903 }
 0xdad   : > { %11671 = vrcp.f32 %v8904_v45 }
 0xdba   : > { %v11672_v59 = vpop.eup %11671 }
 0xdbb   : > { %v8906_v3 = vmul.f32 %v11672_v59, %v11670_v0 }
 0xdbd   : > { %8907 = vst.msk [vmem:[%s744_s24] sm:$0x1] %vm8895_vm2, %v8906_v3 }
 0xdbe   : > { %11866 = shalt.err (!%p11863_p3)
}
 0xdbf   : > { %s11867_s1 = scalar_lea.hbm %s8919_s30, 16  ;;  %s11871_s24 = scalar_lea.hbm %s15931_s7, 32 }
 0xdc0   : > { %p11868_p4 = scmp.ne.s32.totalorder %s8919_s30, %s11867_s1  ;;  %p11872_p9 = scmp.lt.s32.totalorder %s8919_s30, %s15931_s7 }
 0xdc1   : > { %p11873_p10 = scmp.lt.s32.totalorder %s11871_s24, %s11867_s1 }
 0xdc2   : > { %p11869_p7 = pnand %p11868_p4, %p12083_p5 }
 0xdc3   : > { %p11874_p11 = por %p11873_p10, %p11872_p9 }
 0xdc4   : > { %p11870_p8 = pneg %p11869_p7 }
 0xdc6   : > { %p11875_p12 = pnand %p11874_p11, %p11870_p8 }
 0xdc8   : > { %11878 = shalt.err (!%p11875_p12)
}
 0xdc9   : > { %10499 = dma.vmem_to_hbm [thread:$0]  (%p12083_p5), %s8922_s27, 16, %s8919_s30, %s8909_s29  }
 0xdca PF: > { %s15932_s8 = sld [smem:[#allocation7_spill]] }
 0xdcb   : > { %s15933_s5 = sld [smem:[#allocation5_spill]] }
 0xdd0   : > { %p10505_p13 = scmp.ge.s32.totalorder %s15932_s8, 2 }
 0xdd1   : > { %s8933_s6 = sand.u32 1, %s15933_s5  }
 0xdd2   : > { %p10502_p0 = pnand %p10505_p13, %p12087_p6  ;;  %s8934_s4 = scalar_lea.sflag [#allocation3], %s8933_s6 }
 0xdd4   : > { %p10503_p1 = pneg %p10502_p0 }
 0xdd6   : > { %11896 = dma.done.wait (%p10503_p1), %s8934_s4, 16  }
 0xdd7   : > { %11898 = vsyncadd (%p10503_p1), %s8934_s4, 4294967280  ;;  %s15935_s28 = sld [smem:[#allocation8_spill]]  ;;  %s15938_s5 = smov %s11905_s26 }
 0xdd8   : > { %s15936_s9 = sld [smem:[#allocation6_spill]] }
 0xdd9   : > { %s15937_s27 = sld [smem:[#allocation9_spill]] }
 0xddd   : > { %p34_p2 = scmp.ge.s32.totalorder %s15935_s28, 4  }
 0xdde   : > { %s15939_s26 = smov %s15936_s9 }
 0xddf   :  { %36 = sbr.rel (!%p34_p2) target bundleno = 15 (0xf), region = 165 }
 0xde4   :  { %8938 = vsyncpa [#allocation3], 1 }
 0xde5   :  { %8940 = vsyncpa [#allocation3 + $0x1], 1 }

</bundles_post_ra>
